<compile_context>
chip_gen: v7x
topology: tpu7x:2x2x1
jax: 0.10.0
libtpu: 0.0.40
codegen_flags: <defaults>
</compile_context>

<pallas_src>
import functools

import jax
import jax.numpy as jnp
from jax.experimental import pallas as pl
from jax.experimental.pallas import tpu as pltpu

LN_EPS = 1e-5
NEG_BIG = -1e30  # finite additive mask bias -> no NaN hazard on fully masked rows
VMEM_SPEC = pl.BlockSpec(memory_space=pltpu.MemorySpace.VMEM)


# ----------------------------------------------------------------------------
# Single fused forward kernel
# ----------------------------------------------------------------------------
def make_gnn_kernel(H, num_layers, num_heads):
    dh = H // num_heads
    scale = dh ** (-0.5)

    def layernorm(y, g, b):
        mu = jnp.mean(y, axis=-1, keepdims=True)
        var = jnp.mean((y - mu) ** 2, axis=-1, keepdims=True)
        return (y - mu) * jax.lax.rsqrt(var + LN_EPS) * g + b

    def softmax_rows(s):
        s = s - jnp.max(s, axis=-1, keepdims=True)
        p = jnp.exp(s)
        return p * pl.reciprocal(jnp.sum(p, axis=-1, keepdims=True), approx=True)

    def kernel(*refs):
        it = iter(refs)

        def nxt():
            return next(it)

        # --- unpack refs (order must match gnn_forward's input list) ---
        x_ref, a_norm_ref, adj_bias_ref, attn_bias_ref = nxt(), nxt(), nxt(), nxt()
        w_in, b_in, g_in, be_in = nxt(), nxt(), nxt(), nxt()
        wqkv, bqkv, wo, bo, g_att, be_att = nxt(), nxt(), nxt(), nxt(), nxt(), nxt()
        layers = [tuple(nxt() for _ in range(12)) for _ in range(num_layers)]
        w1o, b1o, g1o, be1o = nxt(), nxt(), nxt(), nxt()
        w2o, b2o, g2o, be2o = nxt(), nxt(), nxt(), nxt()
        wpr1, bpr1, wpr2, bpr2 = nxt(), nxt(), nxt(), nxt()
        cw1, cb1, cw2, cb2 = nxt(), nxt(), nxt(), nxt()
        o_ref = nxt()

        a_norm = a_norm_ref[...]          # (N, N) GCN-normalized adjacency
        adj_bias = adj_bias_ref[...]      # (N, N) -1e30/0 GAT mask bias
        attn_bias = attn_bias_ref[...]    # (N, N) -1e30/0 MHA mask bias (batch block-diag)

        # ---- input_layer: Linear + LayerNorm + ReLU (Dropout = identity) ----
        h = jnp.dot(x_ref[...], w_in[...], preferred_element_type=jnp.float32) + b_in[...]
        h = jnp.maximum(layernorm(h, g_in[...], be_in[...]), 0.0)            # (N, H)

        # ---- MultiHeadAttention: fused QKV, per-head scores over the full
        #      (N, N) block-diagonal bias (== per-sequence masked softmax),
        #      out-proj folded per head, residual + LayerNorm. ----
        qkv = jnp.dot(h, wqkv[...], preferred_element_type=jnp.float32) + bqkv[...]  # (N, 3H)
        proj = None
        for hh in range(num_heads):
            lo = hh * dh
            q_h = qkv[:, lo:lo + dh]
            k_h = qkv[:, H + lo:H + lo + dh]
            v_h = qkv[:, 2 * H + lo:2 * H + lo + dh]
            s = jnp.einsum("qd,kd->qk", q_h, k_h,
                           preferred_element_type=jnp.float32) * scale + attn_bias
            attn = softmax_rows(s)                                           # (N, N)
            pv = jnp.dot(attn, v_h, preferred_element_type=jnp.float32)      # (N, dh)
            contrib = jnp.dot(pv, wo[lo:lo + dh, :],
                              preferred_element_type=jnp.float32)            # (N, H)
            proj = contrib if proj is None else proj + contrib
        h = layernorm(proj + bo[...] + h, g_att[...], be_att[...])           # (N, H)

        # ---- num_layers x [ ResidualBlock(GCN->LN->ReLU x2, +x) ; GAT + ReLU ] ----
        for (rw1, rb1, rg1, rbe1, rw2, rb2, rg2, rbe2, gw, asrc, adst, gb) in layers:
            # ResidualBlock: GCNConv(x) = A_norm @ (x @ W) + bias
            t = jnp.dot(a_norm,
                        jnp.dot(h, rw1[...], preferred_element_type=jnp.float32),
                        preferred_element_type=jnp.float32) + rb1[...]
            t = jnp.maximum(layernorm(t, rg1[...], rbe1[...]), 0.0)
            t = jnp.dot(a_norm,
                        jnp.dot(t, rw2[...], preferred_element_type=jnp.float32),
                        preferred_element_type=jnp.float32) + rb2[...]
            t = jnp.maximum(layernorm(t, rg2[...], rbe2[...]), 0.0)
            h = t + h

            # GATConv (heads=1) + ReLU, no (N,H) transpose
            hw = jnp.dot(h, gw[...], preferred_element_type=jnp.float32)     # (N, H)
            d_col = jnp.sum(hw * adst[...], axis=-1, keepdims=True)          # (N, 1)
            s_row = jnp.einsum("oh,nh->on", asrc[...], hw,
                               preferred_element_type=jnp.float32)           # (1, N)
            e = d_col + s_row                                                # (N, N)
            e = jnp.where(e > 0, e, 0.2 * e) + adj_bias                      # LeakyReLU + mask bias
            alpha = softmax_rows(e)
            h = jnp.maximum(
                jnp.dot(alpha, hw, preferred_element_type=jnp.float32) + gb[...], 0.0)

        # ---- fused output head: out1 -> out2 -> pattern|range -> combine ----
        t = jnp.dot(h, w1o[...], preferred_element_type=jnp.float32) + b1o[...]
        t = jnp.maximum(layernorm(t, g1o[...], be1o[...]), 0.0)              # (N, H)
        t = jnp.dot(t, w2o[...], preferred_element_type=jnp.float32) + b2o[...]
        t = jnp.maximum(layernorm(t, g2o[...], be2o[...]), 0.0)              # (N, H/2)
        pr = jnp.maximum(
            jnp.dot(t, wpr1[...], preferred_element_type=jnp.float32) + bpr1[...], 0.0)
        pr = jnp.maximum(
            jnp.dot(pr, wpr2[...], preferred_element_type=jnp.float32) + bpr2[...], 0.0)
        c = jnp.maximum(
            jnp.dot(pr, cw1[...], preferred_element_type=jnp.float32) + cb1[...], 0.0)
        # range_scaling / temp_offset are folded into cw2 / cb2 at pack time
        o_ref[...] = jnp.dot(c, cw2[...], preferred_element_type=jnp.float32) + cb2[...]

    return kernel


# ----------------------------------------------------------------------------
# Graph densification (plain JAX, hoisted out of the per-forward path)
# ----------------------------------------------------------------------------
def build_graph(edge_index, batch, seq_len):
    # edge_index: (E, 2) rows of (src, dst) with indices in [0, seq_len)
    N = batch * seq_len
    src = edge_index[:, 0]
    dst = edge_index[:, 1]
    eye = jnp.arange(N)

    # GCNConv: A[dst, src] = 1 (+ self loops), symmetric normalization
    A = jnp.zeros((N, N), jnp.float32).at[dst, src].set(1.0)
    A = A.at[eye, eye].set(1.0)
    deg = jnp.sum(A, axis=1)
    dinv = jax.lax.rsqrt(deg)
    a_norm = A * dinv[:, None] * dinv[None, :]

    # GATConv: adjacency with self loops -> additive -1e30/0 bias
    adj = jnp.zeros((N, N), jnp.float32).at[dst, src].set(1.0)
    adj = adj.at[eye, eye].set(1.0)
    adj_bias = jnp.where(adj > 0, 0.0, NEG_BIG)

    # MultiHeadAttention: per-sequence (S, S) mask, same for every batch, tiled
    # block-diagonally over the batch so cross-sequence scores get -1e30
    # (zero probability) and a single (N, N) softmax == per-sequence softmax.
    mask_ss = jnp.zeros((seq_len, seq_len), jnp.float32).at[src, dst].set(1.0)
    mask_full = jnp.kron(jnp.eye(batch, dtype=jnp.float32), mask_ss)
    attn_bias = jnp.where(mask_full > 0, 0.0, NEG_BIG)
    return a_norm, adj_bias, attn_bias


# ----------------------------------------------------------------------------
# Parameter init (deterministic, mirrors module __init__ shapes / _init_weights)
# ----------------------------------------------------------------------------
def init_params(key, input_dim, hidden_dim, output_dim, num_layers, num_heads):
    ks = iter(jax.random.split(key, 128))

    def kaiming(din, dout):   # nn.Linear: kaiming_normal_(fan_out, relu), bias 0
        std = (2.0 / dout) ** 0.5
        return (std * jax.random.normal(next(ks), (din, dout), jnp.float32),
                jnp.zeros((dout,), jnp.float32))

    def glorot(din, dout):    # PyG conv weights keep glorot init
        lim = (6.0 / (din + dout)) ** 0.5
        return jax.random.uniform(next(ks), (din, dout), jnp.float32, -lim, lim)

    def ln(d):
        return jnp.ones((d,), jnp.float32), jnp.zeros((d,), jnp.float32)

    H = hidden_dim
    p = {}
    w, b = kaiming(input_dim, H); g, be = ln(H)
    p["input_layer"] = (w, b, g, be)

    att = []
    for _ in range(4):  # q, k, v, out projections
        w, b = kaiming(H, H)
        att += [w, b]
    g, be = ln(H)
    p["attention"] = tuple(att) + (g, be)

    p["res_blocks"] = []
    p["gat"] = []
    for _ in range(num_layers):
        w1 = glorot(H, H); b1 = jnp.zeros((H,), jnp.float32); g1, be1 = ln(H)
        w2 = glorot(H, H); b2 = jnp.zeros((H,), jnp.float32); g2, be2 = ln(H)
        p["res_blocks"].append((w1, b1, g1, be1, w2, b2, g2, be2))
        wg = glorot(H, H)
        asrc = glorot(1, H)
        adst = glorot(1, H)
        bg = jnp.zeros((H,), jnp.float32)
        p["gat"].append((wg, asrc, adst, bg))

    w, b = kaiming(H, H); g, be = ln(H); p["out1"] = (w, b, g, be)
    w, b = kaiming(H, H // 2); g, be = ln(H // 2); p["out2"] = (w, b, g, be)
    p["pattern"] = (kaiming(H // 2, H // 4), kaiming(H // 4, H // 8))
    p["range"] = (kaiming(H // 2, H // 4), kaiming(H // 4, H // 8))
    p["combine"] = (kaiming(H // 4, H // 8), kaiming(H // 8, output_dim))
    p["range_scaling"] = jnp.array([10.0], jnp.float32)
    p["temp_offset"] = jnp.array([25.0], jnp.float32)
    return p


# ----------------------------------------------------------------------------
# Weight packing (QKV fused, pattern|range fused, scale/offset folded)
# ----------------------------------------------------------------------------
def pack_params(params):
    row = lambda v: v.reshape(1, -1)
    flat = []

    w, b, g, be = params["input_layer"]
    flat += [w, row(b), row(g), row(be)]

    wq, bq, wk, bk, wv, bv, wo, bo, g, be = params["attention"]
    wqkv = jnp.concatenate([wq, wk, wv], axis=1)       # (H, 3H) — single QKV matmul
    bqkv = jnp.concatenate([bq, bk, bv], axis=0)       # (3H,)
    flat += [wqkv, row(bqkv), wo, row(bo), row(g), row(be)]

    for rb, gp in zip(params["res_blocks"], params["gat"]):
        w1, b1, g1, be1, w2, b2, g2, be2 = rb
        flat += [w1, row(b1), row(g1), row(be1), w2, row(b2), row(g2), row(be2)]
        wg, asrc, adst, bg = gp
        flat += [wg, row(asrc), row(adst), row(bg)]

    w, b, g, be = params["out1"]; flat += [w, row(b), row(g), row(be)]
    w, b, g, be = params["out2"]; flat += [w, row(b), row(g), row(be)]

    (pw1, pb1), (pw2, pb2) = params["pattern"]
    (rw1, rb1), (rw2, rb2) = params["range"]
    wpr1 = jnp.concatenate([pw1, rw1], axis=1)         # (H/2, H/2): both branches in one matmul
    bpr1 = jnp.concatenate([pb1, rb1], axis=0)
    wpr2 = jnp.block([[pw2, jnp.zeros_like(pw2)],      # (H/2, H/4): block-diagonal second layer
                      [jnp.zeros_like(rw2), rw2]])     # -> output == cat([pattern, range], -1)
    bpr2 = jnp.concatenate([pb2, rb2], axis=0)
    flat += [wpr1, row(bpr1), wpr2, row(bpr2)]

    (cw1, cb1), (cw2, cb2) = params["combine"]
    rs = params["range_scaling"]
    to = params["temp_offset"]
    cw2s = cw2 * rs                                     # fold range_scaling
    cb2s = cb2 * rs + to                                # fold temp_offset
    flat += [cw1, row(cb1), cw2s, row(cb2s)]
    return flat


# ----------------------------------------------------------------------------
# Forward: one fused pallas_call, everything resident in VMEM
# ----------------------------------------------------------------------------
def gnn_forward(x, a_norm, adj_bias, attn_bias, flat_w, *, num_layers, num_heads):
    B, S, Fin = x.shape
    assert S == 12  # MultiHeadAttention hard-codes seq_len = 12
    N = B * S
    H = flat_w[0].shape[1]
    out_dim = flat_w[-1].shape[-1]

    kernel = make_gnn_kernel(H, num_layers, num_heads)
    inputs = [x.reshape(N, Fin), a_norm, adj_bias, attn_bias] + list(flat_w)
    out = pl.pallas_call(
        kernel,
        out_shape=jax.ShapeDtypeStruct((N, out_dim), jnp.float32),
        in_specs=[VMEM_SPEC] * len(inputs),
        out_specs=VMEM_SPEC,
    )(*inputs)
    return out.reshape(B, S, out_dim)


if __name__ == "__main__":
    key = jax.random.PRNGKey(0)
    k_x, k_p = jax.random.split(key)

    B, S = 2, 12                     # seq_len=12 is required by the attention block
    input_dim, hidden_dim, output_dim = 16, 64, 1
    num_layers, num_heads = 2, 4

    x = jax.random.normal(k_x, (B, S, input_dim), jnp.float32)

    # edge_index: (E, 2) rows of (src, dst), indices in [0, 12) so the attention
    # mask indexing (mask[e[:,0], e[:,1]] = 1) is valid. Ring + reverse + self loops.
    ring = jnp.arange(S, dtype=jnp.int32)
    edge_index = jnp.concatenate(
        [
            jnp.stack([ring, (ring + 1) % S], axis=1),
            jnp.stack([(ring + 1) % S, ring], axis=1),
            jnp.stack([ring, ring], axis=1),
        ],
        axis=0,
    )

    params = init_params(k_p, input_dim, hidden_dim, output_dim, num_layers, num_heads)

    # Hoisted out of the per-forward path: graph densification + weight packing.
    a_norm, adj_bias, attn_bias = build_graph(edge_index, B, S)
    flat_w = pack_params(params)

    fwd = jax.jit(functools.partial(gnn_forward,
                                    num_layers=num_layers, num_heads=num_heads))
    out = fwd(x, a_norm, adj_bias, attn_bias, flat_w)
    jax.block_until_ready(out)

    assert out.shape == (B, S, output_dim), out.shape
    assert bool(jnp.all(jnp.isfinite(out)))
    print("KERNEL_OK")
</pallas_src>

<mosaic_0001>
module attributes {stable_mosaic.version = 11 : i64} {
  func.func @kernel(%arg0: memref<24x16xf32, #tpu.memory_space<vmem>>, %arg1: memref<24x24xf32, #tpu.memory_space<vmem>>, %arg2: memref<24x24xf32, #tpu.memory_space<vmem>>, %arg3: memref<24x24xf32, #tpu.memory_space<vmem>>, %arg4: memref<16x64xf32, #tpu.memory_space<vmem>>, %arg5: memref<1x64xf32, #tpu.memory_space<vmem>>, %arg6: memref<1x64xf32, #tpu.memory_space<vmem>>, %arg7: memref<1x64xf32, #tpu.memory_space<vmem>>, %arg8: memref<64x192xf32, #tpu.memory_space<vmem>>, %arg9: memref<1x192xf32, #tpu.memory_space<vmem>>, %arg10: memref<64x64xf32, #tpu.memory_space<vmem>>, %arg11: memref<1x64xf32, #tpu.memory_space<vmem>>, %arg12: memref<1x64xf32, #tpu.memory_space<vmem>>, %arg13: memref<1x64xf32, #tpu.memory_space<vmem>>, %arg14: memref<64x64xf32, #tpu.memory_space<vmem>>, %arg15: memref<1x64xf32, #tpu.memory_space<vmem>>, %arg16: memref<1x64xf32, #tpu.memory_space<vmem>>, %arg17: memref<1x64xf32, #tpu.memory_space<vmem>>, %arg18: memref<64x64xf32, #tpu.memory_space<vmem>>, %arg19: memref<1x64xf32, #tpu.memory_space<vmem>>, %arg20: memref<1x64xf32, #tpu.memory_space<vmem>>, %arg21: memref<1x64xf32, #tpu.memory_space<vmem>>, %arg22: memref<64x64xf32, #tpu.memory_space<vmem>>, %arg23: memref<1x64xf32, #tpu.memory_space<vmem>>, %arg24: memref<1x64xf32, #tpu.memory_space<vmem>>, %arg25: memref<1x64xf32, #tpu.memory_space<vmem>>, %arg26: memref<64x64xf32, #tpu.memory_space<vmem>>, %arg27: memref<1x64xf32, #tpu.memory_space<vmem>>, %arg28: memref<1x64xf32, #tpu.memory_space<vmem>>, %arg29: memref<1x64xf32, #tpu.memory_space<vmem>>, %arg30: memref<64x64xf32, #tpu.memory_space<vmem>>, %arg31: memref<1x64xf32, #tpu.memory_space<vmem>>, %arg32: memref<1x64xf32, #tpu.memory_space<vmem>>, %arg33: memref<1x64xf32, #tpu.memory_space<vmem>>, %arg34: memref<64x64xf32, #tpu.memory_space<vmem>>, %arg35: memref<1x64xf32, #tpu.memory_space<vmem>>, %arg36: memref<1x64xf32, #tpu.memory_space<vmem>>, %arg37: memref<1x64xf32, #tpu.memory_space<vmem>>, %arg38: memref<64x64xf32, #tpu.memory_space<vmem>>, %arg39: memref<1x64xf32, #tpu.memory_space<vmem>>, %arg40: memref<1x64xf32, #tpu.memory_space<vmem>>, %arg41: memref<1x64xf32, #tpu.memory_space<vmem>>, %arg42: memref<64x32xf32, #tpu.memory_space<vmem>>, %arg43: memref<1x32xf32, #tpu.memory_space<vmem>>, %arg44: memref<1x32xf32, #tpu.memory_space<vmem>>, %arg45: memref<1x32xf32, #tpu.memory_space<vmem>>, %arg46: memref<32x32xf32, #tpu.memory_space<vmem>>, %arg47: memref<1x32xf32, #tpu.memory_space<vmem>>, %arg48: memref<32x16xf32, #tpu.memory_space<vmem>>, %arg49: memref<1x16xf32, #tpu.memory_space<vmem>>, %arg50: memref<16x8xf32, #tpu.memory_space<vmem>>, %arg51: memref<1x8xf32, #tpu.memory_space<vmem>>, %arg52: memref<8x1xf32, #tpu.memory_space<vmem>>, %arg53: memref<1x1xf32, #tpu.memory_space<vmem>>, %arg54: memref<24x1xf32, #tpu.memory_space<vmem>>) attributes {dimension_semantics = [], scalar_prefetch = 0 : i64, scratch_operands = 0 : i64, tpu.core_type = #tpu.core_type<tc>} {
    %c0 = arith.constant 0 : index
    %c0_0 = arith.constant 0 : index
    %0 = vector.load %arg1[%c0, %c0_0] : memref<24x24xf32, #tpu.memory_space<vmem>>, vector<24x24xf32>
    %c0_1 = arith.constant 0 : index
    %c0_2 = arith.constant 0 : index
    %1 = vector.load %arg2[%c0_1, %c0_2] : memref<24x24xf32, #tpu.memory_space<vmem>>, vector<24x24xf32>
    %c0_3 = arith.constant 0 : index
    %c0_4 = arith.constant 0 : index
    %2 = vector.load %arg3[%c0_3, %c0_4] : memref<24x24xf32, #tpu.memory_space<vmem>>, vector<24x24xf32>
    %c0_5 = arith.constant 0 : index
    %c0_6 = arith.constant 0 : index
    %3 = vector.load %arg0[%c0_5, %c0_6] : memref<24x16xf32, #tpu.memory_space<vmem>>, vector<24x16xf32>
    %c0_7 = arith.constant 0 : index
    %c0_8 = arith.constant 0 : index
    %4 = vector.load %arg4[%c0_7, %c0_8] : memref<16x64xf32, #tpu.memory_space<vmem>>, vector<16x64xf32>
    %cst = arith.constant dense<0.000000e+00> : vector<24x64xf32>
    %5 = tpu.matmul %3, %4, %cst {dimension_numbers = #tpu.dot_dimension_numbers<[1], [0], [0], [1], [0, 0, 1, 1], [], []>} : vector<24x16xf32>, vector<16x64xf32>, vector<24x64xf32> -> vector<24x64xf32>
    %c0_9 = arith.constant 0 : index
    %c0_10 = arith.constant 0 : index
    %6 = vector.load %arg5[%c0_9, %c0_10] : memref<1x64xf32, #tpu.memory_space<vmem>>, vector<1x64xf32>
    %7 = vector.broadcast %6 : vector<1x64xf32> to vector<24x64xf32>
    %8 = arith.addf %5, %7 : vector<24x64xf32>
    %c0_11 = arith.constant 0 : index
    %c0_12 = arith.constant 0 : index
    %9 = vector.load %arg6[%c0_11, %c0_12] : memref<1x64xf32, #tpu.memory_space<vmem>>, vector<1x64xf32>
    %c0_13 = arith.constant 0 : index
    %c0_14 = arith.constant 0 : index
    %10 = vector.load %arg7[%c0_13, %c0_14] : memref<1x64xf32, #tpu.memory_space<vmem>>, vector<1x64xf32>
    %cst_15 = arith.constant dense<0.000000e+00> : vector<24xf32>
    %11 = vector.multi_reduction <add>, %8, %cst_15 [1] : vector<24x64xf32> to vector<24xf32>
    %12 = vector.shape_cast %11 : vector<24xf32> to vector<24x1xf32>
    %cst_16 = arith.constant 6.400000e+01 : f32
    %13 = vector.broadcast %cst_16 : f32 to vector<24x1xf32>
    %14 = arith.divf %12, %13 : vector<24x1xf32>
    %15 = vector.broadcast %14 : vector<24x1xf32> to vector<24x64xf32>
    %16 = arith.subf %8, %15 : vector<24x64xf32>
    %17 = arith.mulf %16, %16 : vector<24x64xf32>
    %cst_17 = arith.constant dense<0.000000e+00> : vector<24xf32>
    %18 = vector.multi_reduction <add>, %17, %cst_17 [1] : vector<24x64xf32> to vector<24xf32>
    %19 = vector.shape_cast %18 : vector<24xf32> to vector<24x1xf32>
    %cst_18 = arith.constant 6.400000e+01 : f32
    %20 = vector.broadcast %cst_18 : f32 to vector<24x1xf32>
    %21 = arith.divf %19, %20 : vector<24x1xf32>
    %22 = vector.broadcast %14 : vector<24x1xf32> to vector<24x64xf32>
    %23 = arith.subf %8, %22 : vector<24x64xf32>
    %cst_19 = arith.constant 9.99999974E-6 : f32
    %24 = vector.broadcast %cst_19 : f32 to vector<24x1xf32>
    %25 = arith.addf %21, %24 : vector<24x1xf32>
    %26 = math.rsqrt %25 : vector<24x1xf32>
    %27 = vector.broadcast %26 : vector<24x1xf32> to vector<24x64xf32>
    %28 = arith.mulf %23, %27 : vector<24x64xf32>
    %29 = vector.broadcast %9 : vector<1x64xf32> to vector<24x64xf32>
    %30 = arith.mulf %28, %29 : vector<24x64xf32>
    %31 = vector.broadcast %10 : vector<1x64xf32> to vector<24x64xf32>
    %32 = arith.addf %30, %31 : vector<24x64xf32>
    %cst_20 = arith.constant 0.000000e+00 : f32
    %33 = vector.broadcast %cst_20 : f32 to vector<24x64xf32>
    %34 = arith.maximumf %32, %33 : vector<24x64xf32>
    %c0_21 = arith.constant 0 : index
    %c0_22 = arith.constant 0 : index
    %35 = vector.load %arg8[%c0_21, %c0_22] : memref<64x192xf32, #tpu.memory_space<vmem>>, vector<64x192xf32>
    %cst_23 = arith.constant dense<0.000000e+00> : vector<24x192xf32>
    %36 = tpu.matmul %34, %35, %cst_23 {dimension_numbers = #tpu.dot_dimension_numbers<[1], [0], [0], [1], [0, 0, 1, 1], [], []>} : vector<24x64xf32>, vector<64x192xf32>, vector<24x192xf32> -> vector<24x192xf32>
    %c0_24 = arith.constant 0 : index
    %c0_25 = arith.constant 0 : index
    %37 = vector.load %arg9[%c0_24, %c0_25] : memref<1x192xf32, #tpu.memory_space<vmem>>, vector<1x192xf32>
    %38 = vector.broadcast %37 : vector<1x192xf32> to vector<24x192xf32>
    %39 = arith.addf %36, %38 : vector<24x192xf32>
    %40 = vector.extract_strided_slice %39 {offsets = [0, 0], sizes = [24, 16], strides = [1, 1]} : vector<24x192xf32> to vector<24x16xf32>
    %41 = vector.extract_strided_slice %39 {offsets = [0, 64], sizes = [24, 16], strides = [1, 1]} : vector<24x192xf32> to vector<24x16xf32>
    %42 = vector.extract_strided_slice %39 {offsets = [0, 128], sizes = [24, 16], strides = [1, 1]} : vector<24x192xf32> to vector<24x16xf32>
    "tpu.trace_start"() <{level = 10 : i32, message = "qd,kd->qk"}> : () -> ()
    %cst_26 = arith.constant dense<0.000000e+00> : vector<24x24xf32>
    %43 = tpu.matmul %40, %41, %cst_26 {dimension_numbers = #tpu.dot_dimension_numbers<[1], [1], [0], [0], [0, 0, 1, 0], [], []>} : vector<24x16xf32>, vector<24x16xf32>, vector<24x24xf32> -> vector<24x24xf32>
    "tpu.trace_stop"() : () -> ()
    %cst_27 = arith.constant 2.500000e-01 : f32
    %44 = vector.broadcast %cst_27 : f32 to vector<24x24xf32>
    %45 = arith.mulf %43, %44 : vector<24x24xf32>
    %46 = arith.addf %45, %2 : vector<24x24xf32>
    %cst_28 = arith.constant dense<0xFF800000> : vector<24xf32>
    %47 = vector.multi_reduction <maximumf>, %46, %cst_28 [1] : vector<24x24xf32> to vector<24xf32>
    %48 = vector.shape_cast %47 : vector<24xf32> to vector<24x1xf32>
    %49 = vector.broadcast %48 : vector<24x1xf32> to vector<24x24xf32>
    %50 = arith.subf %46, %49 : vector<24x24xf32>
    %51 = math.exp %50 : vector<24x24xf32>
    %cst_29 = arith.constant dense<0.000000e+00> : vector<24xf32>
    %52 = vector.multi_reduction <add>, %51, %cst_29 [1] : vector<24x24xf32> to vector<24xf32>
    %53 = vector.shape_cast %52 : vector<24xf32> to vector<24x1xf32>
    %54 = tpu.reciprocal %53 {approx = true} : vector<24x1xf32> -> vector<24x1xf32>
    %55 = vector.broadcast %54 : vector<24x1xf32> to vector<24x24xf32>
    %56 = arith.mulf %51, %55 : vector<24x24xf32>
    %cst_30 = arith.constant dense<0.000000e+00> : vector<24x16xf32>
    %57 = tpu.matmul %56, %42, %cst_30 {dimension_numbers = #tpu.dot_dimension_numbers<[1], [0], [0], [1], [0, 0, 1, 1], [], []>} : vector<24x24xf32>, vector<24x16xf32>, vector<24x16xf32> -> vector<24x16xf32>
    %c0_31 = arith.constant 0 : index
    %c0_32 = arith.constant 0 : index
    %58 = vector.load %arg10[%c0_31, %c0_32] : memref<64x64xf32, #tpu.memory_space<vmem>>, vector<16x64xf32>
    %cst_33 = arith.constant dense<0.000000e+00> : vector<24x64xf32>
    %59 = tpu.matmul %57, %58, %cst_33 {dimension_numbers = #tpu.dot_dimension_numbers<[1], [0], [0], [1], [0, 0, 1, 1], [], []>} : vector<24x16xf32>, vector<16x64xf32>, vector<24x64xf32> -> vector<24x64xf32>
    %60 = vector.extract_strided_slice %39 {offsets = [0, 16], sizes = [24, 16], strides = [1, 1]} : vector<24x192xf32> to vector<24x16xf32>
    %61 = vector.extract_strided_slice %39 {offsets = [0, 80], sizes = [24, 16], strides = [1, 1]} : vector<24x192xf32> to vector<24x16xf32>
    %62 = vector.extract_strided_slice %39 {offsets = [0, 144], sizes = [24, 16], strides = [1, 1]} : vector<24x192xf32> to vector<24x16xf32>
    "tpu.trace_start"() <{level = 10 : i32, message = "qd,kd->qk"}> : () -> ()
    %cst_34 = arith.constant dense<0.000000e+00> : vector<24x24xf32>
    %63 = tpu.matmul %60, %61, %cst_34 {dimension_numbers = #tpu.dot_dimension_numbers<[1], [1], [0], [0], [0, 0, 1, 0], [], []>} : vector<24x16xf32>, vector<24x16xf32>, vector<24x24xf32> -> vector<24x24xf32>
    "tpu.trace_stop"() : () -> ()
    %cst_35 = arith.constant 2.500000e-01 : f32
    %64 = vector.broadcast %cst_35 : f32 to vector<24x24xf32>
    %65 = arith.mulf %63, %64 : vector<24x24xf32>
    %66 = arith.addf %65, %2 : vector<24x24xf32>
    %cst_36 = arith.constant dense<0xFF800000> : vector<24xf32>
    %67 = vector.multi_reduction <maximumf>, %66, %cst_36 [1] : vector<24x24xf32> to vector<24xf32>
    %68 = vector.shape_cast %67 : vector<24xf32> to vector<24x1xf32>
    %69 = vector.broadcast %68 : vector<24x1xf32> to vector<24x24xf32>
    %70 = arith.subf %66, %69 : vector<24x24xf32>
    %71 = math.exp %70 : vector<24x24xf32>
    %cst_37 = arith.constant dense<0.000000e+00> : vector<24xf32>
    %72 = vector.multi_reduction <add>, %71, %cst_37 [1] : vector<24x24xf32> to vector<24xf32>
    %73 = vector.shape_cast %72 : vector<24xf32> to vector<24x1xf32>
    %74 = tpu.reciprocal %73 {approx = true} : vector<24x1xf32> -> vector<24x1xf32>
    %75 = vector.broadcast %74 : vector<24x1xf32> to vector<24x24xf32>
    %76 = arith.mulf %71, %75 : vector<24x24xf32>
    %cst_38 = arith.constant dense<0.000000e+00> : vector<24x16xf32>
    %77 = tpu.matmul %76, %62, %cst_38 {dimension_numbers = #tpu.dot_dimension_numbers<[1], [0], [0], [1], [0, 0, 1, 1], [], []>} : vector<24x24xf32>, vector<24x16xf32>, vector<24x16xf32> -> vector<24x16xf32>
    %c16 = arith.constant 16 : index
    %c0_39 = arith.constant 0 : index
    %78 = vector.load %arg10[%c16, %c0_39] : memref<64x64xf32, #tpu.memory_space<vmem>>, vector<16x64xf32>
    %cst_40 = arith.constant dense<0.000000e+00> : vector<24x64xf32>
    %79 = tpu.matmul %77, %78, %cst_40 {dimension_numbers = #tpu.dot_dimension_numbers<[1], [0], [0], [1], [0, 0, 1, 1], [], []>} : vector<24x16xf32>, vector<16x64xf32>, vector<24x64xf32> -> vector<24x64xf32>
    %80 = arith.addf %59, %79 : vector<24x64xf32>
    %81 = vector.extract_strided_slice %39 {offsets = [0, 32], sizes = [24, 16], strides = [1, 1]} : vector<24x192xf32> to vector<24x16xf32>
    %82 = vector.extract_strided_slice %39 {offsets = [0, 96], sizes = [24, 16], strides = [1, 1]} : vector<24x192xf32> to vector<24x16xf32>
    %83 = vector.extract_strided_slice %39 {offsets = [0, 160], sizes = [24, 16], strides = [1, 1]} : vector<24x192xf32> to vector<24x16xf32>
    "tpu.trace_start"() <{level = 10 : i32, message = "qd,kd->qk"}> : () -> ()
    %cst_41 = arith.constant dense<0.000000e+00> : vector<24x24xf32>
    %84 = tpu.matmul %81, %82, %cst_41 {dimension_numbers = #tpu.dot_dimension_numbers<[1], [1], [0], [0], [0, 0, 1, 0], [], []>} : vector<24x16xf32>, vector<24x16xf32>, vector<24x24xf32> -> vector<24x24xf32>
    "tpu.trace_stop"() : () -> ()
    %cst_42 = arith.constant 2.500000e-01 : f32
    %85 = vector.broadcast %cst_42 : f32 to vector<24x24xf32>
    %86 = arith.mulf %84, %85 : vector<24x24xf32>
    %87 = arith.addf %86, %2 : vector<24x24xf32>
    %cst_43 = arith.constant dense<0xFF800000> : vector<24xf32>
    %88 = vector.multi_reduction <maximumf>, %87, %cst_43 [1] : vector<24x24xf32> to vector<24xf32>
    %89 = vector.shape_cast %88 : vector<24xf32> to vector<24x1xf32>
    %90 = vector.broadcast %89 : vector<24x1xf32> to vector<24x24xf32>
    %91 = arith.subf %87, %90 : vector<24x24xf32>
    %92 = math.exp %91 : vector<24x24xf32>
    %cst_44 = arith.constant dense<0.000000e+00> : vector<24xf32>
    %93 = vector.multi_reduction <add>, %92, %cst_44 [1] : vector<24x24xf32> to vector<24xf32>
    %94 = vector.shape_cast %93 : vector<24xf32> to vector<24x1xf32>
    %95 = tpu.reciprocal %94 {approx = true} : vector<24x1xf32> -> vector<24x1xf32>
    %96 = vector.broadcast %95 : vector<24x1xf32> to vector<24x24xf32>
    %97 = arith.mulf %92, %96 : vector<24x24xf32>
    %cst_45 = arith.constant dense<0.000000e+00> : vector<24x16xf32>
    %98 = tpu.matmul %97, %83, %cst_45 {dimension_numbers = #tpu.dot_dimension_numbers<[1], [0], [0], [1], [0, 0, 1, 1], [], []>} : vector<24x24xf32>, vector<24x16xf32>, vector<24x16xf32> -> vector<24x16xf32>
    %c32 = arith.constant 32 : index
    %c0_46 = arith.constant 0 : index
    %99 = vector.load %arg10[%c32, %c0_46] : memref<64x64xf32, #tpu.memory_space<vmem>>, vector<16x64xf32>
    %cst_47 = arith.constant dense<0.000000e+00> : vector<24x64xf32>
    %100 = tpu.matmul %98, %99, %cst_47 {dimension_numbers = #tpu.dot_dimension_numbers<[1], [0], [0], [1], [0, 0, 1, 1], [], []>} : vector<24x16xf32>, vector<16x64xf32>, vector<24x64xf32> -> vector<24x64xf32>
    %101 = arith.addf %80, %100 : vector<24x64xf32>
    %102 = vector.extract_strided_slice %39 {offsets = [0, 48], sizes = [24, 16], strides = [1, 1]} : vector<24x192xf32> to vector<24x16xf32>
    %103 = vector.extract_strided_slice %39 {offsets = [0, 112], sizes = [24, 16], strides = [1, 1]} : vector<24x192xf32> to vector<24x16xf32>
    %104 = vector.extract_strided_slice %39 {offsets = [0, 176], sizes = [24, 16], strides = [1, 1]} : vector<24x192xf32> to vector<24x16xf32>
    "tpu.trace_start"() <{level = 10 : i32, message = "qd,kd->qk"}> : () -> ()
    %cst_48 = arith.constant dense<0.000000e+00> : vector<24x24xf32>
    %105 = tpu.matmul %102, %103, %cst_48 {dimension_numbers = #tpu.dot_dimension_numbers<[1], [1], [0], [0], [0, 0, 1, 0], [], []>} : vector<24x16xf32>, vector<24x16xf32>, vector<24x24xf32> -> vector<24x24xf32>
    "tpu.trace_stop"() : () -> ()
    %cst_49 = arith.constant 2.500000e-01 : f32
    %106 = vector.broadcast %cst_49 : f32 to vector<24x24xf32>
    %107 = arith.mulf %105, %106 : vector<24x24xf32>
    %108 = arith.addf %107, %2 : vector<24x24xf32>
    %cst_50 = arith.constant dense<0xFF800000> : vector<24xf32>
    %109 = vector.multi_reduction <maximumf>, %108, %cst_50 [1] : vector<24x24xf32> to vector<24xf32>
    %110 = vector.shape_cast %109 : vector<24xf32> to vector<24x1xf32>
    %111 = vector.broadcast %110 : vector<24x1xf32> to vector<24x24xf32>
    %112 = arith.subf %108, %111 : vector<24x24xf32>
    %113 = math.exp %112 : vector<24x24xf32>
    %cst_51 = arith.constant dense<0.000000e+00> : vector<24xf32>
    %114 = vector.multi_reduction <add>, %113, %cst_51 [1] : vector<24x24xf32> to vector<24xf32>
    %115 = vector.shape_cast %114 : vector<24xf32> to vector<24x1xf32>
    %116 = tpu.reciprocal %115 {approx = true} : vector<24x1xf32> -> vector<24x1xf32>
    %117 = vector.broadcast %116 : vector<24x1xf32> to vector<24x24xf32>
    %118 = arith.mulf %113, %117 : vector<24x24xf32>
    %cst_52 = arith.constant dense<0.000000e+00> : vector<24x16xf32>
    %119 = tpu.matmul %118, %104, %cst_52 {dimension_numbers = #tpu.dot_dimension_numbers<[1], [0], [0], [1], [0, 0, 1, 1], [], []>} : vector<24x24xf32>, vector<24x16xf32>, vector<24x16xf32> -> vector<24x16xf32>
    %c48 = arith.constant 48 : index
    %c0_53 = arith.constant 0 : index
    %120 = vector.load %arg10[%c48, %c0_53] : memref<64x64xf32, #tpu.memory_space<vmem>>, vector<16x64xf32>
    %cst_54 = arith.constant dense<0.000000e+00> : vector<24x64xf32>
    %121 = tpu.matmul %119, %120, %cst_54 {dimension_numbers = #tpu.dot_dimension_numbers<[1], [0], [0], [1], [0, 0, 1, 1], [], []>} : vector<24x16xf32>, vector<16x64xf32>, vector<24x64xf32> -> vector<24x64xf32>
    %122 = arith.addf %101, %121 : vector<24x64xf32>
    %c0_55 = arith.constant 0 : index
    %c0_56 = arith.constant 0 : index
    %123 = vector.load %arg11[%c0_55, %c0_56] : memref<1x64xf32, #tpu.memory_space<vmem>>, vector<1x64xf32>
    %124 = vector.broadcast %123 : vector<1x64xf32> to vector<24x64xf32>
    %125 = arith.addf %122, %124 : vector<24x64xf32>
    %126 = arith.addf %125, %34 : vector<24x64xf32>
    %c0_57 = arith.constant 0 : index
    %c0_58 = arith.constant 0 : index
    %127 = vector.load %arg12[%c0_57, %c0_58] : memref<1x64xf32, #tpu.memory_space<vmem>>, vector<1x64xf32>
    %c0_59 = arith.constant 0 : index
    %c0_60 = arith.constant 0 : index
    %128 = vector.load %arg13[%c0_59, %c0_60] : memref<1x64xf32, #tpu.memory_space<vmem>>, vector<1x64xf32>
    %cst_61 = arith.constant dense<0.000000e+00> : vector<24xf32>
    %129 = vector.multi_reduction <add>, %126, %cst_61 [1] : vector<24x64xf32> to vector<24xf32>
    %130 = vector.shape_cast %129 : vector<24xf32> to vector<24x1xf32>
    %cst_62 = arith.constant 6.400000e+01 : f32
    %131 = vector.broadcast %cst_62 : f32 to vector<24x1xf32>
    %132 = arith.divf %130, %131 : vector<24x1xf32>
    %133 = vector.broadcast %132 : vector<24x1xf32> to vector<24x64xf32>
    %134 = arith.subf %126, %133 : vector<24x64xf32>
    %135 = arith.mulf %134, %134 : vector<24x64xf32>
    %cst_63 = arith.constant dense<0.000000e+00> : vector<24xf32>
    %136 = vector.multi_reduction <add>, %135, %cst_63 [1] : vector<24x64xf32> to vector<24xf32>
    %137 = vector.shape_cast %136 : vector<24xf32> to vector<24x1xf32>
    %cst_64 = arith.constant 6.400000e+01 : f32
    %138 = vector.broadcast %cst_64 : f32 to vector<24x1xf32>
    %139 = arith.divf %137, %138 : vector<24x1xf32>
    %140 = vector.broadcast %132 : vector<24x1xf32> to vector<24x64xf32>
    %141 = arith.subf %126, %140 : vector<24x64xf32>
    %cst_65 = arith.constant 9.99999974E-6 : f32
    %142 = vector.broadcast %cst_65 : f32 to vector<24x1xf32>
    %143 = arith.addf %139, %142 : vector<24x1xf32>
    %144 = math.rsqrt %143 : vector<24x1xf32>
    %145 = vector.broadcast %144 : vector<24x1xf32> to vector<24x64xf32>
    %146 = arith.mulf %141, %145 : vector<24x64xf32>
    %147 = vector.broadcast %127 : vector<1x64xf32> to vector<24x64xf32>
    %148 = arith.mulf %146, %147 : vector<24x64xf32>
    %149 = vector.broadcast %128 : vector<1x64xf32> to vector<24x64xf32>
    %150 = arith.addf %148, %149 : vector<24x64xf32>
    %c0_66 = arith.constant 0 : index
    %c0_67 = arith.constant 0 : index
    %151 = vector.load %arg14[%c0_66, %c0_67] : memref<64x64xf32, #tpu.memory_space<vmem>>, vector<64x64xf32>
    %cst_68 = arith.constant dense<0.000000e+00> : vector<24x64xf32>
    %152 = tpu.matmul %150, %151, %cst_68 {dimension_numbers = #tpu.dot_dimension_numbers<[1], [0], [0], [1], [0, 0, 1, 1], [], []>} : vector<24x64xf32>, vector<64x64xf32>, vector<24x64xf32> -> vector<24x64xf32>
    %cst_69 = arith.constant dense<0.000000e+00> : vector<24x64xf32>
    %153 = tpu.matmul %0, %152, %cst_69 {dimension_numbers = #tpu.dot_dimension_numbers<[1], [0], [0], [1], [0, 0, 1, 1], [], []>} : vector<24x24xf32>, vector<24x64xf32>, vector<24x64xf32> -> vector<24x64xf32>
    %c0_70 = arith.constant 0 : index
    %c0_71 = arith.constant 0 : index
    %154 = vector.load %arg15[%c0_70, %c0_71] : memref<1x64xf32, #tpu.memory_space<vmem>>, vector<1x64xf32>
    %155 = vector.broadcast %154 : vector<1x64xf32> to vector<24x64xf32>
    %156 = arith.addf %153, %155 : vector<24x64xf32>
    %c0_72 = arith.constant 0 : index
    %c0_73 = arith.constant 0 : index
    %157 = vector.load %arg16[%c0_72, %c0_73] : memref<1x64xf32, #tpu.memory_space<vmem>>, vector<1x64xf32>
    %c0_74 = arith.constant 0 : index
    %c0_75 = arith.constant 0 : index
    %158 = vector.load %arg17[%c0_74, %c0_75] : memref<1x64xf32, #tpu.memory_space<vmem>>, vector<1x64xf32>
    %cst_76 = arith.constant dense<0.000000e+00> : vector<24xf32>
    %159 = vector.multi_reduction <add>, %156, %cst_76 [1] : vector<24x64xf32> to vector<24xf32>
    %160 = vector.shape_cast %159 : vector<24xf32> to vector<24x1xf32>
    %cst_77 = arith.constant 6.400000e+01 : f32
    %161 = vector.broadcast %cst_77 : f32 to vector<24x1xf32>
    %162 = arith.divf %160, %161 : vector<24x1xf32>
    %163 = vector.broadcast %162 : vector<24x1xf32> to vector<24x64xf32>
    %164 = arith.subf %156, %163 : vector<24x64xf32>
    %165 = arith.mulf %164, %164 : vector<24x64xf32>
    %cst_78 = arith.constant dense<0.000000e+00> : vector<24xf32>
    %166 = vector.multi_reduction <add>, %165, %cst_78 [1] : vector<24x64xf32> to vector<24xf32>
    %167 = vector.shape_cast %166 : vector<24xf32> to vector<24x1xf32>
    %cst_79 = arith.constant 6.400000e+01 : f32
    %168 = vector.broadcast %cst_79 : f32 to vector<24x1xf32>
    %169 = arith.divf %167, %168 : vector<24x1xf32>
    %170 = vector.broadcast %162 : vector<24x1xf32> to vector<24x64xf32>
    %171 = arith.subf %156, %170 : vector<24x64xf32>
    %cst_80 = arith.constant 9.99999974E-6 : f32
    %172 = vector.broadcast %cst_80 : f32 to vector<24x1xf32>
    %173 = arith.addf %169, %172 : vector<24x1xf32>
    %174 = math.rsqrt %173 : vector<24x1xf32>
    %175 = vector.broadcast %174 : vector<24x1xf32> to vector<24x64xf32>
    %176 = arith.mulf %171, %175 : vector<24x64xf32>
    %177 = vector.broadcast %157 : vector<1x64xf32> to vector<24x64xf32>
    %178 = arith.mulf %176, %177 : vector<24x64xf32>
    %179 = vector.broadcast %158 : vector<1x64xf32> to vector<24x64xf32>
    %180 = arith.addf %178, %179 : vector<24x64xf32>
    %cst_81 = arith.constant 0.000000e+00 : f32
    %181 = vector.broadcast %cst_81 : f32 to vector<24x64xf32>
    %182 = arith.maximumf %180, %181 : vector<24x64xf32>
    %c0_82 = arith.constant 0 : index
    %c0_83 = arith.constant 0 : index
    %183 = vector.load %arg18[%c0_82, %c0_83] : memref<64x64xf32, #tpu.memory_space<vmem>>, vector<64x64xf32>
    %cst_84 = arith.constant dense<0.000000e+00> : vector<24x64xf32>
    %184 = tpu.matmul %182, %183, %cst_84 {dimension_numbers = #tpu.dot_dimension_numbers<[1], [0], [0], [1], [0, 0, 1, 1], [], []>} : vector<24x64xf32>, vector<64x64xf32>, vector<24x64xf32> -> vector<24x64xf32>
    %cst_85 = arith.constant dense<0.000000e+00> : vector<24x64xf32>
    %185 = tpu.matmul %0, %184, %cst_85 {dimension_numbers = #tpu.dot_dimension_numbers<[1], [0], [0], [1], [0, 0, 1, 1], [], []>} : vector<24x24xf32>, vector<24x64xf32>, vector<24x64xf32> -> vector<24x64xf32>
    %c0_86 = arith.constant 0 : index
    %c0_87 = arith.constant 0 : index
    %186 = vector.load %arg19[%c0_86, %c0_87] : memref<1x64xf32, #tpu.memory_space<vmem>>, vector<1x64xf32>
    %187 = vector.broadcast %186 : vector<1x64xf32> to vector<24x64xf32>
    %188 = arith.addf %185, %187 : vector<24x64xf32>
    %c0_88 = arith.constant 0 : index
    %c0_89 = arith.constant 0 : index
    %189 = vector.load %arg20[%c0_88, %c0_89] : memref<1x64xf32, #tpu.memory_space<vmem>>, vector<1x64xf32>
    %c0_90 = arith.constant 0 : index
    %c0_91 = arith.constant 0 : index
    %190 = vector.load %arg21[%c0_90, %c0_91] : memref<1x64xf32, #tpu.memory_space<vmem>>, vector<1x64xf32>
    %cst_92 = arith.constant dense<0.000000e+00> : vector<24xf32>
    %191 = vector.multi_reduction <add>, %188, %cst_92 [1] : vector<24x64xf32> to vector<24xf32>
    %192 = vector.shape_cast %191 : vector<24xf32> to vector<24x1xf32>
    %cst_93 = arith.constant 6.400000e+01 : f32
    %193 = vector.broadcast %cst_93 : f32 to vector<24x1xf32>
    %194 = arith.divf %192, %193 : vector<24x1xf32>
    %195 = vector.broadcast %194 : vector<24x1xf32> to vector<24x64xf32>
    %196 = arith.subf %188, %195 : vector<24x64xf32>
    %197 = arith.mulf %196, %196 : vector<24x64xf32>
    %cst_94 = arith.constant dense<0.000000e+00> : vector<24xf32>
    %198 = vector.multi_reduction <add>, %197, %cst_94 [1] : vector<24x64xf32> to vector<24xf32>
    %199 = vector.shape_cast %198 : vector<24xf32> to vector<24x1xf32>
    %cst_95 = arith.constant 6.400000e+01 : f32
    %200 = vector.broadcast %cst_95 : f32 to vector<24x1xf32>
    %201 = arith.divf %199, %200 : vector<24x1xf32>
    %202 = vector.broadcast %194 : vector<24x1xf32> to vector<24x64xf32>
    %203 = arith.subf %188, %202 : vector<24x64xf32>
    %cst_96 = arith.constant 9.99999974E-6 : f32
    %204 = vector.broadcast %cst_96 : f32 to vector<24x1xf32>
    %205 = arith.addf %201, %204 : vector<24x1xf32>
    %206 = math.rsqrt %205 : vector<24x1xf32>
    %207 = vector.broadcast %206 : vector<24x1xf32> to vector<24x64xf32>
    %208 = arith.mulf %203, %207 : vector<24x64xf32>
    %209 = vector.broadcast %189 : vector<1x64xf32> to vector<24x64xf32>
    %210 = arith.mulf %208, %209 : vector<24x64xf32>
    %211 = vector.broadcast %190 : vector<1x64xf32> to vector<24x64xf32>
    %212 = arith.addf %210, %211 : vector<24x64xf32>
    %cst_97 = arith.constant 0.000000e+00 : f32
    %213 = vector.broadcast %cst_97 : f32 to vector<24x64xf32>
    %214 = arith.maximumf %212, %213 : vector<24x64xf32>
    %215 = arith.addf %214, %150 : vector<24x64xf32>
    %c0_98 = arith.constant 0 : index
    %c0_99 = arith.constant 0 : index
    %216 = vector.load %arg22[%c0_98, %c0_99] : memref<64x64xf32, #tpu.memory_space<vmem>>, vector<64x64xf32>
    %cst_100 = arith.constant dense<0.000000e+00> : vector<24x64xf32>
    %217 = tpu.matmul %215, %216, %cst_100 {dimension_numbers = #tpu.dot_dimension_numbers<[1], [0], [0], [1], [0, 0, 1, 1], [], []>} : vector<24x64xf32>, vector<64x64xf32>, vector<24x64xf32> -> vector<24x64xf32>
    %c0_101 = arith.constant 0 : index
    %c0_102 = arith.constant 0 : index
    %218 = vector.load %arg24[%c0_101, %c0_102] : memref<1x64xf32, #tpu.memory_space<vmem>>, vector<1x64xf32>
    %219 = vector.broadcast %218 : vector<1x64xf32> to vector<24x64xf32>
    %220 = arith.mulf %217, %219 : vector<24x64xf32>
    %cst_103 = arith.constant dense<0.000000e+00> : vector<24xf32>
    %221 = vector.multi_reduction <add>, %220, %cst_103 [1] : vector<24x64xf32> to vector<24xf32>
    %222 = vector.shape_cast %221 : vector<24xf32> to vector<24x1xf32>
    %c0_104 = arith.constant 0 : index
    %c0_105 = arith.constant 0 : index
    %223 = vector.load %arg23[%c0_104, %c0_105] : memref<1x64xf32, #tpu.memory_space<vmem>>, vector<1x64xf32>
    "tpu.trace_start"() <{level = 10 : i32, message = "oh,nh->on"}> : () -> ()
    %cst_106 = arith.constant dense<0.000000e+00> : vector<1x24xf32>
    %224 = tpu.matmul %223, %217, %cst_106 {dimension_numbers = #tpu.dot_dimension_numbers<[1], [1], [0], [0], [0, 0, 1, 0], [], []>} : vector<1x64xf32>, vector<24x64xf32>, vector<1x24xf32> -> vector<1x24xf32>
    "tpu.trace_stop"() : () -> ()
    %225 = vector.broadcast %222 : vector<24x1xf32> to vector<24x24xf32>
    %226 = vector.broadcast %224 : vector<1x24xf32> to vector<24x24xf32>
    %227 = arith.addf %225, %226 : vector<24x24xf32>
    %cst_107 = arith.constant 0.000000e+00 : f32
    %228 = vector.broadcast %cst_107 : f32 to vector<24x24xf32>
    %229 = arith.cmpf ogt, %227, %228 : vector<24x24xf32>
    %cst_108 = arith.constant 2.000000e-01 : f32
    %230 = vector.broadcast %cst_108 : f32 to vector<24x24xf32>
    %231 = arith.mulf %230, %227 : vector<24x24xf32>
    %232 = arith.select %229, %227, %231 : vector<24x24xi1>, vector<24x24xf32>
    %233 = arith.addf %232, %1 : vector<24x24xf32>
    %cst_109 = arith.constant dense<0xFF800000> : vector<24xf32>
    %234 = vector.multi_reduction <maximumf>, %233, %cst_109 [1] : vector<24x24xf32> to vector<24xf32>
    %235 = vector.shape_cast %234 : vector<24xf32> to vector<24x1xf32>
    %236 = vector.broadcast %235 : vector<24x1xf32> to vector<24x24xf32>
    %237 = arith.subf %233, %236 : vector<24x24xf32>
    %238 = math.exp %237 : vector<24x24xf32>
    %cst_110 = arith.constant dense<0.000000e+00> : vector<24xf32>
    %239 = vector.multi_reduction <add>, %238, %cst_110 [1] : vector<24x24xf32> to vector<24xf32>
    %240 = vector.shape_cast %239 : vector<24xf32> to vector<24x1xf32>
    %241 = tpu.reciprocal %240 {approx = true} : vector<24x1xf32> -> vector<24x1xf32>
    %242 = vector.broadcast %241 : vector<24x1xf32> to vector<24x24xf32>
    %243 = arith.mulf %238, %242 : vector<24x24xf32>
    %cst_111 = arith.constant dense<0.000000e+00> : vector<24x64xf32>
    %244 = tpu.matmul %243, %217, %cst_111 {dimension_numbers = #tpu.dot_dimension_numbers<[1], [0], [0], [1], [0, 0, 1, 1], [], []>} : vector<24x24xf32>, vector<24x64xf32>, vector<24x64xf32> -> vector<24x64xf32>
    %c0_112 = arith.constant 0 : index
    %c0_113 = arith.constant 0 : index
    %245 = vector.load %arg25[%c0_112, %c0_113] : memref<1x64xf32, #tpu.memory_space<vmem>>, vector<1x64xf32>
    %246 = vector.broadcast %245 : vector<1x64xf32> to vector<24x64xf32>
    %247 = arith.addf %244, %246 : vector<24x64xf32>
    %cst_114 = arith.constant 0.000000e+00 : f32
    %248 = vector.broadcast %cst_114 : f32 to vector<24x64xf32>
    %249 = arith.maximumf %247, %248 : vector<24x64xf32>
    %c0_115 = arith.constant 0 : index
    %c0_116 = arith.constant 0 : index
    %250 = vector.load %arg26[%c0_115, %c0_116] : memref<64x64xf32, #tpu.memory_space<vmem>>, vector<64x64xf32>
    %cst_117 = arith.constant dense<0.000000e+00> : vector<24x64xf32>
    %251 = tpu.matmul %249, %250, %cst_117 {dimension_numbers = #tpu.dot_dimension_numbers<[1], [0], [0], [1], [0, 0, 1, 1], [], []>} : vector<24x64xf32>, vector<64x64xf32>, vector<24x64xf32> -> vector<24x64xf32>
    %cst_118 = arith.constant dense<0.000000e+00> : vector<24x64xf32>
    %252 = tpu.matmul %0, %251, %cst_118 {dimension_numbers = #tpu.dot_dimension_numbers<[1], [0], [0], [1], [0, 0, 1, 1], [], []>} : vector<24x24xf32>, vector<24x64xf32>, vector<24x64xf32> -> vector<24x64xf32>
    %c0_119 = arith.constant 0 : index
    %c0_120 = arith.constant 0 : index
    %253 = vector.load %arg27[%c0_119, %c0_120] : memref<1x64xf32, #tpu.memory_space<vmem>>, vector<1x64xf32>
    %254 = vector.broadcast %253 : vector<1x64xf32> to vector<24x64xf32>
    %255 = arith.addf %252, %254 : vector<24x64xf32>
    %c0_121 = arith.constant 0 : index
    %c0_122 = arith.constant 0 : index
    %256 = vector.load %arg28[%c0_121, %c0_122] : memref<1x64xf32, #tpu.memory_space<vmem>>, vector<1x64xf32>
    %c0_123 = arith.constant 0 : index
    %c0_124 = arith.constant 0 : index
    %257 = vector.load %arg29[%c0_123, %c0_124] : memref<1x64xf32, #tpu.memory_space<vmem>>, vector<1x64xf32>
    %cst_125 = arith.constant dense<0.000000e+00> : vector<24xf32>
    %258 = vector.multi_reduction <add>, %255, %cst_125 [1] : vector<24x64xf32> to vector<24xf32>
    %259 = vector.shape_cast %258 : vector<24xf32> to vector<24x1xf32>
    %cst_126 = arith.constant 6.400000e+01 : f32
    %260 = vector.broadcast %cst_126 : f32 to vector<24x1xf32>
    %261 = arith.divf %259, %260 : vector<24x1xf32>
    %262 = vector.broadcast %261 : vector<24x1xf32> to vector<24x64xf32>
    %263 = arith.subf %255, %262 : vector<24x64xf32>
    %264 = arith.mulf %263, %263 : vector<24x64xf32>
    %cst_127 = arith.constant dense<0.000000e+00> : vector<24xf32>
    %265 = vector.multi_reduction <add>, %264, %cst_127 [1] : vector<24x64xf32> to vector<24xf32>
    %266 = vector.shape_cast %265 : vector<24xf32> to vector<24x1xf32>
    %cst_128 = arith.constant 6.400000e+01 : f32
    %267 = vector.broadcast %cst_128 : f32 to vector<24x1xf32>
    %268 = arith.divf %266, %267 : vector<24x1xf32>
    %269 = vector.broadcast %261 : vector<24x1xf32> to vector<24x64xf32>
    %270 = arith.subf %255, %269 : vector<24x64xf32>
    %cst_129 = arith.constant 9.99999974E-6 : f32
    %271 = vector.broadcast %cst_129 : f32 to vector<24x1xf32>
    %272 = arith.addf %268, %271 : vector<24x1xf32>
    %273 = math.rsqrt %272 : vector<24x1xf32>
    %274 = vector.broadcast %273 : vector<24x1xf32> to vector<24x64xf32>
    %275 = arith.mulf %270, %274 : vector<24x64xf32>
    %276 = vector.broadcast %256 : vector<1x64xf32> to vector<24x64xf32>
    %277 = arith.mulf %275, %276 : vector<24x64xf32>
    %278 = vector.broadcast %257 : vector<1x64xf32> to vector<24x64xf32>
    %279 = arith.addf %277, %278 : vector<24x64xf32>
    %cst_130 = arith.constant 0.000000e+00 : f32
    %280 = vector.broadcast %cst_130 : f32 to vector<24x64xf32>
    %281 = arith.maximumf %279, %280 : vector<24x64xf32>
    %c0_131 = arith.constant 0 : index
    %c0_132 = arith.constant 0 : index
    %282 = vector.load %arg30[%c0_131, %c0_132] : memref<64x64xf32, #tpu.memory_space<vmem>>, vector<64x64xf32>
    %cst_133 = arith.constant dense<0.000000e+00> : vector<24x64xf32>
    %283 = tpu.matmul %281, %282, %cst_133 {dimension_numbers = #tpu.dot_dimension_numbers<[1], [0], [0], [1], [0, 0, 1, 1], [], []>} : vector<24x64xf32>, vector<64x64xf32>, vector<24x64xf32> -> vector<24x64xf32>
    %cst_134 = arith.constant dense<0.000000e+00> : vector<24x64xf32>
    %284 = tpu.matmul %0, %283, %cst_134 {dimension_numbers = #tpu.dot_dimension_numbers<[1], [0], [0], [1], [0, 0, 1, 1], [], []>} : vector<24x24xf32>, vector<24x64xf32>, vector<24x64xf32> -> vector<24x64xf32>
    %c0_135 = arith.constant 0 : index
    %c0_136 = arith.constant 0 : index
    %285 = vector.load %arg31[%c0_135, %c0_136] : memref<1x64xf32, #tpu.memory_space<vmem>>, vector<1x64xf32>
    %286 = vector.broadcast %285 : vector<1x64xf32> to vector<24x64xf32>
    %287 = arith.addf %284, %286 : vector<24x64xf32>
    %c0_137 = arith.constant 0 : index
    %c0_138 = arith.constant 0 : index
    %288 = vector.load %arg32[%c0_137, %c0_138] : memref<1x64xf32, #tpu.memory_space<vmem>>, vector<1x64xf32>
    %c0_139 = arith.constant 0 : index
    %c0_140 = arith.constant 0 : index
    %289 = vector.load %arg33[%c0_139, %c0_140] : memref<1x64xf32, #tpu.memory_space<vmem>>, vector<1x64xf32>
    %cst_141 = arith.constant dense<0.000000e+00> : vector<24xf32>
    %290 = vector.multi_reduction <add>, %287, %cst_141 [1] : vector<24x64xf32> to vector<24xf32>
    %291 = vector.shape_cast %290 : vector<24xf32> to vector<24x1xf32>
    %cst_142 = arith.constant 6.400000e+01 : f32
    %292 = vector.broadcast %cst_142 : f32 to vector<24x1xf32>
    %293 = arith.divf %291, %292 : vector<24x1xf32>
    %294 = vector.broadcast %293 : vector<24x1xf32> to vector<24x64xf32>
    %295 = arith.subf %287, %294 : vector<24x64xf32>
    %296 = arith.mulf %295, %295 : vector<24x64xf32>
    %cst_143 = arith.constant dense<0.000000e+00> : vector<24xf32>
    %297 = vector.multi_reduction <add>, %296, %cst_143 [1] : vector<24x64xf32> to vector<24xf32>
    %298 = vector.shape_cast %297 : vector<24xf32> to vector<24x1xf32>
    %cst_144 = arith.constant 6.400000e+01 : f32
    %299 = vector.broadcast %cst_144 : f32 to vector<24x1xf32>
    %300 = arith.divf %298, %299 : vector<24x1xf32>
    %301 = vector.broadcast %293 : vector<24x1xf32> to vector<24x64xf32>
    %302 = arith.subf %287, %301 : vector<24x64xf32>
    %cst_145 = arith.constant 9.99999974E-6 : f32
    %303 = vector.broadcast %cst_145 : f32 to vector<24x1xf32>
    %304 = arith.addf %300, %303 : vector<24x1xf32>
    %305 = math.rsqrt %304 : vector<24x1xf32>
    %306 = vector.broadcast %305 : vector<24x1xf32> to vector<24x64xf32>
    %307 = arith.mulf %302, %306 : vector<24x64xf32>
    %308 = vector.broadcast %288 : vector<1x64xf32> to vector<24x64xf32>
    %309 = arith.mulf %307, %308 : vector<24x64xf32>
    %310 = vector.broadcast %289 : vector<1x64xf32> to vector<24x64xf32>
    %311 = arith.addf %309, %310 : vector<24x64xf32>
    %cst_146 = arith.constant 0.000000e+00 : f32
    %312 = vector.broadcast %cst_146 : f32 to vector<24x64xf32>
    %313 = arith.maximumf %311, %312 : vector<24x64xf32>
    %314 = arith.addf %313, %249 : vector<24x64xf32>
    %c0_147 = arith.constant 0 : index
    %c0_148 = arith.constant 0 : index
    %315 = vector.load %arg34[%c0_147, %c0_148] : memref<64x64xf32, #tpu.memory_space<vmem>>, vector<64x64xf32>
    %cst_149 = arith.constant dense<0.000000e+00> : vector<24x64xf32>
    %316 = tpu.matmul %314, %315, %cst_149 {dimension_numbers = #tpu.dot_dimension_numbers<[1], [0], [0], [1], [0, 0, 1, 1], [], []>} : vector<24x64xf32>, vector<64x64xf32>, vector<24x64xf32> -> vector<24x64xf32>
    %c0_150 = arith.constant 0 : index
    %c0_151 = arith.constant 0 : index
    %317 = vector.load %arg36[%c0_150, %c0_151] : memref<1x64xf32, #tpu.memory_space<vmem>>, vector<1x64xf32>
    %318 = vector.broadcast %317 : vector<1x64xf32> to vector<24x64xf32>
    %319 = arith.mulf %316, %318 : vector<24x64xf32>
    %cst_152 = arith.constant dense<0.000000e+00> : vector<24xf32>
    %320 = vector.multi_reduction <add>, %319, %cst_152 [1] : vector<24x64xf32> to vector<24xf32>
    %321 = vector.shape_cast %320 : vector<24xf32> to vector<24x1xf32>
    %c0_153 = arith.constant 0 : index
    %c0_154 = arith.constant 0 : index
    %322 = vector.load %arg35[%c0_153, %c0_154] : memref<1x64xf32, #tpu.memory_space<vmem>>, vector<1x64xf32>
    "tpu.trace_start"() <{level = 10 : i32, message = "oh,nh->on"}> : () -> ()
    %cst_155 = arith.constant dense<0.000000e+00> : vector<1x24xf32>
    %323 = tpu.matmul %322, %316, %cst_155 {dimension_numbers = #tpu.dot_dimension_numbers<[1], [1], [0], [0], [0, 0, 1, 0], [], []>} : vector<1x64xf32>, vector<24x64xf32>, vector<1x24xf32> -> vector<1x24xf32>
    "tpu.trace_stop"() : () -> ()
    %324 = vector.broadcast %321 : vector<24x1xf32> to vector<24x24xf32>
    %325 = vector.broadcast %323 : vector<1x24xf32> to vector<24x24xf32>
    %326 = arith.addf %324, %325 : vector<24x24xf32>
    %cst_156 = arith.constant 0.000000e+00 : f32
    %327 = vector.broadcast %cst_156 : f32 to vector<24x24xf32>
    %328 = arith.cmpf ogt, %326, %327 : vector<24x24xf32>
    %cst_157 = arith.constant 2.000000e-01 : f32
    %329 = vector.broadcast %cst_157 : f32 to vector<24x24xf32>
    %330 = arith.mulf %329, %326 : vector<24x24xf32>
    %331 = arith.select %328, %326, %330 : vector<24x24xi1>, vector<24x24xf32>
    %332 = arith.addf %331, %1 : vector<24x24xf32>
    %cst_158 = arith.constant dense<0xFF800000> : vector<24xf32>
    %333 = vector.multi_reduction <maximumf>, %332, %cst_158 [1] : vector<24x24xf32> to vector<24xf32>
    %334 = vector.shape_cast %333 : vector<24xf32> to vector<24x1xf32>
    %335 = vector.broadcast %334 : vector<24x1xf32> to vector<24x24xf32>
    %336 = arith.subf %332, %335 : vector<24x24xf32>
    %337 = math.exp %336 : vector<24x24xf32>
    %cst_159 = arith.constant dense<0.000000e+00> : vector<24xf32>
    %338 = vector.multi_reduction <add>, %337, %cst_159 [1] : vector<24x24xf32> to vector<24xf32>
    %339 = vector.shape_cast %338 : vector<24xf32> to vector<24x1xf32>
    %340 = tpu.reciprocal %339 {approx = true} : vector<24x1xf32> -> vector<24x1xf32>
    %341 = vector.broadcast %340 : vector<24x1xf32> to vector<24x24xf32>
    %342 = arith.mulf %337, %341 : vector<24x24xf32>
    %cst_160 = arith.constant dense<0.000000e+00> : vector<24x64xf32>
    %343 = tpu.matmul %342, %316, %cst_160 {dimension_numbers = #tpu.dot_dimension_numbers<[1], [0], [0], [1], [0, 0, 1, 1], [], []>} : vector<24x24xf32>, vector<24x64xf32>, vector<24x64xf32> -> vector<24x64xf32>
    %c0_161 = arith.constant 0 : index
    %c0_162 = arith.constant 0 : index
    %344 = vector.load %arg37[%c0_161, %c0_162] : memref<1x64xf32, #tpu.memory_space<vmem>>, vector<1x64xf32>
    %345 = vector.broadcast %344 : vector<1x64xf32> to vector<24x64xf32>
    %346 = arith.addf %343, %345 : vector<24x64xf32>
    %cst_163 = arith.constant 0.000000e+00 : f32
    %347 = vector.broadcast %cst_163 : f32 to vector<24x64xf32>
    %348 = arith.maximumf %346, %347 : vector<24x64xf32>
    %c0_164 = arith.constant 0 : index
    %c0_165 = arith.constant 0 : index
    %349 = vector.load %arg38[%c0_164, %c0_165] : memref<64x64xf32, #tpu.memory_space<vmem>>, vector<64x64xf32>
    %cst_166 = arith.constant dense<0.000000e+00> : vector<24x64xf32>
    %350 = tpu.matmul %348, %349, %cst_166 {dimension_numbers = #tpu.dot_dimension_numbers<[1], [0], [0], [1], [0, 0, 1, 1], [], []>} : vector<24x64xf32>, vector<64x64xf32>, vector<24x64xf32> -> vector<24x64xf32>
    %c0_167 = arith.constant 0 : index
    %c0_168 = arith.constant 0 : index
    %351 = vector.load %arg39[%c0_167, %c0_168] : memref<1x64xf32, #tpu.memory_space<vmem>>, vector<1x64xf32>
    %352 = vector.broadcast %351 : vector<1x64xf32> to vector<24x64xf32>
    %353 = arith.addf %350, %352 : vector<24x64xf32>
    %c0_169 = arith.constant 0 : index
    %c0_170 = arith.constant 0 : index
    %354 = vector.load %arg40[%c0_169, %c0_170] : memref<1x64xf32, #tpu.memory_space<vmem>>, vector<1x64xf32>
    %c0_171 = arith.constant 0 : index
    %c0_172 = arith.constant 0 : index
    %355 = vector.load %arg41[%c0_171, %c0_172] : memref<1x64xf32, #tpu.memory_space<vmem>>, vector<1x64xf32>
    %cst_173 = arith.constant dense<0.000000e+00> : vector<24xf32>
    %356 = vector.multi_reduction <add>, %353, %cst_173 [1] : vector<24x64xf32> to vector<24xf32>
    %357 = vector.shape_cast %356 : vector<24xf32> to vector<24x1xf32>
    %cst_174 = arith.constant 6.400000e+01 : f32
    %358 = vector.broadcast %cst_174 : f32 to vector<24x1xf32>
    %359 = arith.divf %357, %358 : vector<24x1xf32>
    %360 = vector.broadcast %359 : vector<24x1xf32> to vector<24x64xf32>
    %361 = arith.subf %353, %360 : vector<24x64xf32>
    %362 = arith.mulf %361, %361 : vector<24x64xf32>
    %cst_175 = arith.constant dense<0.000000e+00> : vector<24xf32>
    %363 = vector.multi_reduction <add>, %362, %cst_175 [1] : vector<24x64xf32> to vector<24xf32>
    %364 = vector.shape_cast %363 : vector<24xf32> to vector<24x1xf32>
    %cst_176 = arith.constant 6.400000e+01 : f32
    %365 = vector.broadcast %cst_176 : f32 to vector<24x1xf32>
    %366 = arith.divf %364, %365 : vector<24x1xf32>
    %367 = vector.broadcast %359 : vector<24x1xf32> to vector<24x64xf32>
    %368 = arith.subf %353, %367 : vector<24x64xf32>
    %cst_177 = arith.constant 9.99999974E-6 : f32
    %369 = vector.broadcast %cst_177 : f32 to vector<24x1xf32>
    %370 = arith.addf %366, %369 : vector<24x1xf32>
    %371 = math.rsqrt %370 : vector<24x1xf32>
    %372 = vector.broadcast %371 : vector<24x1xf32> to vector<24x64xf32>
    %373 = arith.mulf %368, %372 : vector<24x64xf32>
    %374 = vector.broadcast %354 : vector<1x64xf32> to vector<24x64xf32>
    %375 = arith.mulf %373, %374 : vector<24x64xf32>
    %376 = vector.broadcast %355 : vector<1x64xf32> to vector<24x64xf32>
    %377 = arith.addf %375, %376 : vector<24x64xf32>
    %cst_178 = arith.constant 0.000000e+00 : f32
    %378 = vector.broadcast %cst_178 : f32 to vector<24x64xf32>
    %379 = arith.maximumf %377, %378 : vector<24x64xf32>
    %c0_179 = arith.constant 0 : index
    %c0_180 = arith.constant 0 : index
    %380 = vector.load %arg42[%c0_179, %c0_180] : memref<64x32xf32, #tpu.memory_space<vmem>>, vector<64x32xf32>
    %cst_181 = arith.constant dense<0.000000e+00> : vector<24x32xf32>
    %381 = tpu.matmul %379, %380, %cst_181 {dimension_numbers = #tpu.dot_dimension_numbers<[1], [0], [0], [1], [0, 0, 1, 1], [], []>} : vector<24x64xf32>, vector<64x32xf32>, vector<24x32xf32> -> vector<24x32xf32>
    %c0_182 = arith.constant 0 : index
    %c0_183 = arith.constant 0 : index
    %382 = vector.load %arg43[%c0_182, %c0_183] : memref<1x32xf32, #tpu.memory_space<vmem>>, vector<1x32xf32>
    %383 = vector.broadcast %382 : vector<1x32xf32> to vector<24x32xf32>
    %384 = arith.addf %381, %383 : vector<24x32xf32>
    %c0_184 = arith.constant 0 : index
    %c0_185 = arith.constant 0 : index
    %385 = vector.load %arg44[%c0_184, %c0_185] : memref<1x32xf32, #tpu.memory_space<vmem>>, vector<1x32xf32>
    %c0_186 = arith.constant 0 : index
    %c0_187 = arith.constant 0 : index
    %386 = vector.load %arg45[%c0_186, %c0_187] : memref<1x32xf32, #tpu.memory_space<vmem>>, vector<1x32xf32>
    %cst_188 = arith.constant dense<0.000000e+00> : vector<24xf32>
    %387 = vector.multi_reduction <add>, %384, %cst_188 [1] : vector<24x32xf32> to vector<24xf32>
    %388 = vector.shape_cast %387 : vector<24xf32> to vector<24x1xf32>
    %cst_189 = arith.constant 3.200000e+01 : f32
    %389 = vector.broadcast %cst_189 : f32 to vector<24x1xf32>
    %390 = arith.divf %388, %389 : vector<24x1xf32>
    %391 = vector.broadcast %390 : vector<24x1xf32> to vector<24x32xf32>
    %392 = arith.subf %384, %391 : vector<24x32xf32>
    %393 = arith.mulf %392, %392 : vector<24x32xf32>
    %cst_190 = arith.constant dense<0.000000e+00> : vector<24xf32>
    %394 = vector.multi_reduction <add>, %393, %cst_190 [1] : vector<24x32xf32> to vector<24xf32>
    %395 = vector.shape_cast %394 : vector<24xf32> to vector<24x1xf32>
    %cst_191 = arith.constant 3.200000e+01 : f32
    %396 = vector.broadcast %cst_191 : f32 to vector<24x1xf32>
    %397 = arith.divf %395, %396 : vector<24x1xf32>
    %398 = vector.broadcast %390 : vector<24x1xf32> to vector<24x32xf32>
    %399 = arith.subf %384, %398 : vector<24x32xf32>
    %cst_192 = arith.constant 9.99999974E-6 : f32
    %400 = vector.broadcast %cst_192 : f32 to vector<24x1xf32>
    %401 = arith.addf %397, %400 : vector<24x1xf32>
    %402 = math.rsqrt %401 : vector<24x1xf32>
    %403 = vector.broadcast %402 : vector<24x1xf32> to vector<24x32xf32>
    %404 = arith.mulf %399, %403 : vector<24x32xf32>
    %405 = vector.broadcast %385 : vector<1x32xf32> to vector<24x32xf32>
    %406 = arith.mulf %404, %405 : vector<24x32xf32>
    %407 = vector.broadcast %386 : vector<1x32xf32> to vector<24x32xf32>
    %408 = arith.addf %406, %407 : vector<24x32xf32>
    %cst_193 = arith.constant 0.000000e+00 : f32
    %409 = vector.broadcast %cst_193 : f32 to vector<24x32xf32>
    %410 = arith.maximumf %408, %409 : vector<24x32xf32>
    %c0_194 = arith.constant 0 : index
    %c0_195 = arith.constant 0 : index
    %411 = vector.load %arg46[%c0_194, %c0_195] : memref<32x32xf32, #tpu.memory_space<vmem>>, vector<32x32xf32>
    %cst_196 = arith.constant dense<0.000000e+00> : vector<24x32xf32>
    %412 = tpu.matmul %410, %411, %cst_196 {dimension_numbers = #tpu.dot_dimension_numbers<[1], [0], [0], [1], [0, 0, 1, 1], [], []>} : vector<24x32xf32>, vector<32x32xf32>, vector<24x32xf32> -> vector<24x32xf32>
    %c0_197 = arith.constant 0 : index
    %c0_198 = arith.constant 0 : index
    %413 = vector.load %arg47[%c0_197, %c0_198] : memref<1x32xf32, #tpu.memory_space<vmem>>, vector<1x32xf32>
    %414 = vector.broadcast %413 : vector<1x32xf32> to vector<24x32xf32>
    %415 = arith.addf %412, %414 : vector<24x32xf32>
    %cst_199 = arith.constant 0.000000e+00 : f32
    %416 = vector.broadcast %cst_199 : f32 to vector<24x32xf32>
    %417 = arith.maximumf %415, %416 : vector<24x32xf32>
    %c0_200 = arith.constant 0 : index
    %c0_201 = arith.constant 0 : index
    %418 = vector.load %arg48[%c0_200, %c0_201] : memref<32x16xf32, #tpu.memory_space<vmem>>, vector<32x16xf32>
    %cst_202 = arith.constant dense<0.000000e+00> : vector<24x16xf32>
    %419 = tpu.matmul %417, %418, %cst_202 {dimension_numbers = #tpu.dot_dimension_numbers<[1], [0], [0], [1], [0, 0, 1, 1], [], []>} : vector<24x32xf32>, vector<32x16xf32>, vector<24x16xf32> -> vector<24x16xf32>
    %c0_203 = arith.constant 0 : index
    %c0_204 = arith.constant 0 : index
    %420 = vector.load %arg49[%c0_203, %c0_204] : memref<1x16xf32, #tpu.memory_space<vmem>>, vector<1x16xf32>
    %421 = vector.broadcast %420 : vector<1x16xf32> to vector<24x16xf32>
    %422 = arith.addf %419, %421 : vector<24x16xf32>
    %cst_205 = arith.constant 0.000000e+00 : f32
    %423 = vector.broadcast %cst_205 : f32 to vector<24x16xf32>
    %424 = arith.maximumf %422, %423 : vector<24x16xf32>
    %c0_206 = arith.constant 0 : index
    %c0_207 = arith.constant 0 : index
    %425 = vector.load %arg50[%c0_206, %c0_207] : memref<16x8xf32, #tpu.memory_space<vmem>>, vector<16x8xf32>
    %cst_208 = arith.constant dense<0.000000e+00> : vector<24x8xf32>
    %426 = tpu.matmul %424, %425, %cst_208 {dimension_numbers = #tpu.dot_dimension_numbers<[1], [0], [0], [1], [0, 0, 1, 1], [], []>} : vector<24x16xf32>, vector<16x8xf32>, vector<24x8xf32> -> vector<24x8xf32>
    %c0_209 = arith.constant 0 : index
    %c0_210 = arith.constant 0 : index
    %427 = vector.load %arg51[%c0_209, %c0_210] : memref<1x8xf32, #tpu.memory_space<vmem>>, vector<1x8xf32>
    %428 = vector.broadcast %427 : vector<1x8xf32> to vector<24x8xf32>
    %429 = arith.addf %426, %428 : vector<24x8xf32>
    %cst_211 = arith.constant 0.000000e+00 : f32
    %430 = vector.broadcast %cst_211 : f32 to vector<24x8xf32>
    %431 = arith.maximumf %429, %430 : vector<24x8xf32>
    %c0_212 = arith.constant 0 : index
    %c0_213 = arith.constant 0 : index
    %432 = vector.load %arg52[%c0_212, %c0_213] : memref<8x1xf32, #tpu.memory_space<vmem>>, vector<8x1xf32>
    %cst_214 = arith.constant dense<0.000000e+00> : vector<24x1xf32>
    %433 = tpu.matmul %431, %432, %cst_214 {dimension_numbers = #tpu.dot_dimension_numbers<[1], [0], [0], [1], [0, 0, 1, 1], [], []>} : vector<24x8xf32>, vector<8x1xf32>, vector<24x1xf32> -> vector<24x1xf32>
    %c0_215 = arith.constant 0 : index
    %c0_216 = arith.constant 0 : index
    %434 = vector.load %arg53[%c0_215, %c0_216] : memref<1x1xf32, #tpu.memory_space<vmem>>, vector<1x1xf32>
    %435 = vector.broadcast %434 : vector<1x1xf32> to vector<24x1xf32>
    %436 = arith.addf %433, %435 : vector<24x1xf32>
    %c0_217 = arith.constant 0 : index
    %c0_218 = arith.constant 0 : index
    %437 = vector.load %arg54[%c0_217, %c0_218] : memref<24x1xf32, #tpu.memory_space<vmem>>, vector<24x1xf32>
    tpu.vector_store %arg54[%c0_217, %c0_218], %436 {strides = array<i32>} : memref<24x1xf32, #tpu.memory_space<vmem>>, vector<24x1xf32>,
    return
  }
}

</mosaic_0001>

<bundles_post_ra>
// kernel: gnn_forward.1
= control target key start
LH: loop header
LB: loop body
LE: loop exit
PB: predicated region body
PF: predicated region fallthrough
CT: control target
= control target key end

     0   :  { %s7183_s6 = smov 1   ;;  %s7184_s10 = smov 2   ;;  %s8531_s0 = inlined_call_operand.smem [shape: u32[55], index: -1, kind: input, shape index: {}] }
   0x1   :  { %s7296_s5 = sld [smem:[%s8531_s0]]   ;;  %s7185_s14 = smov 3  }
   0x2   :  { %s7301_s9 = sld [smem:[%s8531_s0 + %s7183_s6]]   ;;  %s7186_s18 = smov 4  }
   0x3   :  { %s7306_s13 = sld [smem:[%s8531_s0 + %s7184_s10]]   ;;  %s7187_s22 = smov 5  }
   0x4   :  { %s7311_s17 = sld [smem:[%s8531_s0 + %s7185_s14]]   ;;  %s7188_s26 = smov 6  }
   0x5   :  { %s7316_s21 = sld [smem:[%s8531_s0 + %s7186_s18]]   ;;  %s7189_s30 = smov 7  }
   0x6   :  { %s7321_s25 = sld [smem:[%s8531_s0 + %s7187_s22]]   ;;  %s7190_s4 = smov 8  }
   0x7   :  { %8567 = sst [smem:[#allocation82_spill]] %s7296_s5  ;;  %s7191_s10 = smov 9  }
   0x8   :  { %8568 = sst [smem:[#allocation83_spill]] %s7301_s9  ;;  %s7192_s15 = smov 10  }
   0x9   :  { %s7326_s29 = sld [smem:[%s8531_s0 + %s7188_s26]]   ;;  %s7193_s20 = smov 11  }
   0xa   :  { %8569 = sst [smem:[#allocation84_spill]] %s7311_s17  ;;  %s7194_s26 = smov 12  }
   0xb   :  { %s7331_s3 = sld [smem:[%s8531_s0 + %s7189_s30]]   ;;  %s7195_s1 = smov 13  }
   0xc   :  { %8570 = sst [smem:[#allocation85_spill]] %s7321_s25  ;;  %s7196_s7 = smov 14  }
   0xd   :  { %s7336_s8 = sld [smem:[%s8531_s0 + %s7190_s4]]   ;;  %s7198_s22 = smov 16  }
   0xe   :  { %s7341_s14 = sld [smem:[%s8531_s0 + %s7191_s10]]   ;;  %s7199_s28 = smov 17  }
   0xf   :  { %s7346_s19 = sld [smem:[%s8531_s0 + %s7192_s15]]   ;;  %s7197_s15 = smov 15  }
  0x10   :  { %s7351_s24 = sld [smem:[%s8531_s0 + %s7193_s20]]   ;;  %s7236_s10 = smov 54  }
  0x11   :  { %8571 = sst [smem:[#allocation86_spill]] %s7331_s3 }
  0x12   :  { %s7356_s30 = sld [smem:[%s8531_s0 + %s7194_s26]]  }
  0x13   :  { %8572 = sst [smem:[#allocation87_spill]] %s7336_s8 }
  0x14   :  { %s7361_s6 = sld [smem:[%s8531_s0 + %s7195_s1]]  }
  0x15   :  { %8573 = sst [smem:[#allocation88_spill]] %s7346_s19 }
  0x16   :  { %8574 = sst [smem:[#allocation89_spill]] %s7351_s24 }
  0x17   :  { %s7366_s12 = sld [smem:[%s8531_s0 + %s7196_s7]]   ;;  %s7200_s7 = smov 18  }
  0x18   :  { %s7371_s20 = sld [smem:[%s8531_s0 + %s7197_s15]]   ;;  %s7201_s15 = smov 19  }
  0x19   :  { %s7376_s27 = sld [smem:[%s8531_s0 + %s7198_s22]]   ;;  %s7202_s22 = smov 20  }
  0x1a   :  { %8575 = sst [smem:[#allocation90_spill]] %s7361_s6 }
  0x1b   :  { %s7381_s4 = sld [smem:[%s8531_s0 + %s7199_s28]]   ;;  %s7203_s28 = smov 21  }
  0x1c   :  { %s7391_s19 = sld [smem:[%s8531_s0 + %s7201_s15]]   ;;  %s7205_s15 = smov 23  }
  0x1d   :  { %8576 = sst [smem:[#allocation91_spill]] %s7366_s12 }
  0x1e   :  { %s7386_s12 = sld [smem:[%s8531_s0 + %s7200_s7]]   ;;  %s7204_s7 = smov 22  }
  0x1f   :  { %8577 = sst [smem:[#allocation92_spill]] %s7376_s27 }
  0x20   :  { %s7396_s8 = sld [smem:[%s8531_s0 + %s7202_s22]]   ;;  %s7206_s22 = smov 24  }
  0x21   :  { %s7401_s5 = sld [smem:[%s8531_s0 + %s7203_s28]]   ;;  %s7207_s28 = smov 25  }
  0x22   :  { %8579 = sst [smem:[#allocation94_spill]] %s7391_s19 }
  0x23   :  { %s7411_s19 = sld [smem:[%s8531_s0 + %s7205_s15]]   ;;  %s7209_s15 = smov 27  }
  0x24   :  { %8578 = sst [smem:[#allocation93_spill]] %s7386_s12 }
  0x25   :  { %s7406_s12 = sld [smem:[%s8531_s0 + %s7204_s7]]   ;;  %s7208_s7 = smov 26  }
  0x26   :  { %s7416_s27 = sld [smem:[%s8531_s0 + %s7206_s22]]   ;;  %s7210_s22 = smov 28  }
  0x27   :  { %8580 = sst [smem:[#allocation95_spill]] %s7401_s5 }
  0x28   :  { %s7421_s5 = sld [smem:[%s8531_s0 + %s7207_s28]]   ;;  %s7211_s28 = smov 29  }
  0x29   :  { %8581 = sst [smem:[#allocation96_spill]] %s7411_s19 }
  0x2a   :  { %s7426_s6 = sld [smem:[%s8531_s0 + %s7208_s7]]   ;;  %s7212_s7 = smov 30  }
  0x2b   :  { %s7431_s19 = sld [smem:[%s8531_s0 + %s7209_s15]]   ;;  %s7213_s15 = smov 31  }
  0x2c   :  { %s7436_s24 = sld [smem:[%s8531_s0 + %s7210_s22]]   ;;  %s7214_s22 = smov 32  }
  0x2d   :  { %s7451_s3 = sld [smem:[%s8531_s0 + %s7213_s15]]   ;;  %s7217_s15 = smov 35  }
  0x2e   :  { %8582 = sst [smem:[#allocation97_spill]] %s7421_s5 }
  0x2f   :  { %s7441_s5 = sld [smem:[%s8531_s0 + %s7211_s28]]   ;;  %s7215_s28 = smov 33  }
  0x30   :  { %8583 = sst [smem:[#allocation98_spill]] %s7426_s6 }
  0x31   :  { %s7446_s6 = sld [smem:[%s8531_s0 + %s7212_s7]]   ;;  %s7216_s7 = smov 34  }
  0x32   :  { %8584 = sst [smem:[#allocation99_spill]] %s7436_s24 }
  0x33   :  { %s7456_s24 = sld [smem:[%s8531_s0 + %s7214_s22]]   ;;  %s7218_s22 = smov 36  }
  0x34   :  { %s7461_s25 = sld [smem:[%s8531_s0 + %s7215_s28]]   ;;  %s7219_s28 = smov 37  }
  0x35   :  { %s7471_s17 = sld [smem:[%s8531_s0 + %s7217_s15]]   ;;  %s7221_s15 = smov 39  }
  0x36   :  { %s7481_s9 = sld [smem:[%s8531_s0 + %s7219_s28]]   ;;  %s7223_s28 = smov 41  }
  0x37   :  { %8585 = sst [smem:[#allocation100_spill]] %s7446_s6 }
  0x38   :  { %s7466_s6 = sld [smem:[%s8531_s0 + %s7216_s7]]   ;;  %s7220_s7 = smov 38  }
  0x39   :  { %8586 = sst [smem:[#allocation101_spill]] %s7456_s24 }
  0x3a   :  { %s7476_s24 = sld [smem:[%s8531_s0 + %s7218_s22]]   ;;  %s7222_s22 = smov 40  }
  0x3b   :  { %8588 = sst [smem:[#allocation103_spill]] %s7471_s17 }
  0x3c   :  { %8590 = sst [smem:[#allocation105_spill]] %s7481_s9 }
  0x3d   :  { %s7491_s17 = sld [smem:[%s8531_s0 + %s7221_s15]]   ;;  %s7225_s15 = smov 43  }
  0x3e   :  { %8587 = sst [smem:[#allocation102_spill]] %s7466_s6 }
  0x3f   :  { %s7486_s6 = sld [smem:[%s8531_s0 + %s7220_s7]]   ;;  %s7224_s7 = smov 42  }
  0x40   :  { %8589 = sst [smem:[#allocation104_spill]] %s7476_s24 }
  0x41   :  { %s7496_s24 = sld [smem:[%s8531_s0 + %s7222_s22]]   ;;  %s7226_s22 = smov 44  }
  0x42   :  { %s7501_s9 = sld [smem:[%s8531_s0 + %s7223_s28]]   ;;  %s7227_s28 = smov 45  }
  0x43   :  { %8592 = sst [smem:[#allocation107_spill]] %s7491_s17 }
  0x44   :  { %s7511_s17 = sld [smem:[%s8531_s0 + %s7225_s15]]   ;;  %s7229_s15 = smov 47  }
  0x45   :  { %8591 = sst [smem:[#allocation106_spill]] %s7486_s6 }
  0x46   :  { %s7506_s6 = sld [smem:[%s8531_s0 + %s7224_s7]]   ;;  %s7228_s7 = smov 46  }
  0x47   :  { %8593 = sst [smem:[#allocation108_spill]] %s7496_s24 }
  0x48   :  { %8594 = sst [smem:[#allocation109_spill]] %s7501_s9 }
  0x49   :  { %s7516_s24 = sld [smem:[%s8531_s0 + %s7226_s22]]   ;;  %s7230_s22 = smov 48  }
  0x4a   :  { %8596 = sst [smem:[#allocation111_spill]] %s7511_s17 }
  0x4b   :  { %s7521_s9 = sld [smem:[%s8531_s0 + %s7227_s28]]   ;;  %s7231_s28 = smov 49  }
  0x4c   :  { %8595 = sst [smem:[#allocation110_spill]] %s7506_s6 }
  0x4d   :  { %s7526_s6 = sld [smem:[%s8531_s0 + %s7228_s7]]   ;;  %s7232_s7 = smov 50  }
  0x4e   :  { %s7531_s17 = sld [smem:[%s8531_s0 + %s7229_s15]]   ;;  %s7233_s15 = smov 51  }
  0x4f   :  { %8597 = sst [smem:[#allocation112_spill]] %s7516_s24 }
  0x50   :  { %s7536_s24 = sld [smem:[%s8531_s0 + %s7230_s22]]   ;;  %s7234_s22 = smov 52  }
  0x51   :  { %8598 = sst [smem:[#allocation113_spill]] %s7521_s9 }
  0x52   :  { %s7541_s9 = sld [smem:[%s8531_s0 + %s7231_s28]]   ;;  %s7235_s28 = smov 53  }
  0x53   :  { %8599 = sst [smem:[#allocation114_spill]] %s7526_s6 }
  0x54   :  { %8600 = sst [smem:[#allocation115_spill]] %s7531_s17 }
  0x55   :  { %s7546_s6 = sld [smem:[%s8531_s0 + %s7232_s7]]  }
  0x56   :  { %8601 = sst [smem:[#allocation116_spill]] %s7536_s24 }
  0x57   :  { %s7551_s17 = sld [smem:[%s8531_s0 + %s7233_s15]]  }
  0x58   :  { %8602 = sst [smem:[#allocation117_spill]] %s7541_s9 }
  0x59   :  { %s7556_s24 = sld [smem:[%s8531_s0 + %s7234_s22]]  }
  0x5a   :  { %s4900_s9 = sld [smem:[%s8531_s0 + %s7235_s28]]  }
  0x5b   :  { %8603 = sst [smem:[#allocation118_spill]] %s7546_s6 }
  0x5c   :  { %s7564_s6 = sld [smem:[%s8531_s0 + %s7236_s10]]  }
  0x60   :  { %v114_v0 = vstv %s4900_s9 }
  0x61   :  { %115 = vst [vmem:[#allocation2] sm:$0x1] %v114_v0 }
  0x62   :  { %116 = vsyncpa [#allocation4], 0 }
  0x63   :  { %117 = vsyncpa [#allocation6], 0 }
  0x64   :  { %118 = vsyncpa [#allocation9], 0 }
  0x65   :  { %119 = vsyncpa [#allocation12], 0 }
  0x66   :  { %120 = vsyncpa [#allocation15], 0 }
  0x67   :  { %121 = vsyncpa [#allocation18], 0 }
  0x68   :  { %122 = vsyncpa [#allocation21], 0 }
  0x69   :  { %123 = vsyncpa [#allocation24], 0 }
  0x6a   :  { %124 = vsyncpa [#allocation27], 0 }
  0x6b   :  { %125 = vsyncpa [#allocation30], 0 }
  0x6c   :  { %126 = vsyncpa [#allocation33], 0 }
  0x6d   :  { %127 = vsyncpa [#allocation36], 0 }
  0x6e   :  { %128 = vsyncpa [#allocation39], 0 }
  0x6f   :  { %129 = vsyncpa [#allocation42], 0 }
  0x70   :  { %130 = vsyncpa [#allocation45], 0 }
  0x71   :  { %131 = vsyncpa [#allocation48], 0 }
  0x72   :  { %132 = vsyncpa [#allocation51], 0 }
  0x73   :  { %133 = vsyncpa [#allocation54], 0 }
  0x74   :  { %134 = vsyncpa [#allocation57], 0 }
  0x75   :  { %135 = vsyncpa [#allocation60], 0  ;;  %s7237_s0 = smov [#allocation5]   ;;  %s7238_s15 = smov [#allocation8]  }
  0x76   :  { %s155_s9 = sshll.u32 %s7237_s0, 4  ;;  %s179_s16 = sshll.u32 %s7238_s15, 4  ;;  %s156_s9 = int_to_ptr.vmem [resolvable:$true] %s155_s9  ;;  %s7566_s16 = int_to_ptr.vmem [resolvable:$true] %s179_s16 }
  0x77   :  { %s6285_s18 = scalar_lea.hbm %s7306_s13, 384 }
  0x78   :  { %p6286_p0 = scmp.ne.s32.totalorder %s7306_s13, %s6285_s18  ;;  %p6289_p1 = scmp.lt.u32.totalorder %s6285_s18, %s7306_s13 }
  0x7a   :  { %p6291_p2 = pnand %p6289_p1, %p6286_p0 }
  0x7c   :  { %6294 = shalt.err (!%p6291_p2)
}
  0x7d   :  { %s6295_s22 = scalar_lea.vmem %s156_s9, 384  ;;  %p6300_p4 = scmp.lt.s32.totalorder %s156_s9, %s156_s9 }
  0x7e   :  { %p6296_p3 = scmp.ne.s32.totalorder %s156_s9, %s6295_s22  ;;  %p6301_p5 = scmp.lt.s32.totalorder %s6295_s22, %s6295_s22 }
  0x80   :  { %p6302_p6 = por %p6301_p5, %p6300_p4 }
  0x82   :  { %p6303_p7 = pnand %p6302_p6, %p6296_p3 }
  0x84   :  { %6306 = shalt.err (!%p6303_p7)
}
  0x85   :  { %s7239_s23 = smov 128   ;;  %s7240_s26 = smov 8  }
  0x86   :  { %161 = dma.hbm_to_vmem [thread:$0]  %s7306_s13, 384, %s156_s9, [#allocation6], %s7239_s23, %s7239_s23, %s7240_s26  }
  0x87   :  { %s6307_s28 = scalar_lea.hbm %s7316_s21, 256 }
  0x88   :  { %p6308_p8 = scmp.ne.s32.totalorder %s7316_s21, %s6307_s28  ;;  %p6311_p9 = scmp.lt.u32.totalorder %s6307_s28, %s7316_s21 }
  0x8a   :  { %p6313_p10 = pnand %p6311_p9, %p6308_p8 }
  0x8c   :  { %6316 = shalt.err (!%p6313_p10)
}
  0x8d   :  { %s6317_s1 = scalar_lea.vmem %s7566_s16, 256  ;;  %p6322_p12 = scmp.lt.s32.totalorder %s7566_s16, %s7566_s16 }
  0x8e   :  { %p6318_p11 = scmp.ne.s32.totalorder %s7566_s16, %s6317_s1  ;;  %p6323_p13 = scmp.lt.s32.totalorder %s6317_s1, %s6317_s1 }
  0x90   :  { %p6324_p0 = por %p6323_p13, %p6322_p12 }
  0x92   :  { %p6325_p1 = pnand %p6324_p0, %p6318_p11 }
  0x94   :  { %6328 = shalt.err (!%p6325_p1)
}
  0x95   :  { %185 = dma.hbm_to_vmem [thread:$0]  %s7316_s21, 256, %s7566_s16, [#allocation9], %s7239_s23, %s7239_s23, %s7240_s26  }
  0x96   :  { %s7241_s13 = smov [#allocation11]   ;;  %s7242_s10 = smov [#allocation14]  }
  0x97   :  { %s202_s2 = sshll.u32 %s7241_s13, 4  ;;  %s224_s7 = sshll.u32 %s7242_s10, 4  ;;  %s203_s2 = int_to_ptr.vmem [resolvable:$true] %s202_s2  ;;  %s225_s7 = int_to_ptr.vmem [resolvable:$true] %s224_s7 }
  0x98   :  { %s6329_s11 = scalar_lea.hbm %s7326_s29, 16 }
  0x99   :  { %p6330_p2 = scmp.ne.s32.totalorder %s7326_s29, %s6329_s11  ;;  %p6333_p3 = scmp.lt.u32.totalorder %s6329_s11, %s7326_s29 }
  0x9b   :  { %p6335_p4 = pnand %p6333_p3, %p6330_p2 }
  0x9d   :  { %6338 = shalt.err (!%p6335_p4)
}
  0x9e   :  { %s6339_s0 = scalar_lea.vmem %s203_s2, 16  ;;  %s6343_s9 = scalar_lea.vmem %s203_s2, 32 }
  0x9f   :  { %p6340_p5 = scmp.ne.s32.totalorder %s203_s2, %s6339_s0  ;;  %p6344_p6 = scmp.lt.s32.totalorder %s203_s2, %s203_s2 }
  0xa0   :  { %p6345_p7 = scmp.lt.s32.totalorder %s6343_s9, %s6339_s0 }
  0xa2   :  { %p6346_p8 = por %p6345_p7, %p6344_p6 }
  0xa4   :  { %p6347_p9 = pnand %p6346_p8, %p6340_p5 }
  0xa6   :  { %6350 = shalt.err (!%p6347_p9)
}
  0xa7   :  { %205 = dma.hbm_to_vmem [thread:$0]  %s7326_s29, 16, %s203_s2, [#allocation12]  }
  0xa8   :  { %s6351_s21 = scalar_lea.hbm %s7341_s14, 32 }
  0xa9   :  { %p6352_p10 = scmp.ne.s32.totalorder %s7341_s14, %s6351_s21  ;;  %p6355_p11 = scmp.lt.u32.totalorder %s6351_s21, %s7341_s14 }
  0xab   :  { %p6357_p12 = pnand %p6355_p11, %p6352_p10 }
  0xad   :  { %6360 = shalt.err (!%p6357_p12)
}
  0xae   :  { %s6361_s15 = scalar_lea.vmem %s225_s7, 32  ;;  %p6366_p0 = scmp.lt.s32.totalorder %s225_s7, %s225_s7 }
  0xaf   :  { %p6362_p13 = scmp.ne.s32.totalorder %s225_s7, %s6361_s15  ;;  %p6367_p1 = scmp.lt.s32.totalorder %s6361_s15, %s6361_s15 }
  0xb1   :  { %p6368_p2 = por %p6367_p1, %p6366_p0 }
  0xb3   :  { %p6369_p3 = pnand %p6368_p2, %p6362_p13 }
  0xb5   :  { %6372 = shalt.err (!%p6369_p3)
}
  0xb6   :  { %227 = dma.hbm_to_vmem [thread:$0]  %s7341_s14, 32, %s225_s7, [#allocation15]  }
  0xb7   :  { %s7243_s16 = smov [#allocation17]   ;;  %s7244_s29 = smov [#allocation20]  }
  0xb8   :  { %s246_s18 = sshll.u32 %s7243_s16, 4  ;;  %s268_s22 = sshll.u32 %s7244_s29, 4  ;;  %s247_s18 = int_to_ptr.vmem [resolvable:$true] %s246_s18  ;;  %s269_s22 = int_to_ptr.vmem [resolvable:$true] %s268_s22 }
  0xb9   :  { %s6373_s28 = scalar_lea.hbm %s7356_s30, 16 }
  0xba   :  { %p6374_p4 = scmp.ne.s32.totalorder %s7356_s30, %s6373_s28  ;;  %p6377_p5 = scmp.lt.u32.totalorder %s6373_s28, %s7356_s30 }
  0xbc   :  { %p6379_p6 = pnand %p6377_p5, %p6374_p4 }
  0xbe   :  { %6382 = shalt.err (!%p6379_p6)
}
  0xbf   :  { %s6383_s1 = scalar_lea.vmem %s247_s18, 16  ;;  %s6387_s13 = scalar_lea.vmem %s247_s18, 32 }
  0xc0   :  { %p6384_p7 = scmp.ne.s32.totalorder %s247_s18, %s6383_s1  ;;  %p6388_p8 = scmp.lt.s32.totalorder %s247_s18, %s247_s18 }
  0xc1   :  { %p6389_p9 = scmp.lt.s32.totalorder %s6387_s13, %s6383_s1 }
  0xc3   :  { %p6390_p10 = por %p6389_p9, %p6388_p8 }
  0xc5   :  { %p6391_p11 = pnand %p6390_p10, %p6384_p7 }
  0xc7   :  { %6394 = shalt.err (!%p6391_p11)
}
  0xc8   :  { %249 = dma.hbm_to_vmem [thread:$0]  %s7356_s30, 16, %s247_s18, [#allocation18]  }
  0xc9   :  { %s6395_s14 = scalar_lea.hbm %s7371_s20, 16 }
  0xca   :  { %p6396_p12 = scmp.ne.s32.totalorder %s7371_s20, %s6395_s14  ;;  %p6399_p13 = scmp.lt.u32.totalorder %s6395_s14, %s7371_s20 }
  0xcc   :  { %p6401_p0 = pnand %p6399_p13, %p6396_p12 }
  0xce   :  { %6404 = shalt.err (!%p6401_p0)
}
  0xcf   :  { %s6405_s2 = scalar_lea.vmem %s269_s22, 16  ;;  %s6409_s10 = scalar_lea.vmem %s269_s22, 32 }
  0xd0   :  { %p6406_p1 = scmp.ne.s32.totalorder %s269_s22, %s6405_s2  ;;  %p6410_p2 = scmp.lt.s32.totalorder %s269_s22, %s269_s22 }
  0xd1   :  { %p6411_p3 = scmp.lt.s32.totalorder %s6409_s10, %s6405_s2 }
  0xd3   :  { %p6412_p4 = por %p6411_p3, %p6410_p2 }
  0xd5   :  { %p6413_p5 = pnand %p6412_p4, %p6406_p1 }
  0xd7   :  { %6416 = shalt.err (!%p6413_p5)
}
  0xd8   :  { %271 = dma.hbm_to_vmem [thread:$0]  %s7371_s20, 16, %s269_s22, [#allocation21]  }
  0xd9   :  { %s7245_s7 = smov [#allocation23]   ;;  %s7246_s11 = smov [#allocation26]  }
  0xda   :  { %s288_s30 = sshll.u32 %s7245_s7, 4  ;;  %s310_s0 = sshll.u32 %s7246_s11, 4  ;;  %s289_s30 = int_to_ptr.vmem [resolvable:$true] %s288_s30  ;;  %s311_s0 = int_to_ptr.vmem [resolvable:$true] %s310_s0 }
  0xdb   :  { %s6417_s9 = scalar_lea.hbm %s7381_s4, 16 }
  0xdc   :  { %p6418_p6 = scmp.ne.s32.totalorder %s7381_s4, %s6417_s9  ;;  %p6421_p7 = scmp.lt.u32.totalorder %s6417_s9, %s7381_s4 }
  0xde   :  { %p6423_p8 = pnand %p6421_p7, %p6418_p6 }
  0xe0   :  { %6426 = shalt.err (!%p6423_p8)
}
  0xe1   :  { %s6427_s21 = scalar_lea.vmem %s289_s30, 16  ;;  %s6431_s15 = scalar_lea.vmem %s289_s30, 32 }
  0xe2   :  { %p6428_p9 = scmp.ne.s32.totalorder %s289_s30, %s6427_s21  ;;  %p6432_p10 = scmp.lt.s32.totalorder %s289_s30, %s289_s30 }
  0xe3   :  { %p6433_p11 = scmp.lt.s32.totalorder %s6431_s15, %s6427_s21 }
  0xe5   :  { %p6434_p12 = por %p6433_p11, %p6432_p10 }
  0xe7   :  { %p6435_p13 = pnand %p6434_p12, %p6428_p9 }
  0xe9   :  { %6438 = shalt.err (!%p6435_p13)
}
  0xea   :  { %291 = dma.hbm_to_vmem [thread:$0]  %s7381_s4, 16, %s289_s30, [#allocation24]  }
  0xeb   :  { %s6439_s20 = scalar_lea.hbm %s7396_s8, 16 }
  0xec   :  { %p6440_p0 = scmp.ne.s32.totalorder %s7396_s8, %s6439_s20  ;;  %p6443_p1 = scmp.lt.u32.totalorder %s6439_s20, %s7396_s8 }
  0xee   :  { %p6445_p2 = pnand %p6443_p1, %p6440_p0 }
  0xf0   :  { %6448 = shalt.err (!%p6445_p2)
}
  0xf1   :  { %s6449_s16 = scalar_lea.vmem %s311_s0, 16  ;;  %s6453_s18 = scalar_lea.vmem %s311_s0, 32 }
  0xf2   :  { %p6450_p3 = scmp.ne.s32.totalorder %s311_s0, %s6449_s16  ;;  %p6454_p4 = scmp.lt.s32.totalorder %s311_s0, %s311_s0 }
  0xf3   :  { %p6455_p5 = scmp.lt.s32.totalorder %s6453_s18, %s6449_s16 }
  0xf5   :  { %p6456_p6 = por %p6455_p5, %p6454_p4 }
  0xf7   :  { %p6457_p7 = pnand %p6456_p6, %p6450_p3 }
  0xf9   :  { %6460 = shalt.err (!%p6457_p7)
}
  0xfa   :  { %313 = dma.hbm_to_vmem [thread:$0]  %s7396_s8, 16, %s311_s0, [#allocation27]  }
  0xfb   :  { %s7247_s29 = smov [#allocation29]   ;;  %s7248_s22 = smov [#allocation32]  }
  0xfc   :  { %s329_s4 = sshll.u32 %s7247_s29, 4  ;;  %s352_s28 = sshll.u32 %s7248_s22, 4  ;;  %s330_s4 = int_to_ptr.vmem [resolvable:$true] %s329_s4  ;;  %s353_s28 = int_to_ptr.vmem [resolvable:$true] %s352_s28 }
  0xfd   :  { %s6461_s1 = scalar_lea.hbm %s7406_s12, 1024 }
  0xfe   :  { %p6462_p8 = scmp.ne.s32.totalorder %s7406_s12, %s6461_s1  ;;  %p6465_p9 = scmp.lt.u32.totalorder %s6461_s1, %s7406_s12 }
 0x100   :  { %p6467_p10 = pnand %p6465_p9, %p6462_p8 }
 0x102   :  { %6470 = shalt.err (!%p6467_p10)
}
 0x103   :  { %s6471_s13 = scalar_lea.vmem %s330_s4, 1024  ;;  %p6476_p12 = scmp.lt.s32.totalorder %s330_s4, %s330_s4 }
 0x104   :  { %p6472_p11 = scmp.ne.s32.totalorder %s330_s4, %s6471_s13  ;;  %p6477_p13 = scmp.lt.s32.totalorder %s6471_s13, %s6471_s13 }
 0x106   :  { %p6478_p0 = por %p6477_p13, %p6476_p12 }
 0x108   :  { %p6479_p1 = pnand %p6478_p0, %p6472_p11 }
 0x10a   :  { %6482 = shalt.err (!%p6479_p1)
}
 0x10b   :  { %335 = dma.hbm_to_vmem [thread:$0]  %s7406_s12, 1024, %s330_s4, [#allocation30], %s7239_s23, %s7239_s23, %s7240_s26  }
 0x10c   :  { %s6483_s8 = scalar_lea.hbm %s7416_s27, 16 }
 0x10d   :  { %p6484_p2 = scmp.ne.s32.totalorder %s7416_s27, %s6483_s8  ;;  %p6487_p3 = scmp.lt.u32.totalorder %s6483_s8, %s7416_s27 }
 0x10f   :  { %p6489_p4 = pnand %p6487_p3, %p6484_p2 }
 0x111   :  { %6492 = shalt.err (!%p6489_p4)
}
 0x112   :  { %s6493_s14 = scalar_lea.vmem %s353_s28, 16  ;;  %s6497_s2 = scalar_lea.vmem %s353_s28, 32 }
 0x113   :  { %p6494_p5 = scmp.ne.s32.totalorder %s353_s28, %s6493_s14  ;;  %p6498_p6 = scmp.lt.s32.totalorder %s353_s28, %s353_s28 }
 0x114   :  { %p6499_p7 = scmp.lt.s32.totalorder %s6497_s2, %s6493_s14 }
 0x116   :  { %p6500_p8 = por %p6499_p7, %p6498_p6 }
 0x118   :  { %p6501_p9 = pnand %p6500_p8, %p6494_p5 }
 0x11a   :  { %6504 = shalt.err (!%p6501_p9)
}
 0x11b   :  { %355 = dma.hbm_to_vmem [thread:$0]  %s7416_s27, 16, %s353_s28, [#allocation33]  }
 0x11c   :  { %s7249_s10 = smov [#allocation35]   ;;  %s7250_s7 = smov [#allocation38]  }
 0x11d   :  { %s374_s12 = sshll.u32 %s7249_s10, 4  ;;  %s394_s30 = sshll.u32 %s7250_s7, 4  ;;  %s375_s12 = int_to_ptr.vmem [resolvable:$true] %s374_s12  ;;  %s395_s30 = int_to_ptr.vmem [resolvable:$true] %s394_s30 }
 0x11e   :  { %s6505_s11 = scalar_lea.hbm %s7431_s19, 16 }
 0x11f   :  { %p6506_p10 = scmp.ne.s32.totalorder %s7431_s19, %s6505_s11  ;;  %p6509_p11 = scmp.lt.u32.totalorder %s6505_s11, %s7431_s19 }
 0x121   :  { %p6511_p12 = pnand %p6509_p11, %p6506_p10 }
 0x123   :  { %6514 = shalt.err (!%p6511_p12)
}
 0x124   :  { %s6515_s0 = scalar_lea.vmem %s375_s12, 16  ;;  %s6519_s9 = scalar_lea.vmem %s375_s12, 32 }
 0x125   :  { %p6516_p13 = scmp.ne.s32.totalorder %s375_s12, %s6515_s0  ;;  %p6520_p0 = scmp.lt.s32.totalorder %s375_s12, %s375_s12 }
 0x126   :  { %p6521_p1 = scmp.lt.s32.totalorder %s6519_s9, %s6515_s0 }
 0x128   :  { %p6522_p2 = por %p6521_p1, %p6520_p0 }
 0x12a   :  { %p6523_p3 = pnand %p6522_p2, %p6516_p13 }
 0x12c   :  { %6526 = shalt.err (!%p6523_p3)
}
 0x12d   :  { %377 = dma.hbm_to_vmem [thread:$0]  %s7431_s19, 16, %s375_s12, [#allocation36]  }
 0x12e   :  { %s6527_s27 = scalar_lea.hbm %s7441_s5, 16 }
 0x12f   :  { %p6528_p4 = scmp.ne.s32.totalorder %s7441_s5, %s6527_s27  ;;  %p6531_p5 = scmp.lt.u32.totalorder %s6527_s27, %s7441_s5 }
 0x131   :  { %p6533_p6 = pnand %p6531_p5, %p6528_p4 }
 0x133   :  { %6536 = shalt.err (!%p6533_p6)
}
 0x134   :  { %s6537_s21 = scalar_lea.vmem %s395_s30, 16  ;;  %s6541_s15 = scalar_lea.vmem %s395_s30, 32 }
 0x135   :  { %p6538_p7 = scmp.ne.s32.totalorder %s395_s30, %s6537_s21  ;;  %p6542_p8 = scmp.lt.s32.totalorder %s395_s30, %s395_s30 }
 0x136   :  { %p6543_p9 = scmp.lt.s32.totalorder %s6541_s15, %s6537_s21 }
 0x138   :  { %p6544_p10 = por %p6543_p9, %p6542_p8 }
 0x13a   :  { %p6545_p11 = pnand %p6544_p10, %p6538_p7 }
 0x13c   :  { %6548 = shalt.err (!%p6545_p11)
}
 0x13d   :  { %397 = dma.hbm_to_vmem [thread:$0]  %s7441_s5, 16, %s395_s30, [#allocation39]  }
 0x13e   :  { %s7251_s20 = smov [#allocation41]   ;;  %s7252_s16 = smov [#allocation44]  }
 0x13f   :  { %s416_s19 = sshll.u32 %s7251_s20, 4  ;;  %s436_s18 = sshll.u32 %s7252_s16, 4  ;;  %s417_s19 = int_to_ptr.vmem [resolvable:$true] %s416_s19  ;;  %s437_s18 = int_to_ptr.vmem [resolvable:$true] %s436_s18 }
 0x140   :  { %s6549_s29 = scalar_lea.hbm %s7451_s3, 16 }
 0x141   :  { %p6550_p12 = scmp.ne.s32.totalorder %s7451_s3, %s6549_s29  ;;  %p6553_p13 = scmp.lt.u32.totalorder %s6549_s29, %s7451_s3 }
 0x143   :  { %p6555_p0 = pnand %p6553_p13, %p6550_p12 }
 0x145   :  { %6558 = shalt.err (!%p6555_p0)
}
 0x146   :  { %s6559_s4 = scalar_lea.vmem %s417_s19, 16  ;;  %s6563_s22 = scalar_lea.vmem %s417_s19, 32 }
 0x147   :  { %p6560_p1 = scmp.ne.s32.totalorder %s417_s19, %s6559_s4  ;;  %p6564_p2 = scmp.lt.s32.totalorder %s417_s19, %s417_s19 }
 0x148   :  { %p6565_p3 = scmp.lt.s32.totalorder %s6563_s22, %s6559_s4 }
 0x14a   :  { %p6566_p4 = por %p6565_p3, %p6564_p2 }
 0x14c   :  { %p6567_p5 = pnand %p6566_p4, %p6560_p1 }
 0x14e   :  { %6570 = shalt.err (!%p6567_p5)
}
 0x14f   :  { %419 = dma.hbm_to_vmem [thread:$0]  %s7451_s3, 16, %s417_s19, [#allocation42]  }
 0x150   :  { %s6571_s5 = scalar_lea.hbm %s7461_s25, 16 }
 0x151   :  { %p6572_p6 = scmp.ne.s32.totalorder %s7461_s25, %s6571_s5  ;;  %p6575_p7 = scmp.lt.u32.totalorder %s6571_s5, %s7461_s25 }
 0x153   :  { %p6577_p8 = pnand %p6575_p7, %p6572_p6 }
 0x155   :  { %6580 = shalt.err (!%p6577_p8)
}
 0x156   :  { %s6581_s28 = scalar_lea.vmem %s437_s18, 16  ;;  %s6585_s1 = scalar_lea.vmem %s437_s18, 32 }
 0x157   :  { %p6582_p9 = scmp.ne.s32.totalorder %s437_s18, %s6581_s28  ;;  %p6586_p10 = scmp.lt.s32.totalorder %s437_s18, %s437_s18 }
 0x158   :  { %p6587_p11 = scmp.lt.s32.totalorder %s6585_s1, %s6581_s28 }
 0x15a   :  { %p6588_p12 = por %p6587_p11, %p6586_p10 }
 0x15c   :  { %p6589_p13 = pnand %p6588_p12, %p6582_p9 }
 0x15e   :  { %6592 = shalt.err (!%p6589_p13)
}
 0x15f   :  { %s8604_s13 = sld [smem:[#allocation104_spill]]  ;;  %s7253_s8 = smov [#allocation47]  }
 0x160   :  { %439 = dma.hbm_to_vmem [thread:$0]  %s7461_s25, 16, %s437_s18, [#allocation45]  }
 0x161   :  { %s460_s3 = sshll.u32 %s7253_s8, 4  ;;  %s7254_s14 = smov [#allocation50]   ;;  %s461_s3 = int_to_ptr.vmem [resolvable:$true] %s460_s3 }
 0x162   :  { %s479_s2 = sshll.u32 %s7254_s14, 4  ;;  %s7638_s2 = int_to_ptr.vmem [resolvable:$true] %s479_s2 }
 0x165   :  { %s6593_s10 = scalar_lea.hbm %s8604_s13, 16 }
 0x166   :  { %p6594_p0 = scmp.ne.s32.totalorder %s8604_s13, %s6593_s10  ;;  %p6597_p1 = scmp.lt.u32.totalorder %s6593_s10, %s8604_s13 }
 0x168   :  { %p6599_p2 = pnand %p6597_p1, %p6594_p0 }
 0x16a   :  { %6602 = shalt.err (!%p6599_p2)
}
 0x16b   :  { %s6603_s12 = scalar_lea.vmem %s461_s3, 16  ;;  %s6607_s7 = scalar_lea.vmem %s461_s3, 32 }
 0x16c   :  { %p6604_p3 = scmp.ne.s32.totalorder %s461_s3, %s6603_s12  ;;  %p6608_p4 = scmp.lt.s32.totalorder %s461_s3, %s461_s3 }
 0x16d   :  { %p6609_p5 = scmp.lt.s32.totalorder %s6607_s7, %s6603_s12 }
 0x16f   :  { %p6610_p6 = por %p6609_p5, %p6608_p4 }
 0x171   :  { %p6611_p7 = pnand %p6610_p6, %p6604_p3 }
 0x173   :  { %6614 = shalt.err (!%p6611_p7)
}
 0x174   :  { %s8605_s25 = sld [smem:[#allocation106_spill]] }
 0x175   :  { %463 = dma.hbm_to_vmem [thread:$0]  %s8604_s13, 16, %s461_s3, [#allocation48]  }
 0x17a   :  { %s6615_s30 = scalar_lea.hbm %s8605_s25, 1024 }
 0x17b   :  { %p6616_p8 = scmp.ne.s32.totalorder %s8605_s25, %s6615_s30  ;;  %p6619_p9 = scmp.lt.u32.totalorder %s6615_s30, %s8605_s25 }
 0x17d   :  { %p6621_p10 = pnand %p6619_p9, %p6616_p8 }
 0x17f   :  { %6624 = shalt.err (!%p6621_p10)
}
 0x180   :  { %s6625_s11 = scalar_lea.vmem %s7638_s2, 1024  ;;  %p6630_p12 = scmp.lt.s32.totalorder %s7638_s2, %s7638_s2 }
 0x181   :  { %p6626_p11 = scmp.ne.s32.totalorder %s7638_s2, %s6625_s11  ;;  %p6631_p13 = scmp.lt.s32.totalorder %s6625_s11, %s6625_s11 }
 0x183   :  { %p6632_p0 = por %p6631_p13, %p6630_p12 }
 0x185   :  { %p6633_p1 = pnand %p6632_p0, %p6626_p11 }
 0x187   :  { %6636 = shalt.err (!%p6633_p1)
}
 0x188   :  { %s8606_s0 = sld [smem:[#allocation108_spill]]  ;;  %s7255_s9 = smov [#allocation53]  }
 0x189   :  { %485 = dma.hbm_to_vmem [thread:$0]  %s8605_s25, 1024, %s7638_s2, [#allocation51], %s7239_s23, %s7239_s23, %s7240_s26  }
 0x18a   :  { %s502_s27 = sshll.u32 %s7255_s9, 4  ;;  %s7256_s21 = smov [#allocation56]   ;;  %s503_s27 = int_to_ptr.vmem [resolvable:$true] %s502_s27 }
 0x18b   :  { %s524_s15 = sshll.u32 %s7256_s21, 4  ;;  %s525_s15 = int_to_ptr.vmem [resolvable:$true] %s524_s15 }
 0x18e   :  { %s6637_s20 = scalar_lea.hbm %s8606_s0, 16 }
 0x18f   :  { %p6638_p2 = scmp.ne.s32.totalorder %s8606_s0, %s6637_s20  ;;  %p6641_p3 = scmp.lt.u32.totalorder %s6637_s20, %s8606_s0 }
 0x191   :  { %p6643_p4 = pnand %p6641_p3, %p6638_p2 }
 0x193   :  { %6646 = shalt.err (!%p6643_p4)
}
 0x194   :  { %s6647_s19 = scalar_lea.vmem %s503_s27, 16  ;;  %s6651_s16 = scalar_lea.vmem %s503_s27, 32 }
 0x195   :  { %p6648_p5 = scmp.ne.s32.totalorder %s503_s27, %s6647_s19  ;;  %p6652_p6 = scmp.lt.s32.totalorder %s503_s27, %s503_s27 }
 0x196   :  { %p6653_p7 = scmp.lt.s32.totalorder %s6651_s16, %s6647_s19 }
 0x198   :  { %p6654_p8 = por %p6653_p7, %p6652_p6 }
 0x19a   :  { %p6655_p9 = pnand %p6654_p8, %p6648_p5 }
 0x19c   :  { %6658 = shalt.err (!%p6655_p9)
}
 0x19d   :  { %s8607_s18 = sld [smem:[#allocation111_spill]] }
 0x19e   :  { %505 = dma.hbm_to_vmem [thread:$0]  %s8606_s0, 16, %s503_s27, [#allocation54]  }
 0x1a3   :  { %s6659_s29 = scalar_lea.hbm %s8607_s18, 16 }
 0x1a4   :  { %p6660_p10 = scmp.ne.s32.totalorder %s8607_s18, %s6659_s29  ;;  %p6663_p11 = scmp.lt.u32.totalorder %s6659_s29, %s8607_s18 }
 0x1a6   :  { %p6665_p12 = pnand %p6663_p11, %p6660_p10 }
 0x1a8   :  { %6668 = shalt.err (!%p6665_p12)
}
 0x1a9   :  { %s6669_s4 = scalar_lea.vmem %s525_s15, 16  ;;  %s6673_s22 = scalar_lea.vmem %s525_s15, 32 }
 0x1aa   :  { %p6670_p13 = scmp.ne.s32.totalorder %s525_s15, %s6669_s4  ;;  %p6674_p0 = scmp.lt.s32.totalorder %s525_s15, %s525_s15 }
 0x1ab   :  { %p6675_p1 = scmp.lt.s32.totalorder %s6673_s22, %s6669_s4 }
 0x1ad   :  { %p6676_p2 = por %p6675_p1, %p6674_p0 }
 0x1af   :  { %p6677_p3 = pnand %p6676_p2, %p6670_p13 }
 0x1b1   :  { %6680 = shalt.err (!%p6677_p3)
}
 0x1b2   :  { %s8608_s5 = sld [smem:[#allocation113_spill]]  ;;  %s7257_s28 = smov [#allocation59]  }
 0x1b3   :  { %527 = dma.hbm_to_vmem [thread:$0]  %s8607_s18, 16, %s525_s15, [#allocation57]  }
 0x1b4   :  { %s544_s1 = sshll.u32 %s7257_s28, 4  ;;  %s7258_s13 = smov [#allocation3]   ;;  %s545_s1 = int_to_ptr.vmem [resolvable:$true] %s544_s1 }
 0x1b5   :  { %s143_s8 = sshll.u32 %s7258_s13, 4  ;;  %s7664_s8 = int_to_ptr.vmem [resolvable:$true] %s143_s8 }
 0x1b8   :  { %s6681_s3 = scalar_lea.hbm %s8608_s5, 16 }
 0x1b9   :  { %p6682_p4 = scmp.ne.s32.totalorder %s8608_s5, %s6681_s3  ;;  %p6685_p5 = scmp.lt.u32.totalorder %s6681_s3, %s8608_s5 }
 0x1bb   :  { %p6687_p6 = pnand %p6685_p5, %p6682_p4 }
 0x1bd   :  { %6690 = shalt.err (!%p6687_p6)
}
 0x1be   :  { %s6691_s14 = scalar_lea.vmem %s545_s1, 16  ;;  %s6695_s2 = scalar_lea.vmem %s545_s1, 32 }
 0x1bf   :  { %p6692_p7 = scmp.ne.s32.totalorder %s545_s1, %s6691_s14  ;;  %p6696_p8 = scmp.lt.s32.totalorder %s545_s1, %s545_s1 }
 0x1c0   :  { %p6697_p9 = scmp.lt.s32.totalorder %s6695_s2, %s6691_s14 }
 0x1c2   :  { %p6698_p10 = por %p6697_p9, %p6696_p8 }
 0x1c4   :  { %p6699_p11 = pnand %p6698_p10, %p6692_p7 }
 0x1c6   :  { %6702 = shalt.err (!%p6699_p11)
}
 0x1c7   :  { %s8609_s10 = sld [smem:[#allocation83_spill]] }
 0x1c8   :  { %547 = dma.hbm_to_vmem [thread:$0]  %s8608_s5, 16, %s545_s1, [#allocation60]  }
 0x1cd   :  { %s6703_s12 = scalar_lea.hbm %s8609_s10, 384 }
 0x1ce   :  { %p6704_p12 = scmp.ne.s32.totalorder %s8609_s10, %s6703_s12  ;;  %p6707_p13 = scmp.lt.u32.totalorder %s6703_s12, %s8609_s10 }
 0x1d0   :  { %p6709_p0 = pnand %p6707_p13, %p6704_p12 }
 0x1d2   :  { %6712 = shalt.err (!%p6709_p0)
}
 0x1d3   :  { %s6713_s7 = scalar_lea.vmem %s7664_s8, 384  ;;  %p6718_p2 = scmp.lt.s32.totalorder %s7664_s8, %s7664_s8 }
 0x1d4   :  { %p6714_p1 = scmp.ne.s32.totalorder %s7664_s8, %s6713_s7  ;;  %p6719_p3 = scmp.lt.s32.totalorder %s6713_s7, %s6713_s7 }
 0x1d6   :  { %p6720_p4 = por %p6719_p3, %p6718_p2 }
 0x1d8   :  { %p6721_p5 = pnand %p6720_p4, %p6714_p1 }
 0x1da   :  { %6724 = shalt.err (!%p6721_p5)
}
 0x1db   :  { %s8610_s25 = sld [smem:[#allocation84_spill]]  ;;  %s7259_s30 = smov [#allocation7]  }
 0x1dc   :  { %149 = dma.hbm_to_vmem [thread:$0]  %s8609_s10, 384, %s7664_s8, [#allocation4], %s7239_s23, %s7239_s23, %s7240_s26  }
 0x1dd   :  { %s167_s11 = sshll.u32 %s7259_s30, 4  ;;  %s7260_s0 = smov [#allocation10]   ;;  %s168_s11 = int_to_ptr.vmem [resolvable:$true] %s167_s11 }
 0x1de   :  { %s192_s9 = sshll.u32 %s7260_s0, 4  ;;  %s193_s9 = int_to_ptr.vmem [resolvable:$true] %s192_s9 }
 0x1e1   :  { %s6725_s27 = scalar_lea.hbm %s8610_s25, 384 }
 0x1e2   :  { %p6726_p6 = scmp.ne.s32.totalorder %s8610_s25, %s6725_s27  ;;  %p6729_p7 = scmp.lt.u32.totalorder %s6725_s27, %s8610_s25 }
 0x1e4   :  { %p6731_p8 = pnand %p6729_p7, %p6726_p6 }
 0x1e6   :  { %6734 = shalt.err (!%p6731_p8)
}
 0x1e7   :  { %s6735_s21 = scalar_lea.vmem %s168_s11, 384  ;;  %p6740_p10 = scmp.lt.s32.totalorder %s168_s11, %s168_s11 }
 0x1e8   :  { %p6736_p9 = scmp.ne.s32.totalorder %s168_s11, %s6735_s21  ;;  %p6741_p11 = scmp.lt.s32.totalorder %s6735_s21, %s6735_s21 }
 0x1ea   :  { %p6742_p12 = por %p6741_p11, %p6740_p10 }
 0x1ec   :  { %p6743_p13 = pnand %p6742_p12, %p6736_p9 }
 0x1ee   :  { %6746 = shalt.err (!%p6743_p13)
}
 0x1ef   :  { %s8611_s15 = sld [smem:[#allocation85_spill]] }
 0x1f0   :  { %173 = dma.hbm_to_vmem [thread:$0]  %s8610_s25, 384, %s168_s11, [#allocation6], %s7239_s23, %s7239_s23, %s7240_s26  }
 0x1f5   :  { %s6747_s20 = scalar_lea.hbm %s8611_s15, 16 }
 0x1f6   :  { %p6748_p0 = scmp.ne.s32.totalorder %s8611_s15, %s6747_s20  ;;  %p6751_p1 = scmp.lt.u32.totalorder %s6747_s20, %s8611_s15 }
 0x1f8   :  { %p6753_p2 = pnand %p6751_p1, %p6748_p0 }
 0x1fa   :  { %6756 = shalt.err (!%p6753_p2)
}
 0x1fb   :  { %s6757_s19 = scalar_lea.vmem %s193_s9, 16  ;;  %s6761_s16 = scalar_lea.vmem %s193_s9, 32 }
 0x1fc   :  { %p6758_p3 = scmp.ne.s32.totalorder %s193_s9, %s6757_s19  ;;  %p6762_p4 = scmp.lt.s32.totalorder %s193_s9, %s193_s9 }
 0x1fd   :  { %p6763_p5 = scmp.lt.s32.totalorder %s6761_s16, %s6757_s19 }
 0x1ff   :  { %p6764_p6 = por %p6763_p5, %p6762_p4 }
 0x201   :  { %p6765_p7 = pnand %p6764_p6, %p6758_p3 }
 0x203   :  { %6768 = shalt.err (!%p6765_p7)
}
 0x204   :  { %s8612_s18 = sld [smem:[#allocation86_spill]]  ;;  %s7261_s29 = smov [#allocation13]  }
 0x205   :  { %195 = dma.hbm_to_vmem [thread:$0]  %s8611_s15, 16, %s193_s9, [#allocation9]  }
 0x206   :  { %s212_s4 = sshll.u32 %s7261_s29, 4  ;;  %s7262_s22 = smov [#allocation16]   ;;  %s213_s4 = int_to_ptr.vmem [resolvable:$true] %s212_s4 }
 0x207   :  { %s236_s5 = sshll.u32 %s7262_s22, 4  ;;  %s237_s5 = int_to_ptr.vmem [resolvable:$true] %s236_s5 }
 0x20a   :  { %s6769_s28 = scalar_lea.hbm %s8612_s18, 16 }
 0x20b   :  { %p6770_p8 = scmp.ne.s32.totalorder %s8612_s18, %s6769_s28  ;;  %p6773_p9 = scmp.lt.u32.totalorder %s6769_s28, %s8612_s18 }
 0x20d   :  { %p6775_p10 = pnand %p6773_p9, %p6770_p8 }
 0x20f   :  { %6778 = shalt.err (!%p6775_p10)
}
 0x210   :  { %s6779_s1 = scalar_lea.vmem %s213_s4, 16  ;;  %s6783_s13 = scalar_lea.vmem %s213_s4, 32 }
 0x211   :  { %p6780_p11 = scmp.ne.s32.totalorder %s213_s4, %s6779_s1  ;;  %p6784_p12 = scmp.lt.s32.totalorder %s213_s4, %s213_s4 }
 0x212   :  { %p6785_p13 = scmp.lt.s32.totalorder %s6783_s13, %s6779_s1 }
 0x214   :  { %p6786_p0 = por %p6785_p13, %p6784_p12 }
 0x216   :  { %p6787_p1 = pnand %p6786_p0, %p6780_p11 }
 0x218   :  { %6790 = shalt.err (!%p6787_p1)
}
 0x219   :  { %s8613_s8 = sld [smem:[#allocation89_spill]] }
 0x21a   :  { %215 = dma.hbm_to_vmem [thread:$0]  %s8612_s18, 16, %s213_s4, [#allocation12]  }
 0x21f   :  { %s6791_s3 = scalar_lea.hbm %s8613_s8, 16 }
 0x220   :  { %p6792_p2 = scmp.ne.s32.totalorder %s8613_s8, %s6791_s3  ;;  %p6795_p3 = scmp.lt.u32.totalorder %s6791_s3, %s8613_s8 }
 0x222   :  { %p6797_p4 = pnand %p6795_p3, %p6792_p2 }
 0x224   :  { %6800 = shalt.err (!%p6797_p4)
}
 0x225   :  { %s6801_s14 = scalar_lea.vmem %s237_s5, 16  ;;  %s6805_s2 = scalar_lea.vmem %s237_s5, 32 }
 0x226   :  { %p6802_p5 = scmp.ne.s32.totalorder %s237_s5, %s6801_s14  ;;  %p6806_p6 = scmp.lt.s32.totalorder %s237_s5, %s237_s5 }
 0x227   :  { %p6807_p7 = scmp.lt.s32.totalorder %s6805_s2, %s6801_s14 }
 0x229   :  { %p6808_p8 = por %p6807_p7, %p6806_p6 }
 0x22b   :  { %p6809_p9 = pnand %p6808_p8, %p6802_p5 }
 0x22d   :  { %6812 = shalt.err (!%p6809_p9)
}
 0x22e   :  { %s8614_s10 = sld [smem:[#allocation90_spill]]  ;;  %s7263_s12 = smov [#allocation19]  }
 0x22f   :  { %239 = dma.hbm_to_vmem [thread:$0]  %s8613_s8, 16, %s237_s5, [#allocation15]  }
 0x230   :  { %s256_s7 = sshll.u32 %s7263_s12, 4  ;;  %s7264_s25 = smov [#allocation22]   ;;  %s257_s7 = int_to_ptr.vmem [resolvable:$true] %s256_s7 }
 0x231   :  { %s278_s30 = sshll.u32 %s7264_s25, 4  ;;  %s279_s30 = int_to_ptr.vmem [resolvable:$true] %s278_s30 }
 0x234   :  { %s6813_s11 = scalar_lea.hbm %s8614_s10, 16 }
 0x235   :  { %p6814_p10 = scmp.ne.s32.totalorder %s8614_s10, %s6813_s11  ;;  %p6817_p11 = scmp.lt.u32.totalorder %s6813_s11, %s8614_s10 }
 0x237   :  { %p6819_p12 = pnand %p6817_p11, %p6814_p10 }
 0x239   :  { %6822 = shalt.err (!%p6819_p12)
}
 0x23a   :  { %s6823_s0 = scalar_lea.vmem %s257_s7, 16  ;;  %s6827_s9 = scalar_lea.vmem %s257_s7, 32 }
 0x23b   :  { %p6824_p13 = scmp.ne.s32.totalorder %s257_s7, %s6823_s0  ;;  %p6828_p0 = scmp.lt.s32.totalorder %s257_s7, %s257_s7 }
 0x23c   :  { %p6829_p1 = scmp.lt.s32.totalorder %s6827_s9, %s6823_s0 }
 0x23e   :  { %p6830_p2 = por %p6829_p1, %p6828_p0 }
 0x240   :  { %p6831_p3 = pnand %p6830_p2, %p6824_p13 }
 0x242   :  { %6834 = shalt.err (!%p6831_p3)
}
 0x243   :  { %s8615_s27 = sld [smem:[#allocation92_spill]] }
 0x244   :  { %259 = dma.hbm_to_vmem [thread:$0]  %s8614_s10, 16, %s257_s7, [#allocation18]  }
 0x249   :  { %s6835_s21 = scalar_lea.hbm %s8615_s27, 16 }
 0x24a   :  { %p6836_p4 = scmp.ne.s32.totalorder %s8615_s27, %s6835_s21  ;;  %p6839_p5 = scmp.lt.u32.totalorder %s6835_s21, %s8615_s27 }
 0x24c   :  { %p6841_p6 = pnand %p6839_p5, %p6836_p4 }
 0x24e   :  { %6844 = shalt.err (!%p6841_p6)
}
 0x24f   :  { %s6845_s15 = scalar_lea.vmem %s279_s30, 16  ;;  %s6849_s20 = scalar_lea.vmem %s279_s30, 32 }
 0x250   :  { %p6846_p7 = scmp.ne.s32.totalorder %s279_s30, %s6845_s15  ;;  %p6850_p8 = scmp.lt.s32.totalorder %s279_s30, %s279_s30 }
 0x251   :  { %p6851_p9 = scmp.lt.s32.totalorder %s6849_s20, %s6845_s15 }
 0x253   :  { %p6852_p10 = por %p6851_p9, %p6850_p8 }
 0x255   :  { %p6853_p11 = pnand %p6852_p10, %p6846_p7 }
 0x257   :  { %6856 = shalt.err (!%p6853_p11)
}
 0x258   :  { %s8616_s19 = sld [smem:[#allocation94_spill]]  ;;  %s7265_s16 = smov [#allocation25]  }
 0x259   :  { %281 = dma.hbm_to_vmem [thread:$0]  %s8615_s27, 16, %s279_s30, [#allocation21]  }
 0x25a   :  { %s300_s18 = sshll.u32 %s7265_s16, 4  ;;  %s7266_s29 = smov [#allocation28]   ;;  %s301_s18 = int_to_ptr.vmem [resolvable:$true] %s300_s18 }
 0x25b   :  { %s320_s4 = sshll.u32 %s7266_s29, 4  ;;  %s321_s4 = int_to_ptr.vmem [resolvable:$true] %s320_s4 }
 0x25e   :  { %s6857_s22 = scalar_lea.hbm %s8616_s19, 16 }
 0x25f   :  { %p6858_p12 = scmp.ne.s32.totalorder %s8616_s19, %s6857_s22  ;;  %p6861_p13 = scmp.lt.u32.totalorder %s6857_s22, %s8616_s19 }
 0x261   :  { %p6863_p0 = pnand %p6861_p13, %p6858_p12 }
 0x263   :  { %6866 = shalt.err (!%p6863_p0)
}
 0x264   :  { %s6867_s5 = scalar_lea.vmem %s301_s18, 16  ;;  %s6871_s28 = scalar_lea.vmem %s301_s18, 32 }
 0x265   :  { %p6868_p1 = scmp.ne.s32.totalorder %s301_s18, %s6867_s5  ;;  %p6872_p2 = scmp.lt.s32.totalorder %s301_s18, %s301_s18 }
 0x266   :  { %p6873_p3 = scmp.lt.s32.totalorder %s6871_s28, %s6867_s5 }
 0x268   :  { %p6874_p4 = por %p6873_p3, %p6872_p2 }
 0x26a   :  { %p6875_p5 = pnand %p6874_p4, %p6868_p1 }
 0x26c   :  { %6878 = shalt.err (!%p6875_p5)
}
 0x26d   :  { %s8617_s1 = sld [smem:[#allocation95_spill]] }
 0x26e   :  { %303 = dma.hbm_to_vmem [thread:$0]  %s8616_s19, 16, %s301_s18, [#allocation24]  }
 0x273   :  { %s6879_s13 = scalar_lea.hbm %s8617_s1, 16 }
 0x274   :  { %p6880_p6 = scmp.ne.s32.totalorder %s8617_s1, %s6879_s13  ;;  %p6883_p7 = scmp.lt.u32.totalorder %s6879_s13, %s8617_s1 }
 0x276   :  { %p6885_p8 = pnand %p6883_p7, %p6880_p6 }
 0x278   :  { %6888 = shalt.err (!%p6885_p8)
}
 0x279   :  { %s6889_s8 = scalar_lea.vmem %s321_s4, 16  ;;  %s6893_s3 = scalar_lea.vmem %s321_s4, 32 }
 0x27a   :  { %p6890_p9 = scmp.ne.s32.totalorder %s321_s4, %s6889_s8  ;;  %p6894_p10 = scmp.lt.s32.totalorder %s321_s4, %s321_s4 }
 0x27b   :  { %p6895_p11 = scmp.lt.s32.totalorder %s6893_s3, %s6889_s8 }
 0x27d   :  { %p6896_p12 = por %p6895_p11, %p6894_p10 }
 0x27f   :  { %p6897_p13 = pnand %p6896_p12, %p6890_p9 }
 0x281   :  { %6900 = shalt.err (!%p6897_p13)
}
 0x282   :  { %s8618_s14 = sld [smem:[#allocation96_spill]]  ;;  %s7267_s2 = smov [#allocation31]  }
 0x283   :  { %323 = dma.hbm_to_vmem [thread:$0]  %s8617_s1, 16, %s321_s4, [#allocation27]  }
 0x284   :  { %s342_s10 = sshll.u32 %s7267_s2, 4  ;;  %s7268_s12 = smov [#allocation34]   ;;  %s343_s10 = int_to_ptr.vmem [resolvable:$true] %s342_s10 }
 0x285   :  { %s362_s7 = sshll.u32 %s7268_s12, 4  ;;  %s363_s7 = int_to_ptr.vmem [resolvable:$true] %s362_s7 }
 0x288   :  { %s6901_s25 = scalar_lea.hbm %s8618_s14, 16 }
 0x289   :  { %p6902_p0 = scmp.ne.s32.totalorder %s8618_s14, %s6901_s25  ;;  %p6905_p1 = scmp.lt.u32.totalorder %s6901_s25, %s8618_s14 }
 0x28b   :  { %p6907_p2 = pnand %p6905_p1, %p6902_p0 }
 0x28d   :  { %6910 = shalt.err (!%p6907_p2)
}
 0x28e   :  { %s6911_s30 = scalar_lea.vmem %s343_s10, 16  ;;  %s6915_s11 = scalar_lea.vmem %s343_s10, 32 }
 0x28f   :  { %p6912_p3 = scmp.ne.s32.totalorder %s343_s10, %s6911_s30  ;;  %p6916_p4 = scmp.lt.s32.totalorder %s343_s10, %s343_s10 }
 0x290   :  { %p6917_p5 = scmp.lt.s32.totalorder %s6915_s11, %s6911_s30 }
 0x292   :  { %p6918_p6 = por %p6917_p5, %p6916_p4 }
 0x294   :  { %p6919_p7 = pnand %p6918_p6, %p6912_p3 }
 0x296   :  { %6922 = shalt.err (!%p6919_p7)
}
 0x297   :  { %s8619_s0 = sld [smem:[#allocation97_spill]] }
 0x298   :  { %345 = dma.hbm_to_vmem [thread:$0]  %s8618_s14, 16, %s343_s10, [#allocation30]  }
 0x29d   :  { %s6923_s9 = scalar_lea.hbm %s8619_s0, 16 }
 0x29e   :  { %p6924_p8 = scmp.ne.s32.totalorder %s8619_s0, %s6923_s9  ;;  %p6927_p9 = scmp.lt.u32.totalorder %s6923_s9, %s8619_s0 }
 0x2a0   :  { %p6929_p10 = pnand %p6927_p9, %p6924_p8 }
 0x2a2   :  { %6932 = shalt.err (!%p6929_p10)
}
 0x2a3   :  { %s6933_s27 = scalar_lea.vmem %s363_s7, 16  ;;  %s6937_s21 = scalar_lea.vmem %s363_s7, 32 }
 0x2a4   :  { %p6934_p11 = scmp.ne.s32.totalorder %s363_s7, %s6933_s27  ;;  %p6938_p12 = scmp.lt.s32.totalorder %s363_s7, %s363_s7 }
 0x2a5   :  { %p6939_p13 = scmp.lt.s32.totalorder %s6937_s21, %s6933_s27 }
 0x2a7   :  { %p6940_p0 = por %p6939_p13, %p6938_p12 }
 0x2a9   :  { %p6941_p1 = pnand %p6940_p0, %p6934_p11 }
 0x2ab   :  { %6944 = shalt.err (!%p6941_p1)
}
 0x2ac   :  { %s8620_s15 = sld [smem:[#allocation99_spill]]  ;;  %s7269_s20 = smov [#allocation37]  }
 0x2ad   :  { %365 = dma.hbm_to_vmem [thread:$0]  %s8619_s0, 16, %s363_s7, [#allocation33]  }
 0x2ae   :  { %s384_s19 = sshll.u32 %s7269_s20, 4  ;;  %s7270_s16 = smov [#allocation40]   ;;  %s385_s19 = int_to_ptr.vmem [resolvable:$true] %s384_s19 }
 0x2af   :  { %s403_s18 = sshll.u32 %s7270_s16, 4  ;;  %s7725_s18 = int_to_ptr.vmem [resolvable:$true] %s403_s18 }
 0x2b2   :  { %s6945_s29 = scalar_lea.hbm %s8620_s15, 16 }
 0x2b3   :  { %p6946_p2 = scmp.ne.s32.totalorder %s8620_s15, %s6945_s29  ;;  %p6949_p3 = scmp.lt.u32.totalorder %s6945_s29, %s8620_s15 }
 0x2b5   :  { %p6951_p4 = pnand %p6949_p3, %p6946_p2 }
 0x2b7   :  { %6954 = shalt.err (!%p6951_p4)
}
 0x2b8   :  { %s6955_s4 = scalar_lea.vmem %s385_s19, 16  ;;  %s6959_s22 = scalar_lea.vmem %s385_s19, 32 }
 0x2b9   :  { %p6956_p5 = scmp.ne.s32.totalorder %s385_s19, %s6955_s4  ;;  %p6960_p6 = scmp.lt.s32.totalorder %s385_s19, %s385_s19 }
 0x2ba   :  { %p6961_p7 = scmp.lt.s32.totalorder %s6959_s22, %s6955_s4 }
 0x2bc   :  { %p6962_p8 = por %p6961_p7, %p6960_p6 }
 0x2be   :  { %p6963_p9 = pnand %p6962_p8, %p6956_p5 }
 0x2c0   :  { %6966 = shalt.err (!%p6963_p9)
}
 0x2c1   :  { %s8621_s5 = sld [smem:[#allocation100_spill]] }
 0x2c2   :  { %387 = dma.hbm_to_vmem [thread:$0]  %s8620_s15, 16, %s385_s19, [#allocation36]  }
 0x2c7   :  { %s6967_s28 = scalar_lea.hbm %s8621_s5, 1024 }
 0x2c8   :  { %p6968_p10 = scmp.ne.s32.totalorder %s8621_s5, %s6967_s28  ;;  %p6971_p11 = scmp.lt.u32.totalorder %s6967_s28, %s8621_s5 }
 0x2ca   :  { %p6973_p12 = pnand %p6971_p11, %p6968_p10 }
 0x2cc   :  { %6976 = shalt.err (!%p6973_p12)
}
 0x2cd   :  { %s6977_s1 = scalar_lea.vmem %s7725_s18, 1024  ;;  %p6982_p0 = scmp.lt.s32.totalorder %s7725_s18, %s7725_s18 }
 0x2ce   :  { %p6978_p13 = scmp.ne.s32.totalorder %s7725_s18, %s6977_s1  ;;  %p6983_p1 = scmp.lt.s32.totalorder %s6977_s1, %s6977_s1 }
 0x2d0   :  { %p6984_p2 = por %p6983_p1, %p6982_p0 }
 0x2d2   :  { %p6985_p3 = pnand %p6984_p2, %p6978_p13 }
 0x2d4   :  { %6988 = shalt.err (!%p6985_p3)
}
 0x2d5   :  { %s8622_s13 = sld [smem:[#allocation101_spill]]  ;;  %s7271_s8 = smov [#allocation43]  }
 0x2d6   :  { %409 = dma.hbm_to_vmem [thread:$0]  %s8621_s5, 1024, %s7725_s18, [#allocation39], %s7239_s23, %s7239_s23, %s7240_s26  }
 0x2d7   :  { %s426_s3 = sshll.u32 %s7271_s8, 4  ;;  %s7272_s14 = smov [#allocation46]   ;;  %s427_s3 = int_to_ptr.vmem [resolvable:$true] %s426_s3 }
 0x2d8   :  { %s445_s2 = sshll.u32 %s7272_s14, 4  ;;  %s7743_s2 = int_to_ptr.vmem [resolvable:$true] %s445_s2 }
 0x2db   :  { %s6989_s10 = scalar_lea.hbm %s8622_s13, 16 }
 0x2dc   :  { %p6990_p4 = scmp.ne.s32.totalorder %s8622_s13, %s6989_s10  ;;  %p6993_p5 = scmp.lt.u32.totalorder %s6989_s10, %s8622_s13 }
 0x2de   :  { %p6995_p6 = pnand %p6993_p5, %p6990_p4 }
 0x2e0   :  { %6998 = shalt.err (!%p6995_p6)
}
 0x2e1   :  { %s6999_s12 = scalar_lea.vmem %s427_s3, 16  ;;  %s7003_s7 = scalar_lea.vmem %s427_s3, 32 }
 0x2e2   :  { %p7000_p7 = scmp.ne.s32.totalorder %s427_s3, %s6999_s12  ;;  %p7004_p8 = scmp.lt.s32.totalorder %s427_s3, %s427_s3 }
 0x2e3   :  { %p7005_p9 = scmp.lt.s32.totalorder %s7003_s7, %s6999_s12 }
 0x2e5   :  { %p7006_p10 = por %p7005_p9, %p7004_p8 }
 0x2e7   :  { %p7007_p11 = pnand %p7006_p10, %p7000_p7 }
 0x2e9   :  { %7010 = shalt.err (!%p7007_p11)
}
 0x2ea   :  { %s8623_s25 = sld [smem:[#allocation102_spill]] }
 0x2eb   :  { %429 = dma.hbm_to_vmem [thread:$0]  %s8622_s13, 16, %s427_s3, [#allocation42]  }
 0x2f0   :  { %s7011_s30 = scalar_lea.hbm %s8623_s25, 1024 }
 0x2f1   :  { %p7012_p12 = scmp.ne.s32.totalorder %s8623_s25, %s7011_s30  ;;  %p7015_p13 = scmp.lt.u32.totalorder %s7011_s30, %s8623_s25 }
 0x2f3   :  { %p7017_p0 = pnand %p7015_p13, %p7012_p12 }
 0x2f5   :  { %7020 = shalt.err (!%p7017_p0)
}
 0x2f6   :  { %s7021_s11 = scalar_lea.vmem %s7743_s2, 1024  ;;  %p7026_p2 = scmp.lt.s32.totalorder %s7743_s2, %s7743_s2 }
 0x2f7   :  { %p7022_p1 = scmp.ne.s32.totalorder %s7743_s2, %s7021_s11  ;;  %p7027_p3 = scmp.lt.s32.totalorder %s7021_s11, %s7021_s11 }
 0x2f9   :  { %p7028_p4 = por %p7027_p3, %p7026_p2 }
 0x2fb   :  { %p7029_p5 = pnand %p7028_p4, %p7022_p1 }
 0x2fd   :  { %7032 = shalt.err (!%p7029_p5)
}
 0x2fe   :  { %s8624_s0 = sld [smem:[#allocation105_spill]]  ;;  %s7273_s9 = smov [#allocation49]  }
 0x2ff   :  { %451 = dma.hbm_to_vmem [thread:$0]  %s8623_s25, 1024, %s7743_s2, [#allocation45], %s7239_s23, %s7239_s23, %s7240_s26  }
 0x300   :  { %s470_s27 = sshll.u32 %s7273_s9, 4  ;;  %s7274_s21 = smov [#allocation52]   ;;  %s471_s27 = int_to_ptr.vmem [resolvable:$true] %s470_s27 }
 0x301   :  { %s492_s15 = sshll.u32 %s7274_s21, 4  ;;  %s493_s15 = int_to_ptr.vmem [resolvable:$true] %s492_s15 }
 0x304   :  { %s7033_s20 = scalar_lea.hbm %s8624_s0, 16 }
 0x305   :  { %p7034_p6 = scmp.ne.s32.totalorder %s8624_s0, %s7033_s20  ;;  %p7037_p7 = scmp.lt.u32.totalorder %s7033_s20, %s8624_s0 }
 0x307   :  { %p7039_p8 = pnand %p7037_p7, %p7034_p6 }
 0x309   :  { %7042 = shalt.err (!%p7039_p8)
}
 0x30a   :  { %s7043_s19 = scalar_lea.vmem %s471_s27, 16  ;;  %s7047_s16 = scalar_lea.vmem %s471_s27, 32 }
 0x30b   :  { %p7044_p9 = scmp.ne.s32.totalorder %s471_s27, %s7043_s19  ;;  %p7048_p10 = scmp.lt.s32.totalorder %s471_s27, %s471_s27 }
 0x30c   :  { %p7049_p11 = scmp.lt.s32.totalorder %s7047_s16, %s7043_s19 }
 0x30e   :  { %p7050_p12 = por %p7049_p11, %p7048_p10 }
 0x310   :  { %p7051_p13 = pnand %p7050_p12, %p7044_p9 }
 0x312   :  { %7054 = shalt.err (!%p7051_p13)
}
 0x313   :  { %s8625_s23 = sld [smem:[#allocation107_spill]] }
 0x314   :  { %473 = dma.hbm_to_vmem [thread:$0]  %s8624_s0, 16, %s471_s27, [#allocation48]  }
 0x319   :  { %s7055_s26 = scalar_lea.hbm %s8625_s23, 16 }
 0x31a   :  { %p7056_p0 = scmp.ne.s32.totalorder %s8625_s23, %s7055_s26  ;;  %p7059_p1 = scmp.lt.u32.totalorder %s7055_s26, %s8625_s23 }
 0x31c   :  { %p7061_p2 = pnand %p7059_p1, %p7056_p0 }
 0x31e   :  { %7064 = shalt.err (!%p7061_p2)
}
 0x31f   :  { %s7065_s18 = scalar_lea.vmem %s493_s15, 16  ;;  %s7069_s29 = scalar_lea.vmem %s493_s15, 32 }
 0x320   :  { %p7066_p3 = scmp.ne.s32.totalorder %s493_s15, %s7065_s18  ;;  %p7070_p4 = scmp.lt.s32.totalorder %s493_s15, %s493_s15 }
 0x321   :  { %p7071_p5 = scmp.lt.s32.totalorder %s7069_s29, %s7065_s18 }
 0x323   :  { %p7072_p6 = por %p7071_p5, %p7070_p4 }
 0x325   :  { %p7073_p7 = pnand %p7072_p6, %p7066_p3 }
 0x327   :  { %7076 = shalt.err (!%p7073_p7)
}
 0x328   :  { %s8626_s4 = sld [smem:[#allocation109_spill]]  ;;  %s7275_s22 = smov [#allocation55]  }
 0x329   :  { %495 = dma.hbm_to_vmem [thread:$0]  %s8625_s23, 16, %s493_s15, [#allocation51]  }
 0x32a   :  { %s512_s5 = sshll.u32 %s7275_s22, 4  ;;  %s7276_s28 = smov [#allocation58]   ;;  %s513_s5 = int_to_ptr.vmem [resolvable:$true] %s512_s5 }
 0x32b   :  { %s534_s1 = sshll.u32 %s7276_s28, 4  ;;  %s535_s1 = int_to_ptr.vmem [resolvable:$true] %s534_s1 }
 0x32e   :  { %s7077_s13 = scalar_lea.hbm %s8626_s4, 16 }
 0x32f   :  { %p7078_p8 = scmp.ne.s32.totalorder %s8626_s4, %s7077_s13  ;;  %p7081_p9 = scmp.lt.u32.totalorder %s7077_s13, %s8626_s4 }
 0x331   :  { %p7083_p10 = pnand %p7081_p9, %p7078_p8 }
 0x333   :  { %7086 = shalt.err (!%p7083_p10)
}
 0x334   :  { %s7087_s8 = scalar_lea.vmem %s513_s5, 16  ;;  %s7091_s3 = scalar_lea.vmem %s513_s5, 32 }
 0x335   :  { %p7088_p11 = scmp.ne.s32.totalorder %s513_s5, %s7087_s8  ;;  %p7092_p12 = scmp.lt.s32.totalorder %s513_s5, %s513_s5 }
 0x336   :  { %p7093_p13 = scmp.lt.s32.totalorder %s7091_s3, %s7087_s8 }
 0x338   :  { %p7094_p0 = por %p7093_p13, %p7092_p12 }
 0x33a   :  { %p7095_p1 = pnand %p7094_p0, %p7088_p11 }
 0x33c   :  { %7098 = shalt.err (!%p7095_p1)
}
 0x33d   :  { %s8627_s14 = sld [smem:[#allocation112_spill]] }
 0x33e   :  { %515 = dma.hbm_to_vmem [thread:$0]  %s8626_s4, 16, %s513_s5, [#allocation54]  }
 0x343   :  { %s7099_s2 = scalar_lea.hbm %s8627_s14, 16 }
 0x344   :  { %p7100_p2 = scmp.ne.s32.totalorder %s8627_s14, %s7099_s2  ;;  %p7103_p3 = scmp.lt.u32.totalorder %s7099_s2, %s8627_s14 }
 0x346   :  { %p7105_p4 = pnand %p7103_p3, %p7100_p2 }
 0x348   :  { %7108 = shalt.err (!%p7105_p4)
}
 0x349   :  { %s7109_s10 = scalar_lea.vmem %s535_s1, 16  ;;  %s7113_s12 = scalar_lea.vmem %s535_s1, 32 }
 0x34a   :  { %p7110_p5 = scmp.ne.s32.totalorder %s535_s1, %s7109_s10  ;;  %p7114_p6 = scmp.lt.s32.totalorder %s535_s1, %s535_s1 }
 0x34b   :  { %p7115_p7 = scmp.lt.s32.totalorder %s7113_s12, %s7109_s10 }
 0x34d   :  { %p7116_p8 = por %p7115_p7, %p7114_p6 }
 0x34f   :  { %p7117_p9 = pnand %p7116_p8, %p7110_p5 }
 0x351   :  { %7120 = shalt.err (!%p7117_p9)
}
 0x352   :  { %s8628_s7 = sld [smem:[#allocation115_spill]]  ;;  %s7277_s25 = smov [#allocation61]  }
 0x353   :  { %537 = dma.hbm_to_vmem [thread:$0]  %s8627_s14, 16, %s535_s1, [#allocation57]  }
 0x354   :  { %s556_s30 = sshll.u32 %s7277_s25, 4  ;;  %s557_s30 = int_to_ptr.vmem [resolvable:$true] %s556_s30 }
 0x358   :  { %s7121_s11 = scalar_lea.hbm %s8628_s7, 16 }
 0x359   :  { %p7122_p10 = scmp.ne.s32.totalorder %s8628_s7, %s7121_s11  ;;  %p7125_p11 = scmp.lt.u32.totalorder %s7121_s11, %s8628_s7 }
 0x35b   :  { %p7127_p12 = pnand %p7125_p11, %p7122_p10 }
 0x35d   :  { %7130 = shalt.err (!%p7127_p12)
}
 0x35e   :  { %s7131_s0 = scalar_lea.vmem %s557_s30, 16  ;;  %s7135_s9 = scalar_lea.vmem %s557_s30, 32 }
 0x35f   :  { %p7132_p13 = scmp.ne.s32.totalorder %s557_s30, %s7131_s0  ;;  %p7136_p0 = scmp.lt.s32.totalorder %s557_s30, %s557_s30 }
 0x360   :  { %p7137_p1 = scmp.lt.s32.totalorder %s7135_s9, %s7131_s0 }
 0x362   :  { %p7138_p2 = por %p7137_p1, %p7136_p0 }
 0x364   :  { %p7139_p3 = pnand %p7138_p2, %p7132_p13 }
 0x366   :  { %7142 = shalt.err (!%p7139_p3)
}
 0x367   :  { %559 = dma.hbm_to_vmem [thread:$0]  %s8628_s7, 16, %s557_s30, [#allocation60]  }
 0x368   :  { %7143 = dma.done.wait [#allocation4], 384  }
 0x369   :  { %7144 = vsyncadd [#allocation4], 4294966912 }
 0x36a   :  { %7145 = dma.done.wait [#allocation6], 768  }
 0x36b   :  { %7146 = vsyncadd [#allocation6], 4294966528 }
 0x36c   :  { %7147 = dma.done.wait [#allocation9], 272  }
 0x36d   :  { %7148 = vsyncadd [#allocation9], 4294967024 }
 0x36e   :  { %7149 = dma.done.wait [#allocation12], 32  }
 0x36f   :  { %7150 = vsyncadd [#allocation12], 4294967264 }
 0x370   :  { %7151 = dma.done.wait [#allocation15], 48  }
 0x371   :  { %7152 = vsyncadd [#allocation15], 4294967248 }
 0x372   :  { %7153 = dma.done.wait [#allocation18], 32  }
 0x373   :  { %7154 = vsyncadd [#allocation18], 4294967264 }
 0x374   :  { %7155 = dma.done.wait [#allocation21], 32  }
 0x375   :  { %7156 = vsyncadd [#allocation21], 4294967264 }
 0x376   :  { %7157 = dma.done.wait [#allocation24], 32  }
 0x377   :  { %7158 = vsyncadd [#allocation24], 4294967264 }
 0x378   :  { %7159 = dma.done.wait [#allocation27], 32  }
 0x379   :  { %7160 = vsyncadd [#allocation27], 4294967264 }
 0x37a   :  { %7161 = dma.done.wait [#allocation30], 1040  }
 0x37b   :  { %7162 = vsyncadd [#allocation30], 4294966256 }
 0x37c   :  { %7163 = dma.done.wait [#allocation33], 32  }
 0x37d   :  { %7164 = vsyncadd [#allocation33], 4294967264 }
 0x37e   :  { %7165 = dma.done.wait [#allocation36], 32  }
 0x37f   :  { %7166 = vsyncadd [#allocation36], 4294967264 }
 0x380   :  { %7167 = dma.done.wait [#allocation39], 1040  }
 0x381   :  { %7168 = vsyncadd [#allocation39], 4294966256 }
 0x382   :  { %7169 = dma.done.wait [#allocation42], 32  }
 0x383   :  { %7170 = vsyncadd [#allocation42], 4294967264 }
 0x384   :  { %7171 = dma.done.wait [#allocation45], 1040  }
 0x385   :  { %7172 = vsyncadd [#allocation45], 4294966256 }
 0x386   :  { %7173 = dma.done.wait [#allocation48], 32  }
 0x387   :  { %7174 = vsyncadd [#allocation48], 4294967264 }
 0x388   :  { %7175 = dma.done.wait [#allocation51], 1040  }
 0x389   :  { %7176 = vsyncadd [#allocation51], 4294966256 }
 0x38a   :  { %7177 = dma.done.wait [#allocation54], 32  }
 0x38b   :  { %7178 = vsyncadd [#allocation54], 4294967264 }
 0x38c   :  { %7179 = dma.done.wait [#allocation57], 32  }
 0x38d   :  { %7180 = vsyncadd [#allocation57], 4294967264 }
 0x38e   :  { %7181 = dma.done.wait [#allocation60], 32  }
 0x38f   :  { %7182 = vsyncadd [#allocation60], 4294967264  ;;  %s8629_s27 = sld [smem:[#allocation82_spill]]  ;;  %v7278_v1 = vmov 0.0|0.0   ;;  %vm7279_vm0 = vmmov 0   ;;  %v7280_v2 = vmov 0.0  }
 0x390   :  { %5829 = vmatprep.subr.bf16.mxu0 %v7278_v1  ;;  %5282 = vmatprep.mubr.msk.f32.mxu0 %vm7279_vm0, %v7280_v2  ;;  %v701_v3 = vld [vmem:[#allocation8] sm:$0xff]  ;;  %v702_v4 = vld [vmem:[#allocation8 + $0x8] sm:$0xff]  ;;  %vm710_vm1 = vcmask 130048   ;;  %v4902_v9 = vld [vmem:[#allocation10] ss:$0 sm:$0xff]  ;;  %vm802_vm2 = vcmask 523264  }
 0x391   :  { %965 = vmatprep.mubr.f32.mxu1 %v7280_v2  ;;  %v5830_v5 = vpack.c.bf16 %v702_v4, %v701_v3  ;;  %s8630_s21 = sld [smem:[#allocation87_spill]]  ;;  %s7281_s15 = smov 64   ;;  %vm7885_vm3 = vmpackc.low %vm710_vm1, %vm710_vm1  ;;  %vm1091_vm4 = vcmask 195584   ;;  %vm4353_vm12 = vcmask 261120   ;;  %vm4730_vm13 = vcmask 64512  }
 0x392   :  { %s7282_s20 = smov 112   ;;  %s7283_s19 = smov 48   ;;  %vm8254_vm5 = vmpackc.low %vm802_vm2, %vm802_vm2  ;;  %vm4820_vm14 = vcmask 7168  }
 0x393   :  { %5831 = vmatpush3.bf16.msra.mxu0 %v5830_v5  ;;  %s7284_s16 = smov 32   ;;  %s7285_s23 = smov 96  }
 0x394   :  { %5848 = vmatprep.subr.bf16.mxu0 %v7278_v1  ;;  %s8633_s26 = sld [smem:[#allocation88_spill]]  ;;  %s7286_s18 = smov 16  }
 0x395   :  { %v698_v6 = vld [vmem:[%s8629_s27] sm:$0xff]  ;;  %v699_v7 = vld [vmem:[%s8629_s27 + $0x8] sm:$0xff]  ;;  %v700_v8 = vld [vmem:[%s8629_s27 + $0x10] sm:$0xff]  ;;  %s7287_s29 = smov 80   ;;  %s8634_s4 = sld [smem:[#allocation91_spill]] }
 0x396   :  { %5283 = vmatmul.mubr.msk.f32.vlgmr.msra.gmra.mrb[0].mxu0 %vm710_vm1, %v698_v6  ;;  %s8635_s22 = sld [smem:[#allocation93_spill]]  ;;  %s8638_s5 = sld [smem:[#allocation98_spill]] }
 0x397   :  { %5285 = vmatprep.mubr.msk.f32.mxu0 %vm7279_vm0, %v7280_v2  ;;  %v865_v37 = vld [vmem:[%s8630_s21 + $0x8] sm:$0xff]  ;;  %v867_v38 = vld [vmem:[%s8630_s21 + $0x18] sm:$0xff]  ;;  %v864_v40 = vld [vmem:[%s8630_s21] sm:$0xff]  ;;  %s8639_s28 = sld [smem:[#allocation103_spill]]  ;;  %s8640_s1 = sld [smem:[#allocation110_spill]] }
 0x398   :  { %v5832_v39 = vpack.c.bf16 %v867_v38, %v865_v37  ;;  %v866_v41 = vld [vmem:[%s8630_s21 + $0x10] sm:$0xff]  ;;  %v869_v43 = vld [vmem:[%s8630_s21 + $0x28] sm:$0xff]  ;;  %v871_v44 = vld [vmem:[%s8630_s21 + $0x38] sm:$0xff]  ;;  %s8641_s13 = sld [smem:[#allocation114_spill]]  ;;  %s8642_s8 = sld [smem:[#allocation116_spill]] }
 0x399   :  { %v5834_v42 = vpack.c.bf16 %v866_v41, %v864_v40  ;;  %v5836_v45 = vpack.c.bf16 %v871_v44, %v869_v43  ;;  %v868_v46 = vld [vmem:[%s8630_s21 + $0x20] sm:$0xff]  ;;  %v870_v47 = vld [vmem:[%s8630_s21 + $0x30] sm:$0xff]  ;;  %v873_v49 = vld [vmem:[%s8630_s21 + $0x48] sm:$0xff]  ;;  %s8643_s3 = sld [smem:[#allocation118_spill]]  ;;  %s8644_s14 = sld [smem:[#allocation117_spill]] }
 0x39a   :  { %5286 = vmatmul.mubr.msk.f32.gmra.mrb[2].mxu0 %vm710_vm1, %v699_v7  ;;  %5833 = vmatprep.subr.bf16.mxu1 %v5832_v39  ;;  %v5838_v48 = vpack.c.bf16 %v870_v47, %v868_v46  ;;  %v875_v50 = vld [vmem:[%s8630_s21 + $0x58] sm:$0xff]  ;;  %v872_v51 = vld [vmem:[%s8630_s21 + $0x40] sm:$0xff]  ;;  %v874_v53 = vld [vmem:[%s8630_s21 + $0x50] sm:$0xff] }
 0x39b   :  { %5288 = vmatprep.mubr.msk.f32.mxu0 %vm7279_vm0, %v7280_v2  ;;  %5835 = vmatpush1.bf16.msra.mxu1 %v5834_v42  ;;  %v5840_v52 = vpack.c.bf16 %v875_v50, %v873_v49  ;;  %v877_v54 = vld [vmem:[%s8630_s21 + $0x68] sm:$0xff]  ;;  %v879_v55 = vld [vmem:[%s8630_s21 + $0x78] sm:$0xff]  ;;  %v5842_v56 = vpack.c.bf16 %v874_v53, %v872_v51  ;;  %v876_v58 = vld [vmem:[%s8630_s21 + $0x60] sm:$0xff] }
 0x39c   :  { %5837 = vmatprep.subr.bf16.mxu1 %v5836_v45  ;;  %v5844_v57 = vpack.c.bf16 %v879_v55, %v877_v54  ;;  %v878_v59 = vld [vmem:[%s8630_s21 + $0x70] sm:$0xff] }
 0x39d   :  { %v5846_v60 = vpack.c.bf16 %v878_v59, %v876_v58 }
 0x39e   :  { %5289 = vmatmul.mubr.msk.f32.gmra.mrb[4].mxu0 %vm710_vm1, %v700_v8 }
 0x39f   :  { %5297 = vmatprep.mubr.msk.f32.mxu0 %vm7279_vm0, %v7280_v2  ;;  %5839 = vmatpush1.bf16.msra.mxu1 %v5838_v48 }
 0x3a0   :  { %5841 = vmatprep.subr.bf16.mxu1 %v5840_v52 }
 0x3a3   :  { %5843 = vmatpush1.bf16.msra.mxu1 %v5842_v56 }
 0x3a4   :  { %5845 = vmatprep.subr.bf16.mxu1 %v5844_v57 }
 0x3a7   :  { %5847 = vmatpush1.bf16.msra.mxu1 %v5846_v60 }
 0x3a8   :  { %5855 = vmatprep.subr.bf16.mxu1 %v7278_v1 }
 0x469   :  { %v786_v10 = vpop.f32.mrb[0].mxu0 }
 0x46a   :  { %v787_v11 = vadd.f32 %v4902_v9, %v786_v10  ;;  %v5284_v12 = vpop.f32.mrb[1].mxu0 }
 0x46c   :  { %v803_v13 = vsel %vm802_vm2, %v787_v11, 0.0 }
 0x46d   :  { %804 = vadd.xlane.f32.xlu0 %v803_v13  ;;  %v791_v14 = vpop.f32.mrb[2].mxu0 }
 0x46e   :  { %v792_v15 = vadd.f32 %v4902_v9, %v791_v14  ;;  %v5287_v16 = vpop.f32.mrb[3].mxu0 }
 0x470   :  { %v806_v17 = vsel %vm802_vm2, %v792_v15, 0.0 }
 0x471   :  { %807 = vadd.xlane.f32.xlu0 %v806_v17  ;;  %v796_v18 = vpop.f32.mrb[4].mxu0 }
 0x472   :  { %v797_v19 = vadd.f32 %v4902_v9, %v796_v18  ;;  %v5290_v20 = vpop.f32.mrb[5].mxu0  ;;  %v4906_v9 = vld [vmem:[#allocation11] ss:$0 sm:$0xff] }
 0x474   :  { %v809_v21 = vsel %vm802_vm2, %v797_v19, 0.0 }
 0x475   :  { %810 = vadd.xlane.f32.xlu1 %v809_v21 }
 0x4fa   :  { %v805_v22 = vpop.xlane.xlu0 %804 }
 0x4fb   :  { %v813_v23 = vmul.f32 0.015625, %v805_v22 }
 0x4fd   :  { %v7801_v24 = vsub.f32 %v787_v11, %v813_v23  ;;  %v4907_v11 = vld [vmem:[#allocation13] ss:$0 sm:$0xff] }
 0x4fe   :  { %v808_v25 = vpop.xlane.xlu0 %807 }
 0x4ff   :  { %v814_v26 = vmul.f32 0.015625, %v808_v25  ;;  %v819_v27 = vmul.f32 %v7801_v24, %v7801_v24  ;;  %v882_v25 = vlaneseq }
 0x501   :  { %v7805_v28 = vsub.f32 %v792_v15, %v814_v26  ;;  %v822_v29 = vsel %vm802_vm2, %v819_v27, 0.0  ;;  %v883_v26 = vshrl.u32 %v882_v25, 7 }
 0x502   :  { %823 = vadd.xlane.f32.xlu1 %v822_v29  ;;  %v811_v30 = vpop.xlane.xlu1 %810 }
 0x503   :  { %v815_v31 = vmul.f32 0.015625, %v811_v30  ;;  %v820_v32 = vmul.f32 %v7805_v28, %v7805_v28  ;;  %v7858_v27 = vsub.s32 0, %v883_v26  ;;  %v888_v29 = vsub.s32 1, %v883_v26 }
 0x505   :  { %v7810_v33 = vsub.f32 %v797_v19, %v815_v31  ;;  %v825_v34 = vsel %vm802_vm2, %v820_v32, 0.0 }
 0x506   :  { %826 = vadd.xlane.f32.xlu0 %v825_v34 }
 0x507   :  { %v821_v35 = vmul.f32 %v7810_v33, %v7810_v33 }
 0x509   :  { %v828_v36 = vsel %vm802_vm2, %v821_v35, 0.0 }
 0x50a   :  { %829 = vadd.xlane.f32.xlu1 %v828_v36 }
 0x58f   :  { %v824_v61 = vpop.xlane.xlu1 %823 }
 0x590   :  { %v831_v62 = vmul.f32 0.015625, %v824_v61 }
 0x592   :  { %v834_v63 = vadd.f32 1e-05, %v831_v62  ;;  %v7925_v62 = vld [vmem:[#allocation7] sm:$0xff] }
 0x593   :  { %v827_v0 = vpop.xlane.xlu0 %826 }
 0x594   :  { %6165 = vrsqrt.f32 %v834_v63  ;;  %v832_v3 = vmul.f32 0.015625, %v827_v0 }
 0x596   :  { %v835_v4 = vadd.f32 1e-05, %v832_v3 }
 0x597   :  { %v830_v5 = vpop.xlane.xlu1 %829 }
 0x598   :  { %6167 = vrsqrt.f32 %v835_v4  ;;  %v833_v6 = vmul.f32 0.015625, %v830_v5  ;;  %v7928_v5 = vld [vmem:[#allocation7 + $0x8] sm:$0xff] }
 0x59a   :  { %v836_v7 = vadd.f32 1e-05, %v833_v6 }
 0x59c   :  { %6169 = vrsqrt.f32 %v836_v7 }
 0x59e   :  { %v6166_v8 = vpop.eup %6165 }
 0x59f   :  { %v840_v10 = vmul.f32 %v6166_v8, %v7801_v24 }
 0x5a1   :  { %v849_v12 = vmul.f32 %v4906_v9, %v840_v10 }
 0x5a2   :  { %v6168_v13 = vpop.eup %6167 }
 0x5a3   :  { %v7834_v14 = vadd.f32 %v4907_v11, %v849_v12  ;;  %v841_v15 = vmul.f32 %v6168_v13, %v7805_v28  ;;  %v880_v28 = vld [vmem:[#allocation14] sm:$0x3]  ;;  %v7932_v13 = vld [vmem:[#allocation7 + $0x10] sm:$0xff] }
 0x5a4   :  { %v885_v31 = vrot.slane %v880_v28, %v7858_v27 }
 0x5a5   :  { %v861_v16 = vmax.f32 %v7834_v14, 0.0  ;;  %v850_v17 = vmul.f32 %v4906_v9, %v841_v15 }
 0x5a6   :  { %v6170_v18 = vpop.eup %6169 }
 0x5a7   :  { %4908 = vmatmul.mubr.msk.f32.vlgmr.msra.gmra.mrb[0].mxu1 %vm802_vm2, %v861_v16  ;;  %v7841_v19 = vadd.f32 %v4907_v11, %v850_v17  ;;  %v842_v20 = vmul.f32 %v6170_v18, %v7810_v33  ;;  %v889_v33 = vrot.slane %v880_v28, %v888_v29 }
 0x5a8   :  { %971 = vmatprep.mubr.f32.mxu1 %v7280_v2 }
 0x5a9   :  { %v862_v21 = vmax.f32 %v7841_v19, 0.0  ;;  %v851_v22 = vmul.f32 %v4906_v9, %v842_v20 }
 0x5ab   :  { %4909 = vmatmul.mubr.msk.f32.gmra.mrb[2].mxu1 %vm802_vm2, %v862_v21  ;;  %v7849_v23 = vadd.f32 %v4907_v11, %v851_v22 }
 0x5ac   :  { %977 = vmatprep.mubr.f32.mxu1 %v7280_v2 }
 0x5ad   :  { %v863_v24 = vmax.f32 %v7849_v23, 0.0 }
 0x5af   :  { %4910 = vmatmul.mubr.msk.f32.gmra.mrb[4].mxu1 %vm802_vm2, %v863_v24 }
 0x5b0   :  { %5327 = vmatprep.mubr.msk.f32.mxu1 %vm7279_vm0, %v7280_v2 }
 0x67a   :  { %v967_v30 = vpop.f32.mrb[0].mxu1 }
 0x67b   :  { %v969_v32 = vpop.f32.mrb[1].mxu1  ;;  %v7861_v35 = vadd.f32 %v967_v30, %v885_v31 }
 0x67c   :  { %v970_v38 = vadd.f32 %v969_v32, %v889_v33 }
 0x67e   :  { %v973_v34 = vpop.f32.mrb[2].mxu1 }
 0x67f   :  { %v7863_v36 = vadd.f32 %v973_v34, %v885_v31  ;;  %v975_v37 = vpop.f32.mrb[3].mxu1 }
 0x680   :  { %v976_v39 = vadd.f32 %v975_v37, %v889_v33 }
 0x681   :  { %v7867_v40 = vpack.i.bf16 %v7863_v36, %v7861_v35 }
 0x682   :  { %v979_v41 = vpop.f32.mrb[4].mxu1  ;;  %v5853_v42 = vpack.c.bf16 %v976_v39, %v970_v38  ;;  %v7869_v43 = vpack.i.bf16 %v976_v39, %v970_v38 }
 0x683   :  { %v7871_v44 = vadd.f32 %v979_v41, %v885_v31  ;;  %6131 = vrot.lane.b32.xlu0 %v7867_v40, %s7281_s15  ;;  %v981_v45 = vpop.f32.mrb[5].mxu1 }
 0x684   :  { %v7902_v57 = vadd.f32 %v981_v45, %v889_v33 }
 0x685   :  { %991 = vrot.lane.b32.xlu1 %v7871_v44, %s7281_s15 }
 0x687   :  { %1216 = vrot.lane.b32.xlu0 %v7861_v35, %s7282_s20 }
 0x689   :  { %6136 = vrot.lane.b32.xlu1 %v7867_v40, %s7283_s19 }
 0x68b   :  { %1220 = vrot.lane.b32.xlu0 %v7871_v44, %s7282_s20 }
 0x68d   :  { %1226 = vrot.lane.b32.xlu1 %v7871_v44, %s7283_s19 }
 0x691   :  { %1218 = vrot.lane.b32.xlu1 %v7863_v36, %s7282_s20 }
 0x6f5   :  { %v6132_v46 = vpop.permute.xlu0 %6131 }
 0x6f6   :  { %v6134_v47 = vunpack.i.h.bf16 %v6132_v46  ;;  %v6133_v48 = vunpack.i.l.bf16 %v6132_v46 }
 0x6f7   :  { %v992_v49 = vpop.permute.xlu1 %991 }
 0x6f8   :  { %v5849_v51 = vpack.c.bf16 %v6134_v47, %v6133_v48 }
 0x6f9   :  { %v1217_v58 = vpop.permute.xlu0 %1216 }
 0x6fa   :  { %5851 = vmatpush3.bf16.xpose.msk.msra.mxu0 %vm7885_vm3, %v5849_v51 }
 0x6fb   :  { %v6137_v52 = vpop.permute.xlu1 %6136  ;;  %5295 = vmatprep.subr.mxu0 %v7280_v2 }
 0x6fc   :  { %v6139_v53 = vunpack.i.h.bf16 %v6137_v52  ;;  %v6138_v54 = vunpack.i.l.bf16 %v6137_v52 }
 0x6fd   :  { %v1221_v60 = vpop.permute.xlu0 %1220 }
 0x6fe   :  { %v5856_v55 = vpack.c.bf16 %v6139_v53, %v6138_v54 }
 0x6ff   :  { %v1227_v56 = vpop.permute.xlu1 %1226 }
 0x700   :  { %5858 = vmatpush3.bf16.xpose.msk.msra.mxu1 %vm7885_vm3, %v5856_v55 }
 0x701   :  { %5325 = vmatprep.subr.mxu1 %v7280_v2 }
 0x702   :  { %5296 = vmatpush3.xpose.msk.msra.mxu0 %vm710_vm1, %v992_v49 }
 0x703   :  { %5852 = vmatprep.subr.bf16.mxu0 %v7278_v1  ;;  %v1219_v59 = vpop.permute.xlu1 %1218 }
 0x705   :  { %5298 = vmatmul.mubr.msk.f32.vlgmr.msra.gmra.mrb[6].mxu0 %vm710_vm1, %v7861_v35 }
 0x706   :  { %5854 = vmatpush3.bf16.msra.mxu0 %v5853_v42  ;;  %5300 = vmatprep.mubr.msk.f32.mxu0 %vm7279_vm0, %v7280_v2 }
 0x707   :  { %5310 = vmatprep.subr.mxu0 %v7280_v2 }
 0x708   :  { %5326 = vmatpush3.xpose.msk.msra.mxu1 %vm710_vm1, %v1227_v56 }
 0x709   :  { %5301 = vmatmul.mubr.msk.f32.gmra.mrb[8].mxu0 %vm710_vm1, %v7863_v36  ;;  %5862 = vmatprep.subr.bf16.mxu1 %v7278_v1 }
 0x70a   :  { %5311 = vmatpush3.msra.mxu0 %v7902_v57  ;;  %5303 = vmatprep.mubr.msk.f32.mxu0 %vm7279_vm0, %v7280_v2 }
 0x70b   :  { %5328 = vmatmul.mubr.msk.f32.vlgmr.msra.gmra.mrb[6].mxu1 %vm710_vm1, %v1217_v58  ;;  %5859 = vmatprep.subr.bf16.mxu0 %v7278_v1 }
 0x70c   :  { %5330 = vmatprep.mubr.msk.f32.mxu1 %vm7279_vm0, %v7280_v2 }
 0x70d   :  { %5304 = vmatmul.mubr.msk.f32.gmra.mrb[10].mxu0 %vm710_vm1, %v7871_v44 }
 0x70e   :  { %5312 = vmatprep.mubr.msk.f32.mxu0 %vm7279_vm0, %v7280_v2 }
 0x70f   :  { %5331 = vmatmul.mubr.msk.f32.gmra.mrb[8].mxu1 %vm710_vm1, %v1219_v59 }
 0x710   :  { %5333 = vmatprep.mubr.msk.f32.mxu1 %vm7279_vm0, %v7280_v2 }
 0x713   :  { %5334 = vmatmul.mubr.msk.f32.gmra.mrb[10].mxu1 %vm710_vm1, %v1221_v60 }
 0x714   :  { %5355 = vmatprep.mubr.msk.f32.mxu1 %vm7279_vm0, %v7280_v2 }
 0x7d8   :  { %v1071_v61 = vpop.f32.mrb[6].mxu0 }
 0x7d9   :  { %v1085_v63 = vmul.f32 0.25, %v1071_v61  ;;  %v5299_v0 = vpop.f32.mrb[7].mxu0 }
 0x7db   :  { %v1088_v3 = vadd.f32 %v1085_v63, %v7925_v62 }
 0x7dc   :  { %v1076_v4 = vpop.f32.mrb[8].mxu0 }
 0x7dd   :  { %v1086_v6 = vmul.f32 0.25, %v1076_v4  ;;  %v5302_v7 = vpop.f32.mrb[9].mxu0  ;;  %v1092_v8 = vsel %vm1091_vm4, %v1088_v3, -inf }
 0x7de   :  { %v1306_v9 = vpop.f32.mrb[6].mxu1  ;;  %1093 = vmax.xlane.f32.xlu1 %v1092_v8 }
 0x7df   :  { %v5329_v10 = vpop.f32.mrb[7].mxu1  ;;  %v1089_v11 = vadd.f32 %v1086_v6, %v7928_v5  ;;  %v1320_v15 = vmul.f32 0.25, %v1306_v9 }
 0x7e0   :  { %v1081_v12 = vpop.f32.mrb[10].mxu0 }
 0x7e1   :  { %v1087_v17 = vmul.f32 0.25, %v1081_v12  ;;  %v5305_v18 = vpop.f32.mrb[11].mxu0  ;;  %v1095_v20 = vsel %vm1091_vm4, %v1089_v11, -inf  ;;  %v1323_v31 = vadd.f32 %v1320_v15, %v7925_v62 }
 0x7e2   :  { %v1311_v22 = vpop.f32.mrb[8].mxu1  ;;  %1096 = vmax.xlane.f32.xlu0 %v1095_v20 }
 0x7e3   :  { %v1321_v25 = vmul.f32 0.25, %v1311_v22  ;;  %v5332_v26 = vpop.f32.mrb[9].mxu1  ;;  %v1090_v28 = vadd.f32 %v1087_v17, %v7932_v13  ;;  %v1326_v38 = vsel %vm1091_vm4, %v1323_v31, -inf }
 0x7e5   :  { %v1098_v29 = vsel %vm1091_vm4, %v1090_v28, -inf  ;;  %v1324_v30 = vadd.f32 %v1321_v25, %v7928_v5 }
 0x7e6   :  { %v1316_v32 = vpop.f32.mrb[10].mxu1  ;;  %1099 = vmax.xlane.f32.xlu0 %v1098_v29 }
 0x7e7   :  { %v1322_v33 = vmul.f32 0.25, %v1316_v32  ;;  %v5335_v34 = vpop.f32.mrb[11].mxu1  ;;  %v1329_v37 = vsel %vm1091_vm4, %v1324_v30, -inf }
 0x7e8   :  { %1330 = vmax.xlane.f32.xlu1 %v1329_v37 }
 0x7e9   :  { %v1325_v39 = vadd.f32 %v1322_v33, %v7932_v13 }
 0x7ea   :  { %1327 = vmax.xlane.f32.xlu0 %v1326_v38 }
 0x7eb   :  { %v1332_v41 = vsel %vm1091_vm4, %v1325_v39, -inf }
 0x7ee   :  { %1333 = vmax.xlane.f32.xlu0 %v1332_v41 }
 0x86b   :  { %v1094_v42 = vpop.xlane.xlu1 %1093 }
 0x86c   :  { %v1101_v45 = vsub.f32 %v1088_v3, %v1094_v42 }
 0x86e   :  { %v1104_v46 = vmul.f32 1.442695, %v1101_v45 }
 0x86f   :  { %v1097_v47 = vpop.xlane.xlu0 %1096 }
 0x870   :  { %6171 = vpow2.f32 %v1104_v46  ;;  %v1102_v52 = vsub.f32 %v1089_v11, %v1097_v47  ;;  %v1214_v46 = vld [vmem:[%s8633_s26] sm:$0xff]  ;;  %v1215_v47 = vld [vmem:[%s8633_s26 + $0x8] sm:$0xff] }
 0x872   :  { %v1106_v60 = vmul.f32 1.442695, %v1102_v52 }
 0x873   :  { %v1100_v48 = vpop.xlane.xlu0 %1099 }
 0x874   :  { %v1103_v49 = vsub.f32 %v1090_v28, %v1100_v48 }
 0x875   :  { %v1331_v51 = vpop.xlane.xlu1 %1330 }
 0x876   :  { %v1336_v53 = vsub.f32 %v1324_v30, %v1331_v51  ;;  %v1108_v54 = vmul.f32 1.442695, %v1103_v49  ;;  %v5866_v49 = vpack.c.bf16 %v1215_v47, %v1214_v46 }
 0x877   :  { %v1328_v55 = vpop.xlane.xlu0 %1327 }
 0x878   :  { %v1340_v56 = vmul.f32 1.442695, %v1336_v53  ;;  %v1335_v58 = vsub.f32 %v1323_v31, %v1328_v55 }
 0x87a   :  { %v6172_v59 = vpop.eup %6171  ;;  %6173 = vpow2.f32 %v1340_v56  ;;  %v1338_v61 = vmul.f32 1.442695, %v1335_v58  ;;  %v1460_v56 = vld [vmem:[%s8633_s26 + $0x10] sm:$0xff]  ;;  %v1461_v58 = vld [vmem:[%s8633_s26 + $0x18] sm:$0xff] }
 0x87b   :  { %6175 = vpow2.f32 %v1108_v54  ;;  %v1334_v63 = vpop.xlane.xlu0 %1333  ;;  %v1110_v0 = vsel %vm1091_vm4, %v6172_v59, 0.0 }
 0x87c   :  { %6177 = vpow2.f32 %v1338_v61  ;;  %v1337_v3 = vsub.f32 %v1325_v39, %v1334_v63  ;;  %1111 = vadd.xlane.f32.xlu1 %v1110_v0 }
 0x87d   :  { %6179 = vpow2.f32 %v1106_v60 }
 0x87e   :  { %v1342_v4 = vmul.f32 1.442695, %v1337_v3 }
 0x880   :  { %6181 = vpow2.f32 %v1342_v4 }
 0x884   :  { %v7944_v6 = vpop.eup %6173 }
 0x885   :  { %v6176_v7 = vpop.eup %6175  ;;  %v1347_v8 = vsel %vm1091_vm4, %v7944_v6, 0.0 }
 0x886   :  { %v6178_v9 = vpop.eup %6177  ;;  %1348 = vadd.xlane.f32.xlu1 %v1347_v8  ;;  %v1116_v12 = vsel %vm1091_vm4, %v6176_v7, 0.0 }
 0x887   :  { %v1344_v10 = vsel %vm1091_vm4, %v6178_v9, 0.0  ;;  %v6180_v11 = vpop.eup %6179 }
 0x888   :  { %1345 = vadd.xlane.f32.xlu0 %v1344_v10  ;;  %v1113_v15 = vsel %vm1091_vm4, %v6180_v11, 0.0 }
 0x88a   :  { %1117 = vadd.xlane.f32.xlu1 %v1116_v12  ;;  %v6182_v17 = vpop.eup %6181 }
 0x88b   :  { %v1350_v18 = vsel %vm1091_vm4, %v6182_v17, 0.0 }
 0x88c   :  { %1114 = vadd.xlane.f32.xlu0 %v1113_v15 }
 0x890   :  { %1351 = vadd.xlane.f32.xlu0 %v1350_v18 }
 0x89b   :  { %6141 = vrot.lane.b32.xlu1 %v7869_v43, %s7282_s20 }
 0x89f   :  { %6146 = vrot.lane.b32.xlu1 %v7867_v40, %s7284_s16 }
 0x8a3   :  { %1650 = vrot.lane.b32.xlu1 %v7871_v44, %s7284_s16 }
 0x8a6   :  { %1366 = vrot.lane.b32.xlu0 %v7902_v57, %s7282_s20 }
 0x8a7   :  { %1640 = vrot.lane.b32.xlu1 %v7861_v35, %s7285_s23 }
 0x8aa   :  { %1642 = vrot.lane.b32.xlu0 %v7863_v36, %s7285_s23 }
 0x8ab   :  { %1644 = vrot.lane.b32.xlu1 %v7871_v44, %s7285_s23 }
 0x909   :  { %v1112_v20 = vpop.xlane.xlu1 %1111 }
 0x90a   :  { %6183 = vrcp.f32 %v1112_v20 }
 0x913   :  { %v1349_v22 = vpop.xlane.xlu1 %1348 }
 0x914   :  { %v6184_v25 = vpop.eup %6183 }
 0x915   :  { %v1122_v26 = vmul.f32 %v6184_v25, %v6172_v59  ;;  %v1346_v28 = vpop.xlane.xlu0 %1345  ;;  %v5863_v59 = vpack.c.bf16 %v1461_v58, %v1460_v56 }
 0x917   :  { %5313 = vmatmul.mubr.msk.f32.vlgmr.msra.gmra.mrb[12].mxu0 %vm1091_vm4, %v1122_v26  ;;  %v1118_v29 = vpop.xlane.xlu1 %1117  ;;  %5864 = vmatpush3.bf16.msra.mxu1 %v5863_v59 }
 0x918   :  { %5315 = vmatprep.mubr.msk.f32.mxu0 %vm7279_vm0, %v7280_v2  ;;  %5868 = vmatprep.subr.bf16.mxu1 %v7278_v1 }
 0x919   :  { %v1115_v30 = vpop.xlane.xlu0 %1114 }
 0x91a   :  { %6185 = vrcp.f32 %v1115_v30 }
 0x91b   :  { %v6142_v31 = vpop.permute.xlu1 %6141  ;;  %6187 = vrcp.f32 %v1118_v29 }
 0x91c   :  { %v6144_v32 = vunpack.i.h.bf16 %v6142_v31  ;;  %v6143_v33 = vunpack.i.l.bf16 %v6142_v31  ;;  %6189 = vrcp.f32 %v1346_v28 }
 0x91d   :  { %v1352_v34 = vpop.xlane.xlu0 %1351  ;;  %6191 = vrcp.f32 %v1349_v22 }
 0x91e   :  { %v5860_v37 = vpack.c.bf16 %v6144_v32, %v6143_v33  ;;  %6193 = vrcp.f32 %v1352_v34 }
 0x91f   :  { %v6147_v0 = vpop.permute.xlu1 %6146 }
 0x920   :  { %5861 = vmatpush3.bf16.msra.mxu0 %v5860_v37  ;;  %v6149_v4 = vunpack.i.h.bf16 %v6147_v0 }
 0x921   :  { %5340 = vmatprep.subr.mxu0 %v7280_v2  ;;  %v1367_v38 = vpop.permute.xlu0 %1366 }
 0x924   :  { %v6186_v39 = vpop.eup %6185  ;;  %5341 = vmatpush3.msra.mxu0 %v1367_v38 }
 0x925   :  { %v1123_v41 = vmul.f32 %v6186_v39, %v6180_v11  ;;  %5865 = vmatprep.subr.bf16.mxu0 %v7278_v1  ;;  %v6188_v42 = vpop.eup %6187  ;;  %v1643_v25 = vpop.permute.xlu0 %1642 }
 0x926   :  { %v1124_v45 = vmul.f32 %v6188_v42, %v6176_v7  ;;  %v6190_v48 = vpop.eup %6189 }
 0x927   :  { %5316 = vmatmul.mubr.msk.f32.gmra.mrb[14].mxu0 %vm1091_vm4, %v1123_v41  ;;  %v1356_v51 = vmul.f32 %v6190_v48, %v6178_v9  ;;  %v6192_v52 = vpop.eup %6191 }
 0x928   :  { %5318 = vmatprep.mubr.msk.f32.mxu0 %vm7279_vm0, %v7280_v2  ;;  %v1357_v53 = vmul.f32 %v6192_v52, %v7944_v6  ;;  %v6194_v54 = vpop.eup %6193  ;;  %v6148_v6 = vunpack.i.l.bf16 %v6147_v0 }
 0x929   :  { %v1358_v55 = vmul.f32 %v6194_v54, %v6182_v17  ;;  %v1651_v17 = vpop.permute.xlu1 %1650 }
 0x92a   :  { %v5869_v9 = vpack.c.bf16 %v6149_v4, %v6148_v6 }
 0x92b   :  { %5319 = vmatmul.mubr.msk.f32.gmra.mrb[16].mxu0 %vm1091_vm4, %v1124_v45 }
 0x92c   :  { %5342 = vmatprep.mubr.msk.f32.mxu0 %vm7279_vm0, %v7280_v2 }
 0x92d   :  { %v1641_v22 = vpop.permute.xlu1 %1640 }
 0x92f   :  { %5343 = vmatmul.mubr.msk.f32.vlgmr.msra.gmra.mrb[18].mxu0 %vm1091_vm4, %v1356_v51 }
 0x930   :  { %5345 = vmatprep.mubr.msk.f32.mxu0 %vm7279_vm0, %v7280_v2  ;;  %5867 = vmatpush3.bf16.msra.mxu0 %v5866_v49 }
 0x931   :  { %5872 = vmatprep.subr.bf16.mxu0 %v7278_v1  ;;  %v1645_v26 = vpop.permute.xlu1 %1644 }
 0x933   :  { %5346 = vmatmul.mubr.msk.f32.gmra.mrb[20].mxu0 %vm1091_vm4, %v1357_v53 }
 0x934   :  { %5348 = vmatprep.mubr.msk.f32.mxu0 %vm7279_vm0, %v7280_v2 }
 0x937   :  { %5349 = vmatmul.mubr.msk.f32.gmra.mrb[22].mxu0 %vm1091_vm4, %v1358_v55 }
 0x938   :  { %5368 = vmatprep.mubr.msk.f32.mxu0 %vm7279_vm0, %v7280_v2 }
 0x9ea   :  { %v1200_v60 = vpop.f32.mrb[12].mxu0 }
 0x9eb   :  { %v5314_v61 = vpop.f32.mrb[13].mxu0  ;;  %5369 = vmatmul.mubr.msk.f32.vlgmr.msra.gmra.mrb[24].mxu0 %vm710_vm1, %v1200_v60 }
 0x9ec   :  { %5371 = vmatprep.mubr.msk.f32.mxu0 %vm7279_vm0, %v7280_v2 }
 0x9fa   :  { %v1205_v63 = vpop.f32.mrb[14].mxu0 }
 0x9fb   :  { %v5317_v3 = vpop.f32.mrb[15].mxu0  ;;  %5372 = vmatmul.mubr.msk.f32.gmra.mrb[26].mxu0 %vm710_vm1, %v1205_v63 }
 0x9fc   :  { %5374 = vmatprep.mubr.msk.f32.mxu0 %vm7279_vm0, %v7280_v2 }
 0x9fe   :  { %v1210_v7 = vpop.f32.mrb[16].mxu0 }
 0x9ff   :  { %v5320_v8 = vpop.f32.mrb[17].mxu0  ;;  %5375 = vmatmul.mubr.msk.f32.gmra.mrb[28].mxu0 %vm710_vm1, %v1210_v7 }
 0xa00   :  { %5398 = vmatprep.mubr.msk.f32.mxu0 %vm7279_vm0, %v7280_v2 }
 0xa02   :  { %v1446_v10 = vpop.f32.mrb[18].mxu0 }
 0xa03   :  { %v5344_v11 = vpop.f32.mrb[19].mxu0  ;;  %5356 = vmatmul.mubr.msk.f32.vlgmr.msra.gmra.mrb[12].mxu1 %vm710_vm1, %v1446_v10 }
 0xa04   :  { %5871 = vmatpush3.bf16.xpose.msk.msra.mxu1 %vm7885_vm3, %v5869_v9  ;;  %5358 = vmatprep.mubr.msk.f32.mxu1 %vm7279_vm0, %v7280_v2 }
 0xa05   :  { %5381 = vmatprep.subr.mxu1 %v7280_v2 }
 0xa06   :  { %v1451_v12 = vpop.f32.mrb[20].mxu0 }
 0xa07   :  { %v5347_v15 = vpop.f32.mrb[21].mxu0  ;;  %5359 = vmatmul.mubr.msk.f32.gmra.mrb[14].mxu1 %vm710_vm1, %v1451_v12 }
 0xa08   :  { %5361 = vmatprep.mubr.msk.f32.mxu1 %vm7279_vm0, %v7280_v2 }
 0xa0a   :  { %v1456_v18 = vpop.f32.mrb[22].mxu0 }
 0xa0b   :  { %v5350_v20 = vpop.f32.mrb[23].mxu0  ;;  %5362 = vmatmul.mubr.msk.f32.gmra.mrb[16].mxu1 %vm710_vm1, %v1456_v18 }
 0xa0c   :  { %5382 = vmatpush3.xpose.msk.msra.mxu1 %vm710_vm1, %v1651_v17  ;;  %5383 = vmatprep.mubr.msk.f32.mxu1 %vm7279_vm0, %v7280_v2 }
 0xa0d   :  { %5875 = vmatprep.subr.bf16.mxu1 %v7278_v1 }
 0xa0f   :  { %5384 = vmatmul.mubr.msk.f32.vlgmr.msra.gmra.mrb[18].mxu1 %vm710_vm1, %v1641_v22 }
 0xa10   :  { %5386 = vmatprep.mubr.msk.f32.mxu1 %vm7279_vm0, %v7280_v2 }
 0xa13   :  { %5387 = vmatmul.mubr.msk.f32.gmra.mrb[20].mxu1 %vm710_vm1, %v1643_v25 }
 0xa14   :  { %5389 = vmatprep.mubr.msk.f32.mxu1 %vm7279_vm0, %v7280_v2 }
 0xa17   :  { %5390 = vmatmul.mubr.msk.f32.gmra.mrb[22].mxu1 %vm710_vm1, %v1645_v26  ;;  %v1881_v26 = vld [vmem:[%s8633_s26 + $0x20] sm:$0xff] }
 0xa18   :  { %5411 = vmatprep.mubr.msk.f32.mxu1 %vm7279_vm0, %v7280_v2 }
 0xabe   :  { %v1626_v28 = vpop.f32.mrb[24].mxu0 }
 0xabf   :  { %v5370_v29 = vpop.f32.mrb[25].mxu0 }
 0xace   :  { %v1631_v30 = vpop.f32.mrb[26].mxu0 }
 0xacf   :  { %v5373_v31 = vpop.f32.mrb[27].mxu0 }
 0xad2   :  { %v1636_v32 = vpop.f32.mrb[28].mxu0 }
 0xad3   :  { %v5376_v33 = vpop.f32.mrb[29].mxu0 }
 0xad6   :  { %v1537_v34 = vpop.f32.mrb[12].mxu1 }
 0xad7   :  { %v8023_v37 = vadd.f32 %v1626_v28, %v1537_v34  ;;  %v5357_v38 = vpop.f32.mrb[13].mxu1  ;;  %v1882_v28 = vld [vmem:[%s8633_s26 + $0x28] sm:$0xff] }
 0xad8   :  { %v5876_v29 = vpack.c.bf16 %v1882_v28, %v1881_v26 }
 0xada   :  { %v1542_v39 = vpop.f32.mrb[14].mxu1  ;;  %5877 = vmatpush3.bf16.msra.mxu1 %v5876_v29 }
 0xadb   :  { %v8025_v41 = vadd.f32 %v1631_v30, %v1542_v39  ;;  %v5360_v42 = vpop.f32.mrb[15].mxu1  ;;  %5882 = vmatprep.subr.bf16.mxu1 %v7278_v1 }
 0xade   :  { %v1547_v45 = vpop.f32.mrb[16].mxu1 }
 0xadf   :  { %v8027_v46 = vadd.f32 %v1636_v32, %v1547_v45  ;;  %v5363_v47 = vpop.f32.mrb[17].mxu1 }
 0xae2   :  { %v1730_v48 = vpop.f32.mrb[18].mxu1 }
 0xae3   :  { %v1744_v49 = vmul.f32 0.25, %v1730_v48  ;;  %v5385_v51 = vpop.f32.mrb[19].mxu1 }
 0xae5   :  { %v1747_v52 = vadd.f32 %v1744_v49, %v7925_v62 }
 0xae6   :  { %v1735_v53 = vpop.f32.mrb[20].mxu1 }
 0xae7   :  { %v1745_v54 = vmul.f32 0.25, %v1735_v53  ;;  %v5388_v55 = vpop.f32.mrb[21].mxu1  ;;  %v1750_v56 = vsel %vm1091_vm4, %v1747_v52, -inf }
 0xae8   :  { %1751 = vmax.xlane.f32.xlu0 %v1750_v56 }
 0xae9   :  { %v1748_v58 = vadd.f32 %v1745_v54, %v7928_v5 }
 0xaea   :  { %v1740_v59 = vpop.f32.mrb[22].mxu1 }
 0xaeb   :  { %v1746_v60 = vmul.f32 0.25, %v1740_v59  ;;  %v5391_v61 = vpop.f32.mrb[23].mxu1  ;;  %v1753_v63 = vsel %vm1091_vm4, %v1748_v58, -inf }
 0xaec   :  { %1754 = vmax.xlane.f32.xlu1 %v1753_v63 }
 0xaed   :  { %v1749_v0 = vadd.f32 %v1746_v60, %v7932_v13 }
 0xaef   :  { %v1756_v3 = vsel %vm1091_vm4, %v1749_v0, -inf }
 0xaf0   :  { %1757 = vmax.xlane.f32.xlu0 %v1756_v3 }
 0xafd   :  { %1787 = vrot.lane.b32.xlu1 %v7902_v57, %s7285_s23 }
 0xb01   :  { %6156 = vrot.lane.b32.xlu1 %v7867_v40, %s7286_s18 }
 0xb05   :  { %1985 = vrot.lane.b32.xlu1 %v7871_v44, %s7286_s18 }
 0xb75   :  { %v1752_v4 = vpop.xlane.xlu0 %1751 }
 0xb76   :  { %v1759_v6 = vsub.f32 %v1747_v52, %v1752_v4 }
 0xb78   :  { %v1762_v7 = vmul.f32 1.442695, %v1759_v6 }
 0xb79   :  { %v1755_v8 = vpop.xlane.xlu1 %1754 }
 0xb7a   :  { %6195 = vpow2.f32 %v1762_v7  ;;  %v1760_v9 = vsub.f32 %v1748_v58, %v1755_v8 }
 0xb7c   :  { %v1764_v10 = vmul.f32 1.442695, %v1760_v9 }
 0xb7d   :  { %v1758_v11 = vpop.xlane.xlu0 %1757  ;;  %v1788_v30 = vpop.permute.xlu1 %1787 }
 0xb7e   :  { %6197 = vpow2.f32 %v1764_v10  ;;  %v1761_v12 = vsub.f32 %v1749_v0, %v1758_v11 }
 0xb80   :  { %v1766_v15 = vmul.f32 1.442695, %v1761_v12 }
 0xb81   :  { %v6157_v31 = vpop.permute.xlu1 %6156 }
 0xb82   :  { %6199 = vpow2.f32 %v1766_v15  ;;  %v6159_v48 = vunpack.i.h.bf16 %v6157_v31  ;;  %v6158_v49 = vunpack.i.l.bf16 %v6157_v31 }
 0xb84   :  { %v6196_v17 = vpop.eup %6195  ;;  %v5879_v53 = vpack.c.bf16 %v6159_v48, %v6158_v49 }
 0xb85   :  { %v1768_v18 = vsel %vm1091_vm4, %v6196_v17, 0.0 }
 0xb86   :  { %1769 = vadd.xlane.f32.xlu0 %v1768_v18 }
 0xb88   :  { %v6198_v40 = vpop.eup %6197 }
 0xb89   :  { %v1771_v20 = vsel %vm1091_vm4, %v6198_v40, 0.0 }
 0xb8a   :  { %1772 = vadd.xlane.f32.xlu0 %v1771_v20 }
 0xb8c   :  { %v6200_v22 = vpop.eup %6199 }
 0xb8d   :  { %v1774_v25 = vsel %vm1091_vm4, %v6200_v22, 0.0 }
 0xb8e   :  { %1775 = vadd.xlane.f32.xlu1 %v1774_v25 }
 0xb9f   :  { %1977 = vrot.lane.b32.xlu1 %v7863_v36, %s7287_s29  ;;  %v1986_v36 = vpop.permute.xlu1 %1985 }
 0xba0   :  { %6151 = vrot.lane.b32.xlu0 %v7869_v43, %s7285_s23 }
 0xba4   :  { %1975 = vrot.lane.b32.xlu0 %v7861_v35, %s7287_s29 }
 0xba8   :  { %1979 = vrot.lane.b32.xlu0 %v7871_v44, %s7287_s29 }
 0xc13   :  { %v1770_v32 = vpop.xlane.xlu0 %1769 }
 0xc14   :  { %6201 = vrcp.f32 %v1770_v32 }
 0xc17   :  { %v1773_v33 = vpop.xlane.xlu0 %1772 }
 0xc18   :  { %6203 = vrcp.f32 %v1773_v33 }
 0xc1b   :  { %v1776_v34 = vpop.xlane.xlu1 %1775  ;;  %v6152_v38 = vpop.permute.xlu0 %6151 }
 0xc1c   :  { %v6154_v39 = vunpack.i.h.bf16 %v6152_v38  ;;  %v6153_v35 = vunpack.i.l.bf16 %v6152_v38  ;;  %6205 = vrcp.f32 %v1776_v34 }
 0xc1e   :  { %v5873_v42 = vpack.c.bf16 %v6154_v39, %v6153_v35  ;;  %v6202_v44 = vpop.eup %6201 }
 0xc1f   :  { %v1780_v45 = vmul.f32 %v6202_v44, %v6196_v17  ;;  %v1976_v55 = vpop.permute.xlu0 %1975  ;;  %v1978_v50 = vpop.permute.xlu1 %1977 }
 0xc20   :  { %5874 = vmatpush3.bf16.msra.mxu0 %v5873_v42 }
 0xc21   :  { %5396 = vmatprep.subr.mxu0 %v7280_v2 }
 0xc22   :  { %v6204_v47 = vpop.eup %6203 }
 0xc23   :  { %v1781_v51 = vmul.f32 %v6204_v47, %v6198_v40  ;;  %v1980_v56 = vpop.permute.xlu0 %1979 }
 0xc24   :  { %5397 = vmatpush3.msra.mxu0 %v1788_v30 }
 0xc25   :  { %5399 = vmatmul.mubr.msk.f32.vlgmr.msra.gmra.mrb[30].mxu0 %vm1091_vm4, %v1780_v45  ;;  %5878 = vmatprep.subr.bf16.mxu0 %v7278_v1 }
 0xc26   :  { %5401 = vmatprep.mubr.msk.f32.mxu0 %vm7279_vm0, %v7280_v2  ;;  %v6206_v52 = vpop.eup %6205 }
 0xc27   :  { %v1782_v54 = vmul.f32 %v6206_v52, %v6200_v22  ;;  %v2217_v52 = vld [vmem:[%s8633_s26 + $0x38] sm:$0xff] }
 0xc29   :  { %5402 = vmatmul.mubr.msk.f32.gmra.mrb[32].mxu0 %vm1091_vm4, %v1781_v51  ;;  %v2216_v51 = vld [vmem:[%s8633_s26 + $0x30] sm:$0xff] }
 0xc2a   :  { %5404 = vmatprep.mubr.msk.f32.mxu0 %vm7279_vm0, %v7280_v2 }
 0xc2b   :  { %5881 = vmatpush3.bf16.xpose.msk.msra.mxu0 %vm7885_vm3, %v5879_v53 }
 0xc2c   :  { %5424 = vmatprep.subr.mxu0 %v7280_v2 }
 0xc2d   :  { %5405 = vmatmul.mubr.msk.f32.gmra.mrb[34].mxu0 %vm1091_vm4, %v1782_v54 }
 0xc2e   :  { %5426 = vmatprep.mubr.msk.f32.mxu0 %vm7279_vm0, %v7280_v2 }
 0xc33   :  { %5425 = vmatpush3.xpose.msk.msra.mxu0 %vm710_vm1, %v1986_v36 }
 0xc34   :  { %5885 = vmatprep.subr.bf16.mxu0 %v7278_v1 }
 0xc36   :  { %5427 = vmatmul.mubr.msk.f32.vlgmr.msra.gmra.mrb[36].mxu0 %vm710_vm1, %v1976_v55  ;;  %v5886_v55 = vpack.c.bf16 %v2217_v52, %v2216_v51  ;;  %v2384_v52 = vld [vmem:[%s8634_s4 + $0x10] sm:$0xff] }
 0xc37   :  { %5429 = vmatprep.mubr.msk.f32.mxu0 %vm7279_vm0, %v7280_v2 }
 0xc38   :  { %5887 = vmatpush3.bf16.msra.mxu0 %v5886_v55  ;;  %v2386_v55 = vld [vmem:[%s8634_s4 + $0x20] sm:$0xff] }
 0xc39   :  { %5900 = vmatprep.subr.bf16.mxu0 %v7278_v1 }
 0xc3a   :  { %5430 = vmatmul.mubr.msk.f32.gmra.mrb[38].mxu0 %vm710_vm1, %v1978_v50 }
 0xc3b   :  { %5432 = vmatprep.mubr.msk.f32.mxu0 %vm7279_vm0, %v7280_v2 }
 0xc3e   :  { %5433 = vmatmul.mubr.msk.f32.gmra.mrb[40].mxu0 %vm710_vm1, %v1980_v56 }
 0xc3f   :  { %5454 = vmatprep.mubr.msk.f32.mxu0 %vm7279_vm0, %v7280_v2 }
 0xcf8   :  { %v1867_v58 = vpop.f32.mrb[30].mxu0 }
 0xcf9   :  { %v5400_v59 = vpop.f32.mrb[31].mxu0  ;;  %5412 = vmatmul.mubr.msk.f32.vlgmr.msra.gmra.mrb[24].mxu1 %vm710_vm1, %v1867_v58 }
 0xcfa   :  { %5414 = vmatprep.mubr.msk.f32.mxu1 %vm7279_vm0, %v7280_v2 }
 0xcfc   :  { %v1872_v60 = vpop.f32.mrb[32].mxu0 }
 0xcfd   :  { %v5403_v61 = vpop.f32.mrb[33].mxu0  ;;  %5415 = vmatmul.mubr.msk.f32.gmra.mrb[26].mxu1 %vm710_vm1, %v1872_v60 }
 0xcfe   :  { %5417 = vmatprep.mubr.msk.f32.mxu1 %vm7279_vm0, %v7280_v2 }
 0xd00   :  { %v1877_v63 = vpop.f32.mrb[34].mxu0 }
 0xd01   :  { %v5406_v0 = vpop.f32.mrb[35].mxu0  ;;  %5418 = vmatmul.mubr.msk.f32.gmra.mrb[28].mxu1 %vm710_vm1, %v1877_v63 }
 0xd02   :  { %5441 = vmatprep.mubr.msk.f32.mxu1 %vm7279_vm0, %v7280_v2 }
 0xd09   :  { %v2065_v3 = vpop.f32.mrb[36].mxu0 }
 0xd0a   :  { %v2079_v4 = vmul.f32 0.25, %v2065_v3  ;;  %v5428_v6 = vpop.f32.mrb[37].mxu0 }
 0xd0c   :  { %v2082_v7 = vadd.f32 %v2079_v4, %v7925_v62 }
 0xd0d   :  { %v2070_v8 = vpop.f32.mrb[38].mxu0 }
 0xd0e   :  { %v2080_v9 = vmul.f32 0.25, %v2070_v8  ;;  %v5431_v10 = vpop.f32.mrb[39].mxu0  ;;  %v2085_v11 = vsel %vm1091_vm4, %v2082_v7, -inf }
 0xd0f   :  { %2086 = vmax.xlane.f32.xlu1 %v2085_v11 }
 0xd10   :  { %v2083_v12 = vadd.f32 %v2080_v9, %v7928_v5 }
 0xd11   :  { %v2075_v15 = vpop.f32.mrb[40].mxu0 }
 0xd12   :  { %v2081_v17 = vmul.f32 0.25, %v2075_v15  ;;  %v5434_v18 = vpop.f32.mrb[41].mxu0  ;;  %v2088_v40 = vsel %vm1091_vm4, %v2083_v12, -inf }
 0xd13   :  { %2089 = vmax.xlane.f32.xlu0 %v2088_v40 }
 0xd14   :  { %v2084_v20 = vadd.f32 %v2081_v17, %v7932_v13 }
 0xd16   :  { %v2091_v22 = vsel %vm1091_vm4, %v2084_v20, -inf }
 0xd17   :  { %2092 = vmax.xlane.f32.xlu0 %v2091_v22 }
 0xd9c   :  { %v2087_v62 = vpop.xlane.xlu1 %2086 }
 0xd9d   :  { %v2094_v25 = vsub.f32 %v2082_v7, %v2087_v62 }
 0xd9f   :  { %v2097_v26 = vmul.f32 1.442695, %v2094_v25 }
 0xda0   :  { %v2090_v28 = vpop.xlane.xlu0 %2089 }
 0xda1   :  { %6207 = vpow2.f32 %v2097_v26  ;;  %v2095_v29 = vsub.f32 %v2083_v12, %v2090_v28  ;;  %v4959_v12 = vld [vmem:[#allocation16] ss:$0 sm:$0xff] }
 0xda3   :  { %v2099_v30 = vmul.f32 1.442695, %v2095_v29 }
 0xda4   :  { %v2093_v31 = vpop.xlane.xlu0 %2092 }
 0xda5   :  { %6209 = vpow2.f32 %v2099_v30  ;;  %v2096_v5 = vsub.f32 %v2084_v20, %v2093_v31 }
 0xda7   :  { %v2101_v32 = vmul.f32 1.442695, %v2096_v5 }
 0xda9   :  { %6211 = vpow2.f32 %v2101_v32 }
 0xdab   :  { %v6208_v36 = vpop.eup %6207 }
 0xdac   :  { %v2103_v33 = vsel %vm1091_vm4, %v6208_v36, 0.0 }
 0xdad   :  { %2104 = vadd.xlane.f32.xlu0 %v2103_v33 }
 0xdaf   :  { %v6210_v13 = vpop.eup %6209 }
 0xdb0   :  { %v2106_v34 = vsel %vm1091_vm4, %v6210_v13, 0.0 }
 0xdb1   :  { %2107 = vadd.xlane.f32.xlu1 %v2106_v34 }
 0xdb3   :  { %v6212_v38 = vpop.eup %6211 }
 0xdb4   :  { %v2109_v39 = vsel %vm1091_vm4, %v6212_v38, 0.0 }
 0xdb5   :  { %2110 = vadd.xlane.f32.xlu0 %v2109_v39 }
 0xdc2   :  { %6161 = vrot.lane.b32.xlu1 %v7869_v43, %s7287_s29 }
 0xdcb   :  { %2122 = vrot.lane.b32.xlu0 %v7902_v57, %s7287_s29 }
 0xdcc   :  { %v1958_v35 = vpop.f32.mrb[24].mxu1 }
 0xdcd   :  { %v1972_v42 = vadd.f32 %v1958_v35, %v8023_v37  ;;  %v5413_v44 = vpop.f32.mrb[25].mxu1 }
 0xdd0   :  { %v1963_v45 = vpop.f32.mrb[26].mxu1 }
 0xdd1   :  { %v1973_v47 = vadd.f32 %v1963_v45, %v8025_v41  ;;  %v5416_v48 = vpop.f32.mrb[27].mxu1 }
 0xdd2   :  { %v2382_v48 = vld [vmem:[%s8634_s4] sm:$0xff] }
 0xdd4   :  { %v1968_v49 = vpop.f32.mrb[28].mxu1 }
 0xdd5   :  { %v1974_v53 = vadd.f32 %v1968_v49, %v8027_v46  ;;  %v5419_v54 = vpop.f32.mrb[29].mxu1  ;;  %v2383_v49 = vld [vmem:[%s8634_s4 + $0x8] sm:$0xff] }
 0xdd6   :  { %v5889_v51 = vpack.c.bf16 %v2383_v49, %v2382_v48 }
 0xe3a   :  { %v2105_v43 = vpop.xlane.xlu0 %2104 }
 0xe3b   :  { %6213 = vrcp.f32 %v2105_v43  ;;  %v2387_v43 = vld [vmem:[%s8634_s4 + $0x28] sm:$0xff] }
 0xe3e   :  { %v2108_v57 = vpop.xlane.xlu1 %2107 }
 0xe3f   :  { %6215 = vrcp.f32 %v2108_v57  ;;  %v5895_v57 = vpack.c.bf16 %v2387_v43, %v2386_v55 }
 0xe42   :  { %v6162_v37 = vpop.permute.xlu1 %6161  ;;  %v2111_v50 = vpop.xlane.xlu0 %2110 }
 0xe43   :  { %v6164_v56 = vunpack.i.h.bf16 %v6162_v37  ;;  %v6163_v58 = vunpack.i.l.bf16 %v6162_v37  ;;  %6217 = vrcp.f32 %v2111_v50  ;;  %v2388_v37 = vld [vmem:[%s8634_s4 + $0x30] sm:$0xff]  ;;  %v2389_v50 = vld [vmem:[%s8634_s4 + $0x38] sm:$0xff] }
 0xe45   :  { %v5883_v41 = vpack.c.bf16 %v6164_v56, %v6163_v58  ;;  %v6214_v59 = vpop.eup %6213  ;;  %v5898_v56 = vpack.c.bf16 %v2389_v50, %v2388_v37 }
 0xe46   :  { %v2115_v46 = vmul.f32 %v6214_v59, %v6208_v36  ;;  %v2123_v60 = vpop.permute.xlu0 %2122 }
 0xe47   :  { %5884 = vmatpush3.bf16.msra.mxu1 %v5883_v41 }
 0xe48   :  { %5439 = vmatprep.subr.mxu1 %v7280_v2 }
 0xe49   :  { %v6216_v61 = vpop.eup %6215 }
 0xe4a   :  { %v2116_v63 = vmul.f32 %v6216_v61, %v6210_v13 }
 0xe4b   :  { %5440 = vmatpush3.msra.mxu1 %v2123_v60 }
 0xe4c   :  { %5442 = vmatmul.mubr.msk.f32.vlgmr.msra.gmra.mrb[30].mxu1 %vm1091_vm4, %v2115_v46  ;;  %5888 = vmatprep.subr.bf16.mxu1 %v7278_v1 }
 0xe4d   :  { %5444 = vmatprep.mubr.msk.f32.mxu1 %vm7279_vm0, %v7280_v2  ;;  %v6218_v0 = vpop.eup %6217  ;;  %5890 = vmatpush3.bf16.msra.mxu1 %v5889_v51 }
 0xe4e   :  { %v2117_v3 = vmul.f32 %v6218_v0, %v6212_v38  ;;  %5891 = vmatprep.subr.bf16.mxu1 %v7278_v1 }
 0xe50   :  { %5445 = vmatmul.mubr.msk.f32.gmra.mrb[32].mxu1 %vm1091_vm4, %v2116_v63 }
 0xe51   :  { %5447 = vmatprep.mubr.msk.f32.mxu1 %vm7279_vm0, %v7280_v2 }
 0xe54   :  { %5448 = vmatmul.mubr.msk.f32.gmra.mrb[34].mxu1 %vm1091_vm4, %v2117_v3 }
 0xe55   :  { %5479 = vmatprep.mubr.msk.f32.mxu1 %vm7279_vm0, %v7280_v2 }
 0xf1f   :  { %v2202_v4 = vpop.f32.mrb[30].mxu1 }
 0xf20   :  { %v5443_v6 = vpop.f32.mrb[31].mxu1  ;;  %5455 = vmatmul.mubr.msk.f32.vlgmr.msra.gmra.mrb[42].mxu0 %vm710_vm1, %v2202_v4 }
 0xf21   :  { %5457 = vmatprep.mubr.msk.f32.mxu0 %vm7279_vm0, %v7280_v2  ;;  %v4960_v6 = vld [vmem:[#allocation17] ss:$0 sm:$0xff] }
 0xf23   :  { %v2207_v7 = vpop.f32.mrb[32].mxu1 }
 0xf24   :  { %v5446_v8 = vpop.f32.mrb[33].mxu1  ;;  %5458 = vmatmul.mubr.msk.f32.gmra.mrb[44].mxu0 %vm710_vm1, %v2207_v7 }
 0xf25   :  { %5460 = vmatprep.mubr.msk.f32.mxu0 %vm7279_vm0, %v7280_v2  ;;  %v4961_v8 = vld [vmem:[#allocation19] ss:$0 sm:$0xff] }
 0xf27   :  { %v2212_v9 = vpop.f32.mrb[34].mxu1 }
 0xf28   :  { %v5449_v10 = vpop.f32.mrb[35].mxu1  ;;  %5461 = vmatmul.mubr.msk.f32.gmra.mrb[46].mxu0 %vm710_vm1, %v2212_v9 }
 0xf29   :  { %5494 = vmatprep.mubr.msk.f32.mxu0 %vm7279_vm0, %v7280_v2 }
 0xff3   :  { %v2293_v11 = vpop.f32.mrb[42].mxu0 }
 0xff4   :  { %v2307_v15 = vadd.f32 %v2293_v11, %v1972_v42  ;;  %v5456_v17 = vpop.f32.mrb[43].mxu0 }
 0xff6   :  { %v2317_v18 = vadd.f32 %v4959_v12, %v2307_v15 }
 0xff7   :  { %v2298_v40 = vpop.f32.mrb[44].mxu0 }
 0xff8   :  { %v2308_v20 = vadd.f32 %v2298_v40, %v1973_v47  ;;  %v5459_v22 = vpop.f32.mrb[45].mxu0  ;;  %v2320_v62 = vadd.f32 %v2317_v18, %v861_v16 }
 0xffa   :  { %v2318_v25 = vadd.f32 %v4959_v12, %v2308_v20  ;;  %v2325_v26 = vsel %vm802_vm2, %v2320_v62, 0.0 }
 0xffb   :  { %2326 = vadd.xlane.f32.xlu1 %v2325_v26  ;;  %v2303_v28 = vpop.f32.mrb[46].mxu0 }
 0xffc   :  { %v2309_v29 = vadd.f32 %v2303_v28, %v1974_v53  ;;  %v5462_v30 = vpop.f32.mrb[47].mxu0  ;;  %v2321_v31 = vadd.f32 %v2318_v25, %v862_v21  ;;  %v2385_v53 = vld [vmem:[%s8634_s4 + $0x18] sm:$0xff] }
 0xffd   :  { %v5892_v54 = vpack.c.bf16 %v2385_v53, %v2384_v52 }
 0xffe   :  { %v2319_v5 = vadd.f32 %v4959_v12, %v2309_v29  ;;  %v2328_v32 = vsel %vm802_vm2, %v2321_v31, 0.0 }
 0xfff   :  { %2329 = vadd.xlane.f32.xlu0 %v2328_v32  ;;  %5893 = vmatpush3.bf16.msra.mxu1 %v5892_v54  ;;  %v8176_v32 = vld [vmem:[#allocation3 + $0x8] sm:$0xff] }
0x1000   :  { %v2322_v36 = vadd.f32 %v2319_v5, %v863_v24  ;;  %5894 = vmatprep.subr.bf16.mxu1 %v7278_v1  ;;  %v8169_v5 = vld [vmem:[#allocation3] sm:$0xff] }
0x1002   :  { %v2331_v14 = vsel %vm802_vm2, %v2322_v36, 0.0 }
0x1003   :  { %2332 = vadd.xlane.f32.xlu1 %v2331_v14  ;;  %5896 = vmatpush3.bf16.msra.mxu1 %v5895_v57  ;;  %v4965_v14 = vld [vmem:[#allocation20] ss:$0 sm:$0xff] }
0x1004   :  { %5897 = vmatprep.subr.bf16.mxu1 %v7278_v1 }
0x1007   :  { %5899 = vmatpush3.bf16.msra.mxu1 %v5898_v56 }
0x1008   :  { %5903 = vmatprep.subr.bf16.mxu1 %v7278_v1 }
0x1088   :  { %v2327_v16 = vpop.xlane.xlu1 %2326 }
0x1089   :  { %v2334_v33 = vmul.f32 0.015625, %v2327_v16 }
0x108b   :  { %v2337_v13 = vsub.f32 %v2320_v62, %v2334_v33 }
0x108c   :  { %v2330_v34 = vpop.xlane.xlu0 %2329 }
0x108d   :  { %v2335_v38 = vmul.f32 0.015625, %v2330_v34  ;;  %v2340_v39 = vmul.f32 %v2337_v13, %v2337_v13 }
0x108f   :  { %v2338_v19 = vsub.f32 %v2321_v31, %v2335_v38  ;;  %v2343_v21 = vsel %vm802_vm2, %v2340_v39, 0.0 }
0x1090   :  { %2344 = vadd.xlane.f32.xlu0 %v2343_v21  ;;  %v2333_v35 = vpop.xlane.xlu1 %2332 }
0x1091   :  { %v2336_v23 = vmul.f32 0.015625, %v2333_v35  ;;  %v2341_v24 = vmul.f32 %v2338_v19, %v2338_v19 }
0x1093   :  { %v2339_v42 = vsub.f32 %v2322_v36, %v2336_v23  ;;  %v2346_v44 = vsel %vm802_vm2, %v2341_v24, 0.0  ;;  %v8182_v36 = vld [vmem:[#allocation3 + $0x10] sm:$0xff] }
0x1094   :  { %2347 = vadd.xlane.f32.xlu1 %v2346_v44 }
0x1095   :  { %v2342_v45 = vmul.f32 %v2339_v42, %v2339_v42 }
0x1097   :  { %v2349_v47 = vsel %vm802_vm2, %v2342_v45, 0.0 }
0x1098   :  { %2350 = vadd.xlane.f32.xlu0 %v2349_v47 }
0x111d   :  { %v2345_v58 = vpop.xlane.xlu0 %2344 }
0x111e   :  { %v2352_v41 = vmul.f32 0.015625, %v2345_v58  ;;  %v2637_v58 = vld [vmem:[%s8635_s22] sm:$0xff] }
0x1120   :  { %v2355_v59 = vadd.f32 1e-05, %v2352_v41  ;;  %v2638_v41 = vld [vmem:[%s8635_s22 + $0x8] sm:$0xff] }
0x1121   :  { %v2348_v46 = vpop.xlane.xlu1 %2347 }
0x1122   :  { %6219 = vrsqrt.f32 %v2355_v59  ;;  %v2353_v60 = vmul.f32 0.015625, %v2348_v46  ;;  %v5904_v59 = vpack.c.bf16 %v2638_v41, %v2637_v58  ;;  %v2639_v46 = vld [vmem:[%s8635_s22 + $0x10] sm:$0xff] }
0x1124   :  { %v2356_v61 = vadd.f32 1e-05, %v2353_v60  ;;  %v2640_v60 = vld [vmem:[%s8635_s22 + $0x18] sm:$0xff] }
0x1125   :  { %v2351_v63 = vpop.xlane.xlu0 %2350 }
0x1126   :  { %6221 = vrsqrt.f32 %v2356_v61  ;;  %v2354_v0 = vmul.f32 0.015625, %v2351_v63  ;;  %v5907_v61 = vpack.c.bf16 %v2640_v60, %v2639_v46  ;;  %v2641_v63 = vld [vmem:[%s8635_s22 + $0x20] sm:$0xff] }
0x1128   :  { %v2357_v3 = vadd.f32 1e-05, %v2354_v0  ;;  %v2642_v0 = vld [vmem:[%s8635_s22 + $0x28] sm:$0xff] }
0x112a   :  { %6223 = vrsqrt.f32 %v2357_v3  ;;  %v5910_v3 = vpack.c.bf16 %v2642_v0, %v2641_v63 }
0x112c   :  { %v6220_v4 = vpop.eup %6219 }
0x112d   :  { %v2361_v7 = vmul.f32 %v6220_v4, %v2337_v13  ;;  %v2643_v4 = vld [vmem:[%s8635_s22 + $0x30] sm:$0xff] }
0x112f   :  { %v2370_v9 = vmul.f32 %v4960_v6, %v2361_v7 }
0x1130   :  { %v6222_v10 = vpop.eup %6221 }
0x1131   :  { %v8150_v11 = vadd.f32 %v4961_v8, %v2370_v9  ;;  %v2362_v12 = vmul.f32 %v6222_v10, %v2338_v19 }
0x1133   :  { %5480 = vmatmul.mubr.msk.f32.vlgmr.msra.gmra.mrb[36].mxu1 %vm802_vm2, %v8150_v11  ;;  %v2371_v15 = vmul.f32 %v4960_v6, %v2362_v12 }
0x1134   :  { %v6224_v17 = vpop.eup %6223  ;;  %5482 = vmatprep.mubr.msk.f32.mxu1 %vm7279_vm0, %v7280_v2  ;;  %5905 = vmatpush3.bf16.msra.mxu1 %v5904_v59 }
0x1135   :  { %v8156_v18 = vadd.f32 %v4961_v8, %v2371_v15  ;;  %v2363_v40 = vmul.f32 %v6224_v17, %v2339_v42  ;;  %5906 = vmatprep.subr.bf16.mxu1 %v7278_v1 }
0x1137   :  { %5483 = vmatmul.mubr.msk.f32.gmra.mrb[38].mxu1 %vm802_vm2, %v8156_v18  ;;  %v2372_v20 = vmul.f32 %v4960_v6, %v2363_v40  ;;  %v2644_v6 = vld [vmem:[%s8635_s22 + $0x38] sm:$0xff] }
0x1138   :  { %5485 = vmatprep.mubr.msk.f32.mxu1 %vm7279_vm0, %v7280_v2  ;;  %5908 = vmatpush3.bf16.msra.mxu1 %v5907_v61  ;;  %v5913_v7 = vpack.c.bf16 %v2644_v6, %v2643_v4 }
0x1139   :  { %v8162_v22 = vadd.f32 %v4961_v8, %v2372_v20  ;;  %5909 = vmatprep.subr.bf16.mxu1 %v7278_v1 }
0x113b   :  { %5486 = vmatmul.mubr.msk.f32.gmra.mrb[40].mxu1 %vm802_vm2, %v8162_v22 }
0x113c   :  { %5519 = vmatprep.mubr.msk.f32.mxu1 %vm7279_vm0, %v7280_v2  ;;  %5911 = vmatpush3.bf16.msra.mxu1 %v5910_v3 }
0x113d   :  { %5912 = vmatprep.subr.bf16.mxu1 %v7278_v1 }
0x1140   :  { %5914 = vmatpush3.bf16.msra.mxu1 %v5913_v7 }
0x1141   :  { %5918 = vmatprep.subr.bf16.mxu1 %v7278_v1 }
0x1206   :  { %v2465_v62 = vpop.f32.mrb[36].mxu1 }
0x1207   :  { %v5481_v25 = vpop.f32.mrb[37].mxu1 }
0x120a   :  { %v2470_v26 = vpop.f32.mrb[38].mxu1 }
0x120b   :  { %v5901_v28 = vpack.c.bf16 %v2470_v26, %v2465_v62  ;;  %v5484_v29 = vpop.f32.mrb[39].mxu1  ;;  %v4969_v26 = vld [vmem:[#allocation22] ss:$0 sm:$0xff] }
0x120c   :  { %v4970_v29 = vld [vmem:[#allocation23] ss:$0 sm:$0xff] }
0x120d   :  { %5902 = vmatpush3.bf16.msra.mxu0 %v5901_v28 }
0x120e   :  { %v2475_v30 = vpop.f32.mrb[40].mxu1  ;;  %5492 = vmatprep.subr.mxu0 %v7280_v2 }
0x120f   :  { %v5487_v31 = vpop.f32.mrb[41].mxu1 }
0x1211   :  { %5493 = vmatpush3.msra.mxu0 %v2475_v30 }
0x1212   :  { %5495 = vmatmul.mubr.msk.f32.vlgmr.msra.gmra.mrb[48].mxu0 %vm1091_vm4, %v8169_v5  ;;  %5915 = vmatprep.subr.bf16.mxu0 %v7278_v1 }
0x1213   :  { %5497 = vmatprep.mubr.msk.f32.mxu0 %vm7279_vm0, %v7280_v2 }
0x1216   :  { %5498 = vmatmul.mubr.msk.f32.gmra.mrb[50].mxu0 %vm1091_vm4, %v8176_v32 }
0x1217   :  { %5500 = vmatprep.mubr.msk.f32.mxu0 %vm7279_vm0, %v7280_v2 }
0x121a   :  { %5501 = vmatmul.mubr.msk.f32.gmra.mrb[52].mxu0 %vm1091_vm4, %v8182_v36 }
0x121b   :  { %5534 = vmatprep.mubr.msk.f32.mxu0 %vm7279_vm0, %v7280_v2 }
0x12e5   :  { %v2561_v16 = vpop.f32.mrb[48].mxu0 }
0x12e6   :  { %v2562_v33 = vadd.f32 %v4965_v14, %v2561_v16  ;;  %v5496_v13 = vpop.f32.mrb[49].mxu0 }
0x12e8   :  { %v2577_v34 = vsel %vm802_vm2, %v2562_v33, 0.0 }
0x12e9   :  { %2578 = vadd.xlane.f32.xlu1 %v2577_v34  ;;  %v2566_v38 = vpop.f32.mrb[50].mxu0 }
0x12ea   :  { %v2567_v39 = vadd.f32 %v4965_v14, %v2566_v38  ;;  %v5499_v19 = vpop.f32.mrb[51].mxu0 }
0x12ec   :  { %v2580_v21 = vsel %vm802_vm2, %v2567_v39, 0.0 }
0x12ed   :  { %2581 = vadd.xlane.f32.xlu0 %v2580_v21  ;;  %v2571_v35 = vpop.f32.mrb[52].mxu0 }
0x12ee   :  { %v2572_v23 = vadd.f32 %v4965_v14, %v2571_v35  ;;  %v5502_v24 = vpop.f32.mrb[53].mxu0 }
0x12f0   :  { %v2583_v42 = vsel %vm802_vm2, %v2572_v23, 0.0 }
0x12f1   :  { %2584 = vadd.xlane.f32.xlu1 %v2583_v42 }
0x1376   :  { %v2579_v44 = vpop.xlane.xlu1 %2578 }
0x1377   :  { %v2586_v45 = vmul.f32 0.015625, %v2579_v44 }
0x1379   :  { %v2589_v47 = vsub.f32 %v2562_v33, %v2586_v45 }
0x137a   :  { %v2582_v48 = vpop.xlane.xlu0 %2581 }
0x137b   :  { %v2587_v49 = vmul.f32 0.015625, %v2582_v48  ;;  %v2592_v51 = vmul.f32 %v2589_v47, %v2589_v47 }
0x137d   :  { %v2590_v52 = vsub.f32 %v2567_v39, %v2587_v49  ;;  %v2595_v53 = vsel %vm802_vm2, %v2592_v51, 0.0  ;;  %v4974_v51 = vld [vmem:[#allocation25] ss:$0 sm:$0xff] }
0x137e   :  { %2596 = vadd.xlane.f32.xlu0 %v2595_v53  ;;  %v2585_v54 = vpop.xlane.xlu1 %2584 }
0x137f   :  { %v2588_v55 = vmul.f32 0.015625, %v2585_v54  ;;  %v2593_v43 = vmul.f32 %v2590_v52, %v2590_v52 }
0x1381   :  { %v2591_v57 = vsub.f32 %v2572_v23, %v2588_v55  ;;  %v2598_v37 = vsel %vm802_vm2, %v2593_v43, 0.0 }
0x1382   :  { %2599 = vadd.xlane.f32.xlu1 %v2598_v37 }
0x1383   :  { %v2594_v50 = vmul.f32 %v2591_v57, %v2591_v57 }
0x1385   :  { %v2601_v56 = vsel %vm802_vm2, %v2594_v50, 0.0 }
0x1386   :  { %2602 = vadd.xlane.f32.xlu0 %v2601_v56 }
0x140b   :  { %v2597_v8 = vpop.xlane.xlu0 %2596 }
0x140c   :  { %v2604_v9 = vmul.f32 0.015625, %v2597_v8 }
0x140e   :  { %v2607_v10 = vadd.f32 1e-05, %v2604_v9 }
0x140f   :  { %v2600_v12 = vpop.xlane.xlu1 %2599 }
0x1410   :  { %6225 = vrsqrt.f32 %v2607_v10  ;;  %v2605_v15 = vmul.f32 0.015625, %v2600_v12 }
0x1412   :  { %v2608_v17 = vadd.f32 1e-05, %v2605_v15 }
0x1413   :  { %v2603_v40 = vpop.xlane.xlu0 %2602 }
0x1414   :  { %6227 = vrsqrt.f32 %v2608_v17  ;;  %v2606_v20 = vmul.f32 0.015625, %v2603_v40  ;;  %v2886_v40 = vld [vmem:[#allocation29] sm:$0xff] }
0x1416   :  { %v2609_v62 = vadd.f32 1e-05, %v2606_v20  ;;  %v2887_v20 = vld [vmem:[#allocation29 + $0x8] sm:$0xff] }
0x1418   :  { %6229 = vrsqrt.f32 %v2609_v62  ;;  %v5919_v62 = vpack.c.bf16 %v2887_v20, %v2886_v40 }
0x141a   :  { %v6226_v25 = vpop.eup %6225 }
0x141b   :  { %v2613_v28 = vmul.f32 %v6226_v25, %v2589_v47  ;;  %v2888_v25 = vld [vmem:[#allocation29 + $0x10] sm:$0xff] }
0x141d   :  { %v2622_v30 = vmul.f32 %v4969_v26, %v2613_v28 }
0x141e   :  { %v6228_v31 = vpop.eup %6227 }
0x141f   :  { %v2631_v14 = vadd.f32 %v4970_v29, %v2622_v30  ;;  %v2614_v16 = vmul.f32 %v6228_v31, %v2590_v52  ;;  %v2891_v30 = vld [vmem:[#allocation29 + $0x28] sm:$0xff] }
0x1421   :  { %v2634_v33 = vmax.f32 %v2631_v14, 0.0  ;;  %v2623_v13 = vmul.f32 %v4969_v26, %v2614_v16  ;;  %v2892_v14 = vld [vmem:[#allocation29 + $0x30] sm:$0xff]  ;;  %v2893_v16 = vld [vmem:[#allocation29 + $0x38] sm:$0xff] }
0x1422   :  { %v6230_v34 = vpop.eup %6229 }
0x1423   :  { %5520 = vmatmul.mubr.msk.f32.vlgmr.msra.gmra.mrb[42].mxu1 %vm802_vm2, %v2634_v33  ;;  %v2632_v38 = vadd.f32 %v4970_v29, %v2623_v13  ;;  %v2615_v39 = vmul.f32 %v6230_v34, %v2591_v57  ;;  %v5928_v33 = vpack.c.bf16 %v2893_v16, %v2892_v14  ;;  %v8273_v14 = vld [vmem:[#allocation5] sm:$0xff] }
0x1424   :  { %5522 = vmatprep.mubr.msk.f32.mxu1 %vm7279_vm0, %v7280_v2  ;;  %5920 = vmatpush3.bf16.msra.mxu1 %v5919_v62 }
0x1425   :  { %v2635_v19 = vmax.f32 %v2632_v38, 0.0  ;;  %v2624_v21 = vmul.f32 %v4969_v26, %v2615_v39  ;;  %5921 = vmatprep.subr.bf16.mxu1 %v7278_v1  ;;  %v2889_v26 = vld [vmem:[#allocation29 + $0x18] sm:$0xff] }
0x1426   :  { %v5922_v28 = vpack.c.bf16 %v2889_v26, %v2888_v25 }
0x1427   :  { %5523 = vmatmul.mubr.msk.f32.gmra.mrb[44].mxu1 %vm802_vm2, %v2635_v19  ;;  %v2633_v35 = vadd.f32 %v4970_v29, %v2624_v21  ;;  %v2890_v29 = vld [vmem:[#allocation29 + $0x20] sm:$0xff] }
0x1428   :  { %5525 = vmatprep.mubr.msk.f32.mxu1 %vm7279_vm0, %v7280_v2  ;;  %5923 = vmatpush3.bf16.msra.mxu1 %v5922_v28  ;;  %v5925_v31 = vpack.c.bf16 %v2891_v30, %v2890_v29 }
0x1429   :  { %v2636_v23 = vmax.f32 %v2633_v35, 0.0  ;;  %5924 = vmatprep.subr.bf16.mxu1 %v7278_v1 }
0x142b   :  { %5526 = vmatmul.mubr.msk.f32.gmra.mrb[46].mxu1 %vm802_vm2, %v2636_v23 }
0x142c   :  { %5559 = vmatprep.mubr.msk.f32.mxu1 %vm7279_vm0, %v7280_v2  ;;  %5926 = vmatpush3.bf16.msra.mxu1 %v5925_v31  ;;  %v8271_v31 = vld [vmem:[#allocation5 + $0x8] sm:$0xff] }
0x142d   :  { %5927 = vmatprep.subr.bf16.mxu1 %v7278_v1 }
0x1430   :  { %5929 = vmatpush3.bf16.msra.mxu1 %v5928_v33 }
0x1431   :  { %5937 = vmatprep.subr.bf16.mxu1 %v7278_v1 }
0x14f6   :  { %v2720_v24 = vpop.f32.mrb[42].mxu1 }
0x14f7   :  { %v5521_v42 = vpop.f32.mrb[43].mxu1 }
0x14fa   :  { %v2725_v44 = vpop.f32.mrb[44].mxu1 }
0x14fb   :  { %v5916_v45 = vpack.c.bf16 %v2725_v44, %v2720_v24  ;;  %v5524_v47 = vpop.f32.mrb[45].mxu1  ;;  %v4978_v44 = vld [vmem:[#allocation26] ss:$0 sm:$0xff] }
0x14fc   :  { %v4979_v47 = vld [vmem:[#allocation28] ss:$0 sm:$0xff] }
0x14fd   :  { %5917 = vmatpush3.bf16.msra.mxu0 %v5916_v45 }
0x14fe   :  { %v2730_v48 = vpop.f32.mrb[46].mxu1  ;;  %5532 = vmatprep.subr.mxu0 %v7280_v2 }
0x14ff   :  { %v5527_v49 = vpop.f32.mrb[47].mxu1 }
0x1501   :  { %5533 = vmatpush3.msra.mxu0 %v2730_v48 }
0x1502   :  { %5535 = vmatmul.mubr.msk.f32.vlgmr.msra.gmra.mrb[54].mxu0 %vm1091_vm4, %v8169_v5  ;;  %5930 = vmatprep.subr.bf16.mxu0 %v7278_v1 }
0x1503   :  { %5537 = vmatprep.mubr.msk.f32.mxu0 %vm7279_vm0, %v7280_v2 }
0x1506   :  { %5538 = vmatmul.mubr.msk.f32.gmra.mrb[56].mxu0 %vm1091_vm4, %v8176_v32 }
0x1507   :  { %5540 = vmatprep.mubr.msk.f32.mxu0 %vm7279_vm0, %v7280_v2 }
0x150a   :  { %5541 = vmatmul.mubr.msk.f32.gmra.mrb[58].mxu0 %vm1091_vm4, %v8182_v36 }
0x150b   :  { %5574 = vmatprep.mubr.msk.f32.mxu0 %vm7279_vm0, %v7280_v2 }
0x15d5   :  { %v2807_v52 = vpop.f32.mrb[54].mxu0 }
0x15d6   :  { %v2808_v53 = vadd.f32 %v4974_v51, %v2807_v52  ;;  %v5536_v54 = vpop.f32.mrb[55].mxu0 }
0x15d8   :  { %v2823_v55 = vsel %vm802_vm2, %v2808_v53, 0.0 }
0x15d9   :  { %2824 = vadd.xlane.f32.xlu1 %v2823_v55  ;;  %v2812_v43 = vpop.f32.mrb[56].mxu0 }
0x15da   :  { %v2813_v57 = vadd.f32 %v4974_v51, %v2812_v43  ;;  %v5539_v37 = vpop.f32.mrb[57].mxu0 }
0x15dc   :  { %v2826_v50 = vsel %vm802_vm2, %v2813_v57, 0.0 }
0x15dd   :  { %2827 = vadd.xlane.f32.xlu0 %v2826_v50  ;;  %v2817_v56 = vpop.f32.mrb[58].mxu0 }
0x15de   :  { %v2818_v58 = vadd.f32 %v4974_v51, %v2817_v56  ;;  %v5542_v41 = vpop.f32.mrb[59].mxu0 }
0x15e0   :  { %v2829_v59 = vsel %vm802_vm2, %v2818_v58, 0.0 }
0x15e1   :  { %2830 = vadd.xlane.f32.xlu1 %v2829_v59 }
0x1666   :  { %v2825_v46 = vpop.xlane.xlu1 %2824 }
0x1667   :  { %v2832_v60 = vmul.f32 0.015625, %v2825_v46 }
0x1669   :  { %v2835_v61 = vsub.f32 %v2808_v53, %v2832_v60 }
0x166a   :  { %v2828_v63 = vpop.xlane.xlu0 %2827 }
0x166b   :  { %v2833_v0 = vmul.f32 0.015625, %v2828_v63  ;;  %v2838_v3 = vmul.f32 %v2835_v61, %v2835_v61 }
0x166d   :  { %v2836_v4 = vsub.f32 %v2813_v57, %v2833_v0  ;;  %v2841_v6 = vsel %vm802_vm2, %v2838_v3, 0.0 }
0x166e   :  { %2842 = vadd.xlane.f32.xlu0 %v2841_v6  ;;  %v2831_v7 = vpop.xlane.xlu1 %2830 }
0x166f   :  { %v2834_v8 = vmul.f32 0.015625, %v2831_v7  ;;  %v2839_v9 = vmul.f32 %v2836_v4, %v2836_v4 }
0x1671   :  { %v2837_v10 = vsub.f32 %v2818_v58, %v2834_v8  ;;  %v2844_v12 = vsel %vm802_vm2, %v2839_v9, 0.0 }
0x1672   :  { %2845 = vadd.xlane.f32.xlu1 %v2844_v12 }
0x1673   :  { %v2840_v15 = vmul.f32 %v2837_v10, %v2837_v10 }
0x1675   :  { %v2847_v17 = vsel %vm802_vm2, %v2840_v15, 0.0  ;;  %v3002_v15 = vld [vmem:[#allocation31] sm:$0x1] }
0x1676   :  { %2848 = vadd.xlane.f32.xlu0 %v2847_v17 }
0x16fb   :  { %v2843_v13 = vpop.xlane.xlu0 %2842 }
0x16fc   :  { %v2850_v34 = vmul.f32 0.015625, %v2843_v13 }
0x16fe   :  { %v2853_v38 = vadd.f32 1e-05, %v2850_v34 }
0x16ff   :  { %v2846_v39 = vpop.xlane.xlu1 %2845 }
0x1700   :  { %6231 = vrsqrt.f32 %v2853_v38  ;;  %v2851_v19 = vmul.f32 0.015625, %v2846_v39  ;;  %v8275_v39 = vld [vmem:[#allocation5 + $0x10] sm:$0xff] }
0x1702   :  { %v2854_v21 = vadd.f32 1e-05, %v2851_v19 }
0x1703   :  { %v2849_v35 = vpop.xlane.xlu0 %2848 }
0x1704   :  { %6233 = vrsqrt.f32 %v2854_v21  ;;  %v2852_v23 = vmul.f32 0.015625, %v2849_v35 }
0x1706   :  { %v2855_v24 = vadd.f32 1e-05, %v2852_v23 }
0x1708   :  { %6235 = vrsqrt.f32 %v2855_v24 }
0x170a   :  { %v6232_v42 = vpop.eup %6231 }
0x170b   :  { %v2859_v45 = vmul.f32 %v6232_v42, %v2835_v61 }
0x170d   :  { %v2868_v48 = vmul.f32 %v4978_v44, %v2859_v45 }
0x170e   :  { %v6234_v49 = vpop.eup %6233 }
0x170f   :  { %v2877_v51 = vadd.f32 %v4979_v47, %v2868_v48  ;;  %v2860_v52 = vmul.f32 %v6234_v49, %v2836_v4 }
0x1711   :  { %v2880_v53 = vmax.f32 %v2877_v51, 0.0  ;;  %v2869_v54 = vmul.f32 %v4978_v44, %v2860_v52 }
0x1712   :  { %v6236_v55 = vpop.eup %6235 }
0x1713   :  { %v2861_v43 = vmul.f32 %v6236_v55, %v2837_v10  ;;  %v2883_v57 = vadd.f32 %v2880_v53, %v8150_v11  ;;  %v2878_v37 = vadd.f32 %v4979_v47, %v2869_v54  ;;  %v4983_v11 = vld [vmem:[#allocation32] ss:$0 sm:$0xff] }
0x1715   :  { %5560 = vmatmul.mubr.msk.f32.vlgmr.msra.gmra.mrb[48].mxu1 %vm802_vm2, %v2883_v57  ;;  %v2881_v50 = vmax.f32 %v2878_v37, 0.0  ;;  %v2870_v56 = vmul.f32 %v4978_v44, %v2861_v43 }
0x1716   :  { %5562 = vmatprep.mubr.msk.f32.mxu1 %vm7279_vm0, %v7280_v2 }
0x1717   :  { %v2884_v58 = vadd.f32 %v2881_v50, %v8156_v18  ;;  %v2879_v41 = vadd.f32 %v4979_v47, %v2870_v56 }
0x1719   :  { %5563 = vmatmul.mubr.msk.f32.gmra.mrb[50].mxu1 %vm802_vm2, %v2884_v58  ;;  %v2882_v59 = vmax.f32 %v2879_v41, 0.0  ;;  %v3236_v41 = vld [vmem:[%s8638_s5] sm:$0xff] }
0x171a   :  { %5565 = vmatprep.mubr.msk.f32.mxu1 %vm7279_vm0, %v7280_v2 }
0x171b   :  { %v2885_v46 = vadd.f32 %v2882_v59, %v8162_v22  ;;  %v3237_v59 = vld [vmem:[%s8638_s5 + $0x8] sm:$0xff] }
0x171d   :  { %5566 = vmatmul.mubr.msk.f32.gmra.mrb[52].mxu1 %vm802_vm2, %v2885_v46  ;;  %v3238_v46 = vld [vmem:[%s8638_s5 + $0x10] sm:$0xff] }
0x171e   :  { %5608 = vmatprep.mubr.msk.f32.mxu1 %vm7279_vm0, %v7280_v2 }
0x17e8   :  { %v2969_v60 = vpop.f32.mrb[48].mxu1 }
0x17e9   :  { %v2990_v61 = vmul.f32 %v4983_v11, %v2969_v60  ;;  %v5561_v63 = vpop.f32.mrb[49].mxu1 }
0x17ea   :  { %v3240_v63 = vld [vmem:[%s8638_s5 + $0x20] sm:$0xff] }
0x17eb   :  { %v2993_v18 = vsel %vm802_vm2, %v2990_v61, 0.0 }
0x17ec   :  { %2994 = vadd.xlane.f32.xlu1 %v2993_v18  ;;  %v2974_v0 = vpop.f32.mrb[50].mxu1  ;;  %v3241_v18 = vld [vmem:[%s8638_s5 + $0x28] sm:$0xff] }
0x17ed   :  { %v2991_v22 = vmul.f32 %v4983_v11, %v2974_v0  ;;  %v5931_v4 = vpack.c.bf16 %v2974_v0, %v2969_v60  ;;  %v5564_v6 = vpop.f32.mrb[51].mxu1  ;;  %v3239_v60 = vld [vmem:[%s8638_s5 + $0x18] sm:$0xff]  ;;  %v5944_v0 = vpack.c.bf16 %v3241_v18, %v3240_v63 }
0x17ee   :  { %v5941_v61 = vpack.c.bf16 %v3239_v60, %v3238_v46 }
0x17ef   :  { %5933 = vmatpush3.bf16.xpose.msk.msra.mxu0 %vm8254_vm5, %v5931_v4  ;;  %v2996_v7 = vsel %vm802_vm2, %v2991_v22, 0.0 }
0x17f0   :  { %2997 = vadd.xlane.f32.xlu0 %v2996_v7  ;;  %v2979_v8 = vpop.f32.mrb[52].mxu1  ;;  %5572 = vmatprep.subr.mxu0 %v7280_v2 }
0x17f1   :  { %v5567_v9 = vpop.f32.mrb[53].mxu1  ;;  %v2992_v10 = vmul.f32 %v4983_v11, %v2979_v8  ;;  %v5938_v11 = vpack.c.bf16 %v3237_v59, %v3236_v41 }
0x17f3   :  { %v2999_v12 = vsel %vm802_vm2, %v2992_v10, 0.0  ;;  %5939 = vmatpush3.bf16.msra.mxu1 %v5938_v11 }
0x17f4   :  { %3000 = vadd.xlane.f32.xlu1 %v2999_v12  ;;  %5940 = vmatprep.subr.bf16.mxu1 %v7278_v1 }
0x17f7   :  { %5573 = vmatpush3.xpose.msk.msra.mxu0 %vm802_vm2, %v2979_v8  ;;  %5942 = vmatpush3.bf16.msra.mxu1 %v5941_v61 }
0x17f8   :  { %5934 = vmatprep.subr.bf16.mxu0 %v7278_v1  ;;  %5943 = vmatprep.subr.bf16.mxu1 %v7278_v1 }
0x17fa   :  { %5575 = vmatmul.mubr.msk.f32.vlgmr.msra.gmra.mrb[60].mxu0 %vm802_vm2, %v3002_v15 }
0x17fb   :  { %5936 = vmatpush3.bf16.msra.mxu0 %v5931_v4  ;;  %5583 = vmatprep.mubr.msk.f32.mxu0 %vm7279_vm0, %v7280_v2 }
0x17fc   :  { %5581 = vmatprep.subr.mxu0 %v7280_v2  ;;  %5945 = vmatpush3.bf16.msra.mxu1 %v5944_v0 }
0x17fd   :  { %5946 = vmatprep.subr.bf16.mxu1 %v7278_v1 }
0x17ff   :  { %5582 = vmatpush3.msra.mxu0 %v2979_v8 }
0x1800   :  { %5949 = vmatprep.subr.bf16.mxu0 %v7278_v1 }
0x1879   :  { %v2995_v17 = vpop.xlane.xlu1 %2994 }
0x187d   :  { %v2998_v25 = vpop.xlane.xlu0 %2997 }
0x1881   :  { %v3001_v26 = vpop.xlane.xlu1 %3000 }
0x18cd   :  { %v3081_v40 = vpop.f32.mrb[60].mxu0 }
0x18ce   :  { %v3088_v20 = vrot.slane %v3081_v40, %v7858_v27  ;;  %v5576_v62 = vpop.f32.mrb[61].mxu0  ;;  %v3243_v40 = vld [vmem:[%s8638_s5 + $0x38] sm:$0xff] }
0x18cf   :  { %v4988_v62 = vld [vmem:[#allocation34] ss:$0 sm:$0xff] }
0x18d0   :  { %v3089_v28 = vadd.f32 %v3088_v20, %v2995_v17  ;;  %v3090_v29 = vadd.f32 %v3088_v20, %v2998_v25  ;;  %v3091_v30 = vadd.f32 %v3088_v20, %v3001_v26  ;;  %v3242_v17 = vld [vmem:[%s8638_s5 + $0x30] sm:$0xff] }
0x18d1   :  { %v5947_v20 = vpack.c.bf16 %v3243_v40, %v3242_v17  ;;  %v3484_v17 = vld [vmem:[#allocation40 + $0x10] sm:$0xff]  ;;  %v3485_v40 = vld [vmem:[#allocation40 + $0x18] sm:$0xff] }
0x18d2   :  { %vm3093_vm6 = vcmp.gt.f32.partialorder %v3090_v29, 0.0  ;;  %v3096_v16 = vmul.f32 0.2, %v3090_v29  ;;  %vm3092_vm7 = vcmp.gt.f32.partialorder %v3089_v28, 0.0  ;;  %v3095_v33 = vmul.f32 0.2, %v3089_v28 }
0x18d3   :  { %vm3094_vm8 = vcmp.gt.f32.partialorder %v3091_v30, 0.0  ;;  %v3097_v13 = vmul.f32 0.2, %v3091_v30  ;;  %5948 = vmatpush3.bf16.msra.mxu1 %v5947_v20  ;;  %v5956_v20 = vpack.c.bf16 %v3485_v40, %v3484_v17 }
0x18d4   :  { %v3099_v34 = vsel %vm3093_vm6, %v3090_v29, %v3096_v16  ;;  %v3098_v38 = vsel %vm3092_vm7, %v3089_v28, %v3095_v33  ;;  %5952 = vmatprep.subr.bf16.mxu1 %v7278_v1 }
0x18d5   :  { %v3102_v19 = vadd.f32 %v3099_v34, %v8271_v31  ;;  %v3101_v21 = vadd.f32 %v3098_v38, %v8273_v14  ;;  %v3100_v35 = vsel %vm3094_vm8, %v3091_v30, %v3097_v13 }
0x18d6   :  { %v3103_v42 = vadd.f32 %v3100_v35, %v8275_v39 }
0x18d7   :  { %v3107_v23 = vsel %vm1091_vm4, %v3102_v19, -inf  ;;  %v3104_v24 = vsel %vm1091_vm4, %v3101_v21, -inf }
0x18d8   :  { %3108 = vmax.xlane.f32.xlu1 %v3107_v23  ;;  %3105 = vmax.xlane.f32.xlu0 %v3104_v24  ;;  %v3110_v44 = vsel %vm1091_vm4, %v3103_v42, -inf }
0x18dc   :  { %3111 = vmax.xlane.f32.xlu0 %v3110_v44 }
0x1965   :  { %v3109_v45 = vpop.xlane.xlu1 %3108  ;;  %v3106_v47 = vpop.xlane.xlu0 %3105 }
0x1966   :  { %v3114_v48 = vsub.f32 %v3102_v19, %v3109_v45  ;;  %v3113_v49 = vsub.f32 %v3101_v21, %v3106_v47 }
0x1968   :  { %v3118_v51 = vmul.f32 1.442695, %v3114_v48  ;;  %v3116_v52 = vmul.f32 1.442695, %v3113_v49  ;;  %v4995_v48 = vld [vmem:[#allocation35] ss:$0 sm:$0xff] }
0x1969   :  { %v3112_v53 = vpop.xlane.xlu0 %3111 }
0x196a   :  { %6237 = vpow2.f32 %v3118_v51  ;;  %v3115_v54 = vsub.f32 %v3103_v42, %v3112_v53 }
0x196b   :  { %6239 = vpow2.f32 %v3116_v52 }
0x196c   :  { %v3120_v55 = vmul.f32 1.442695, %v3115_v54 }
0x196e   :  { %6241 = vpow2.f32 %v3120_v55 }
0x1974   :  { %v6238_v43 = vpop.eup %6237 }
0x1975   :  { %v6240_v57 = vpop.eup %6239  ;;  %v3125_v37 = vsel %vm1091_vm4, %v6238_v43, 0.0 }
0x1976   :  { %3126 = vadd.xlane.f32.xlu0 %v3125_v37  ;;  %v3122_v50 = vsel %vm1091_vm4, %v6240_v57, 0.0 }
0x1977   :  { %3123 = vadd.xlane.f32.xlu1 %v3122_v50 }
0x1978   :  { %v6242_v56 = vpop.eup %6241 }
0x1979   :  { %v3128_v58 = vsel %vm1091_vm4, %v6242_v56, 0.0 }
0x197b   :  { %3129 = vadd.xlane.f32.xlu1 %v3128_v58 }
0x1a03   :  { %v3127_v4 = vpop.xlane.xlu0 %3126 }
0x1a04   :  { %v3124_v22 = vpop.xlane.xlu1 %3123 }
0x1a05   :  { %6243 = vrcp.f32 %v3124_v22 }
0x1a06   :  { %6245 = vrcp.f32 %v3127_v4 }
0x1a08   :  { %v3130_v6 = vpop.xlane.xlu1 %3129 }
0x1a09   :  { %6247 = vrcp.f32 %v3130_v6 }
0x1a0f   :  { %v6244_v7 = vpop.eup %6243 }
0x1a10   :  { %v3134_v8 = vmul.f32 %v6244_v7, %v6240_v57  ;;  %v6246_v9 = vpop.eup %6245 }
0x1a11   :  { %v3135_v10 = vmul.f32 %v6246_v9, %v6238_v43 }
0x1a12   :  { %5584 = vmatmul.mubr.msk.f32.vlgmr.msra.gmra.mrb[62].mxu0 %vm1091_vm4, %v3134_v8 }
0x1a13   :  { %5586 = vmatprep.mubr.msk.f32.mxu0 %vm7279_vm0, %v7280_v2  ;;  %v6248_v12 = vpop.eup %6247 }
0x1a14   :  { %v3136_v15 = vmul.f32 %v6248_v12, %v6242_v56  ;;  %v3483_v12 = vld [vmem:[#allocation40 + $0x8] sm:$0xff] }
0x1a16   :  { %5587 = vmatmul.mubr.msk.f32.gmra.mrb[64].mxu0 %vm1091_vm4, %v3135_v10  ;;  %v3482_v10 = vld [vmem:[#allocation40] sm:$0xff] }
0x1a17   :  { %5589 = vmatprep.mubr.msk.f32.mxu0 %vm7279_vm0, %v7280_v2 }
0x1a1a   :  { %5590 = vmatmul.mubr.msk.f32.gmra.mrb[66].mxu0 %vm1091_vm4, %v3136_v15  ;;  %v5953_v15 = vpack.c.bf16 %v3483_v12, %v3482_v10 }
0x1a1b   :  { %5623 = vmatprep.mubr.msk.f32.mxu0 %vm7279_vm0, %v7280_v2 }
0x1ae5   :  { %v3219_v25 = vpop.f32.mrb[62].mxu0 }
0x1ae6   :  { %v8307_v26 = vadd.f32 %v4988_v62, %v3219_v25  ;;  %v5585_v28 = vpop.f32.mrb[63].mxu0  ;;  %v3487_v25 = vld [vmem:[#allocation40 + $0x28] sm:$0xff] }
0x1ae8   :  { %v3233_v29 = vmax.f32 %v8307_v26, 0.0 }
0x1ae9   :  { %v3224_v30 = vpop.f32.mrb[64].mxu0 }
0x1aea   :  { %v8310_v16 = vadd.f32 %v4988_v62, %v3224_v30  ;;  %v5588_v33 = vpop.f32.mrb[65].mxu0  ;;  %5609 = vmatmul.mubr.msk.f32.vlgmr.msra.gmra.mrb[54].mxu1 %vm802_vm2, %v3233_v29  ;;  %v3488_v30 = vld [vmem:[#allocation40 + $0x30] sm:$0xff] }
0x1aeb   :  { %5611 = vmatprep.mubr.msk.f32.mxu1 %vm7279_vm0, %v7280_v2  ;;  %5954 = vmatpush3.bf16.msra.mxu1 %v5953_v15  ;;  %v3489_v33 = vld [vmem:[#allocation40 + $0x38] sm:$0xff] }
0x1aec   :  { %v3234_v13 = vmax.f32 %v8310_v16, 0.0  ;;  %5955 = vmatprep.subr.bf16.mxu1 %v7278_v1 }
0x1aed   :  { %v3229_v34 = vpop.f32.mrb[66].mxu0 }
0x1aee   :  { %v8318_v38 = vadd.f32 %v4988_v62, %v3229_v34  ;;  %v5591_v19 = vpop.f32.mrb[67].mxu0  ;;  %5612 = vmatmul.mubr.msk.f32.gmra.mrb[56].mxu1 %vm802_vm2, %v3234_v13  ;;  %v3486_v62 = vld [vmem:[#allocation40 + $0x20] sm:$0xff]  ;;  %v5962_v34 = vpack.c.bf16 %v3489_v33, %v3488_v30 }
0x1aef   :  { %5614 = vmatprep.mubr.msk.f32.mxu1 %vm7279_vm0, %v7280_v2  ;;  %5957 = vmatpush3.bf16.msra.mxu1 %v5956_v20  ;;  %v5959_v28 = vpack.c.bf16 %v3487_v25, %v3486_v62 }
0x1af0   :  { %v3235_v21 = vmax.f32 %v8318_v38, 0.0  ;;  %5958 = vmatprep.subr.bf16.mxu1 %v7278_v1 }
0x1af2   :  { %5615 = vmatmul.mubr.msk.f32.gmra.mrb[58].mxu1 %vm802_vm2, %v3235_v21 }
0x1af3   :  { %5648 = vmatprep.mubr.msk.f32.mxu1 %vm7279_vm0, %v7280_v2  ;;  %5960 = vmatpush3.bf16.msra.mxu1 %v5959_v28 }
0x1af4   :  { %5961 = vmatprep.subr.bf16.mxu1 %v7278_v1 }
0x1af7   :  { %5963 = vmatpush3.bf16.msra.mxu1 %v5962_v34 }
0x1af8   :  { %5979 = vmatprep.subr.bf16.mxu1 %v7278_v1 }
0x1bbd   :  { %v3319_v35 = vpop.f32.mrb[54].mxu1 }
0x1bbe   :  { %v5610_v23 = vpop.f32.mrb[55].mxu1 }
0x1bc1   :  { %v3324_v24 = vpop.f32.mrb[56].mxu1 }
0x1bc2   :  { %v5950_v42 = vpack.c.bf16 %v3324_v24, %v3319_v35  ;;  %v5613_v44 = vpop.f32.mrb[57].mxu1 }
0x1bc4   :  { %5951 = vmatpush3.bf16.msra.mxu0 %v5950_v42 }
0x1bc5   :  { %v3329_v45 = vpop.f32.mrb[58].mxu1  ;;  %5621 = vmatprep.subr.mxu0 %v7280_v2 }
0x1bc6   :  { %v5616_v47 = vpop.f32.mrb[59].mxu1 }
0x1bc8   :  { %5622 = vmatpush3.msra.mxu0 %v3329_v45 }
0x1bc9   :  { %5624 = vmatmul.mubr.msk.f32.vlgmr.msra.gmra.mrb[68].mxu0 %vm1091_vm4, %v8169_v5  ;;  %5964 = vmatprep.subr.bf16.mxu0 %v7278_v1 }
0x1bca   :  { %5626 = vmatprep.mubr.msk.f32.mxu0 %vm7279_vm0, %v7280_v2 }
0x1bcd   :  { %5627 = vmatmul.mubr.msk.f32.gmra.mrb[70].mxu0 %vm1091_vm4, %v8176_v32 }
0x1bce   :  { %5629 = vmatprep.mubr.msk.f32.mxu0 %vm7279_vm0, %v7280_v2 }
0x1bd1   :  { %5630 = vmatmul.mubr.msk.f32.gmra.mrb[72].mxu0 %vm1091_vm4, %v8182_v36 }
0x1bd2   :  { %5663 = vmatprep.mubr.msk.f32.mxu0 %vm7279_vm0, %v7280_v2 }
0x1c9c   :  { %v3406_v49 = vpop.f32.mrb[68].mxu0 }
0x1c9d   :  { %v3407_v51 = vadd.f32 %v4995_v48, %v3406_v49  ;;  %v5625_v52 = vpop.f32.mrb[69].mxu0 }
0x1c9f   :  { %v3422_v53 = vsel %vm802_vm2, %v3407_v51, 0.0 }
0x1ca0   :  { %3423 = vadd.xlane.f32.xlu0 %v3422_v53  ;;  %v3411_v54 = vpop.f32.mrb[70].mxu0  ;;  %v5000_v53 = vld [vmem:[#allocation38] ss:$0 sm:$0xff] }
0x1ca1   :  { %v3412_v55 = vadd.f32 %v4995_v48, %v3411_v54  ;;  %v5628_v43 = vpop.f32.mrb[71].mxu0 }
0x1ca3   :  { %v3425_v57 = vsel %vm802_vm2, %v3412_v55, 0.0 }
0x1ca4   :  { %3426 = vadd.xlane.f32.xlu1 %v3425_v57  ;;  %v3416_v37 = vpop.f32.mrb[72].mxu0 }
0x1ca5   :  { %v3417_v50 = vadd.f32 %v4995_v48, %v3416_v37  ;;  %v5631_v56 = vpop.f32.mrb[73].mxu0 }
0x1ca7   :  { %v3428_v58 = vsel %vm802_vm2, %v3417_v50, 0.0 }
0x1ca8   :  { %3429 = vadd.xlane.f32.xlu0 %v3428_v58 }
0x1d2d   :  { %v3424_v41 = vpop.xlane.xlu0 %3423 }
0x1d2e   :  { %v3431_v59 = vmul.f32 0.015625, %v3424_v41 }
0x1d30   :  { %v3434_v46 = vsub.f32 %v3407_v51, %v3431_v59  ;;  %v4999_v51 = vld [vmem:[#allocation37] ss:$0 sm:$0xff] }
0x1d31   :  { %v3427_v11 = vpop.xlane.xlu1 %3426 }
0x1d32   :  { %v3432_v60 = vmul.f32 0.015625, %v3427_v11  ;;  %v3437_v61 = vmul.f32 %v3434_v46, %v3434_v46 }
0x1d34   :  { %v3435_v63 = vsub.f32 %v3412_v55, %v3432_v60  ;;  %v3440_v18 = vsel %vm802_vm2, %v3437_v61, 0.0 }
0x1d35   :  { %3441 = vadd.xlane.f32.xlu1 %v3440_v18  ;;  %v3430_v0 = vpop.xlane.xlu0 %3429 }
0x1d36   :  { %v3433_v22 = vmul.f32 0.015625, %v3430_v0  ;;  %v3438_v4 = vmul.f32 %v3435_v63, %v3435_v63 }
0x1d38   :  { %v3436_v6 = vsub.f32 %v3417_v50, %v3433_v22  ;;  %v3443_v7 = vsel %vm802_vm2, %v3438_v4, 0.0 }
0x1d39   :  { %3444 = vadd.xlane.f32.xlu0 %v3443_v7  ;;  %v5004_v7 = vld [vmem:[#allocation41] ss:$0 sm:$0xff] }
0x1d3a   :  { %v3439_v8 = vmul.f32 %v3436_v6, %v3436_v6 }
0x1d3c   :  { %v3446_v9 = vsel %vm802_vm2, %v3439_v8, 0.0 }
0x1d3d   :  { %3447 = vadd.xlane.f32.xlu1 %v3446_v9 }
0x1dc2   :  { %v3442_v19 = vpop.xlane.xlu1 %3441 }
0x1dc3   :  { %v3449_v35 = vmul.f32 0.015625, %v3442_v19 }
0x1dc5   :  { %v3452_v23 = vadd.f32 1e-05, %v3449_v35 }
0x1dc6   :  { %v3445_v24 = vpop.xlane.xlu0 %3444 }
0x1dc7   :  { %6249 = vrsqrt.f32 %v3452_v23  ;;  %v3450_v42 = vmul.f32 0.015625, %v3445_v24 }
0x1dc9   :  { %v3453_v44 = vadd.f32 1e-05, %v3450_v42 }
0x1dca   :  { %v3448_v45 = vpop.xlane.xlu1 %3447 }
0x1dcb   :  { %6251 = vrsqrt.f32 %v3453_v44  ;;  %v3451_v47 = vmul.f32 0.015625, %v3448_v45 }
0x1dcd   :  { %v3454_v48 = vadd.f32 1e-05, %v3451_v47 }
0x1dcf   :  { %6253 = vrsqrt.f32 %v3454_v48 }
0x1dd1   :  { %v6250_v49 = vpop.eup %6249 }
0x1dd2   :  { %v3458_v52 = vmul.f32 %v6250_v49, %v3434_v46 }
0x1dd4   :  { %v3467_v54 = vmul.f32 %v4999_v51, %v3458_v52  ;;  %v3732_v52 = vld [vmem:[#allocation46 + $0x8] sm:$0xff] }
0x1dd5   :  { %v6252_v55 = vpop.eup %6251 }
0x1dd6   :  { %v3476_v43 = vadd.f32 %v5000_v53, %v3467_v54  ;;  %v3459_v57 = vmul.f32 %v6252_v55, %v3435_v63  ;;  %v3733_v54 = vld [vmem:[#allocation46 + $0x10] sm:$0xff]  ;;  %v3734_v55 = vld [vmem:[#allocation46 + $0x18] sm:$0xff] }
0x1dd8   :  { %v3479_v37 = vmax.f32 %v3476_v43, 0.0  ;;  %v3468_v50 = vmul.f32 %v4999_v51, %v3459_v57  ;;  %v5971_v43 = vpack.c.bf16 %v3734_v55, %v3733_v54  ;;  %v3735_v57 = vld [vmem:[#allocation46 + $0x20] sm:$0xff] }
0x1dd9   :  { %v6254_v56 = vpop.eup %6253 }
0x1dda   :  { %5649 = vmatmul.mubr.msk.f32.vlgmr.msra.gmra.mrb[60].mxu1 %vm802_vm2, %v3479_v37  ;;  %v3477_v58 = vadd.f32 %v5000_v53, %v3468_v50  ;;  %v3460_v41 = vmul.f32 %v6254_v56, %v3436_v6  ;;  %v3736_v37 = vld [vmem:[#allocation46 + $0x28] sm:$0xff]  ;;  %v3737_v56 = vld [vmem:[#allocation46 + $0x30] sm:$0xff] }
0x1ddb   :  { %5651 = vmatprep.mubr.msk.f32.mxu1 %vm7279_vm0, %v7280_v2  ;;  %v5974_v50 = vpack.c.bf16 %v3736_v37, %v3735_v57 }
0x1ddc   :  { %v3480_v59 = vmax.f32 %v3477_v58, 0.0  ;;  %v3469_v11 = vmul.f32 %v4999_v51, %v3460_v41  ;;  %v3731_v51 = vld [vmem:[#allocation46] sm:$0xff]  ;;  %v3738_v58 = vld [vmem:[#allocation46 + $0x38] sm:$0xff] }
0x1ddd   :  { %v5977_v41 = vpack.c.bf16 %v3738_v58, %v3737_v56 }
0x1dde   :  { %5652 = vmatmul.mubr.msk.f32.gmra.mrb[62].mxu1 %vm802_vm2, %v3480_v59  ;;  %v3478_v46 = vadd.f32 %v5000_v53, %v3469_v11  ;;  %v5968_v53 = vpack.c.bf16 %v3732_v52, %v3731_v51 }
0x1ddf   :  { %5654 = vmatprep.mubr.msk.f32.mxu1 %vm7279_vm0, %v7280_v2 }
0x1de0   :  { %v3481_v60 = vmax.f32 %v3478_v46, 0.0 }
0x1de2   :  { %5655 = vmatmul.mubr.msk.f32.gmra.mrb[64].mxu1 %vm802_vm2, %v3481_v60 }
0x1de3   :  { %5703 = vmatprep.mubr.msk.f32.mxu1 %vm7279_vm0, %v7280_v2 }
0x1ead   :  { %v3565_v61 = vpop.f32.mrb[60].mxu1 }
0x1eae   :  { %v5650_v63 = vpop.f32.mrb[61].mxu1 }
0x1eb1   :  { %v3570_v18 = vpop.f32.mrb[62].mxu1 }
0x1eb2   :  { %v5965_v0 = vpack.c.bf16 %v3570_v18, %v3565_v61  ;;  %v5653_v22 = vpop.f32.mrb[63].mxu1 }
0x1eb4   :  { %5966 = vmatpush3.bf16.msra.mxu0 %v5965_v0 }
0x1eb5   :  { %v3575_v4 = vpop.f32.mrb[64].mxu1  ;;  %5661 = vmatprep.subr.mxu0 %v7280_v2 }
0x1eb6   :  { %v5656_v6 = vpop.f32.mrb[65].mxu1 }
0x1eb7   :  { %v5008_v6 = vld [vmem:[#allocation43] ss:$0 sm:$0xff] }
0x1eb8   :  { %5662 = vmatpush3.msra.mxu0 %v3575_v4 }
0x1eb9   :  { %5664 = vmatmul.mubr.msk.f32.vlgmr.msra.gmra.mrb[74].mxu0 %vm1091_vm4, %v8169_v5  ;;  %5967 = vmatprep.subr.bf16.mxu0 %v7278_v1 }
0x1eba   :  { %5666 = vmatprep.mubr.msk.f32.mxu0 %vm7279_vm0, %v7280_v2  ;;  %5969 = vmatpush3.bf16.msra.mxu0 %v5968_v53 }
0x1ebb   :  { %5970 = vmatprep.subr.bf16.mxu0 %v7278_v1 }
0x1ebd   :  { %5667 = vmatmul.mubr.msk.f32.gmra.mrb[76].mxu0 %vm1091_vm4, %v8176_v32 }
0x1ebe   :  { %5669 = vmatprep.mubr.msk.f32.mxu0 %vm7279_vm0, %v7280_v2  ;;  %5972 = vmatpush3.bf16.msra.mxu0 %v5971_v43 }
0x1ebf   :  { %5973 = vmatprep.subr.bf16.mxu0 %v7278_v1 }
0x1ec1   :  { %5670 = vmatmul.mubr.msk.f32.gmra.mrb[78].mxu0 %vm1091_vm4, %v8182_v36 }
0x1ec2   :  { %5688 = vmatprep.mubr.msk.f32.mxu0 %vm7279_vm0, %v7280_v2  ;;  %5975 = vmatpush3.bf16.msra.mxu0 %v5974_v50 }
0x1ec3   :  { %5976 = vmatprep.subr.bf16.mxu0 %v7278_v1 }
0x1ec6   :  { %5978 = vmatpush3.bf16.msra.mxu0 %v5977_v41 }
0x1ec7   :  { %5986 = vmatprep.subr.bf16.mxu0 %v7278_v1 }
0x1f8c   :  { %v3652_v8 = vpop.f32.mrb[74].mxu0 }
0x1f8d   :  { %v3653_v5 = vadd.f32 %v5004_v7, %v3652_v8  ;;  %v5665_v9 = vpop.f32.mrb[75].mxu0  ;;  %v5009_v8 = vld [vmem:[#allocation44] ss:$0 sm:$0xff] }
0x1f8f   :  { %v3668_v10 = vsel %vm802_vm2, %v3653_v5, 0.0 }
0x1f90   :  { %3669 = vadd.xlane.f32.xlu0 %v3668_v10  ;;  %v3657_v12 = vpop.f32.mrb[76].mxu0 }
0x1f91   :  { %v3658_v15 = vadd.f32 %v5004_v7, %v3657_v12  ;;  %v5668_v17 = vpop.f32.mrb[77].mxu0 }
0x1f93   :  { %v3671_v32 = vsel %vm802_vm2, %v3658_v15, 0.0 }
0x1f94   :  { %3672 = vadd.xlane.f32.xlu1 %v3671_v32  ;;  %v3662_v40 = vpop.f32.mrb[78].mxu0 }
0x1f95   :  { %v3663_v20 = vadd.f32 %v5004_v7, %v3662_v40  ;;  %v5671_v62 = vpop.f32.mrb[79].mxu0 }
0x1f97   :  { %v3674_v36 = vsel %vm802_vm2, %v3663_v20, 0.0 }
0x1f98   :  { %3675 = vadd.xlane.f32.xlu0 %v3674_v36 }
0x201d   :  { %v3670_v25 = vpop.xlane.xlu0 %3669 }
0x201e   :  { %v3677_v28 = vmul.f32 0.015625, %v3670_v25 }
0x2020   :  { %v3680_v30 = vsub.f32 %v3653_v5, %v3677_v28 }
0x2021   :  { %v3673_v33 = vpop.xlane.xlu1 %3672 }
0x2022   :  { %v3678_v34 = vmul.f32 0.015625, %v3673_v33  ;;  %v3683_v19 = vmul.f32 %v3680_v30, %v3680_v30 }
0x2024   :  { %v3681_v35 = vsub.f32 %v3658_v15, %v3678_v34  ;;  %v3686_v23 = vsel %vm802_vm2, %v3683_v19, 0.0 }
0x2025   :  { %3687 = vadd.xlane.f32.xlu1 %v3686_v23  ;;  %v3676_v24 = vpop.xlane.xlu0 %3675 }
0x2026   :  { %v3679_v42 = vmul.f32 0.015625, %v3676_v24  ;;  %v3684_v44 = vmul.f32 %v3681_v35, %v3681_v35 }
0x2028   :  { %v3682_v45 = vsub.f32 %v3663_v20, %v3679_v42  ;;  %v3689_v47 = vsel %vm802_vm2, %v3684_v44, 0.0 }
0x2029   :  { %3690 = vadd.xlane.f32.xlu0 %v3689_v47 }
0x202a   :  { %v3685_v48 = vmul.f32 %v3682_v45, %v3682_v45 }
0x202c   :  { %v3692_v49 = vsel %vm802_vm2, %v3685_v48, 0.0  ;;  %v3847_v48 = vld [vmem:[%s8639_s28] sm:$0x1] }
0x202d   :  { %3693 = vadd.xlane.f32.xlu1 %v3692_v49 }
0x20b2   :  { %v3688_v59 = vpop.xlane.xlu1 %3687 }
0x20b3   :  { %v3695_v11 = vmul.f32 0.015625, %v3688_v59 }
0x20b5   :  { %v3698_v46 = vadd.f32 1e-05, %v3695_v11 }
0x20b6   :  { %v3691_v60 = vpop.xlane.xlu0 %3690 }
0x20b7   :  { %6255 = vrsqrt.f32 %v3698_v46  ;;  %v3696_v61 = vmul.f32 0.015625, %v3691_v60 }
0x20b9   :  { %v3699_v63 = vadd.f32 1e-05, %v3696_v61 }
0x20ba   :  { %v3694_v18 = vpop.xlane.xlu1 %3693 }
0x20bb   :  { %6257 = vrsqrt.f32 %v3699_v63  ;;  %v3697_v0 = vmul.f32 0.015625, %v3694_v18 }
0x20bd   :  { %v3700_v22 = vadd.f32 1e-05, %v3697_v0 }
0x20bf   :  { %6259 = vrsqrt.f32 %v3700_v22 }
0x20c1   :  { %v6256_v4 = vpop.eup %6255 }
0x20c2   :  { %v3704_v7 = vmul.f32 %v6256_v4, %v3680_v30 }
0x20c4   :  { %v3713_v5 = vmul.f32 %v5008_v6, %v3704_v7 }
0x20c5   :  { %v6258_v9 = vpop.eup %6257 }
0x20c6   :  { %v3722_v10 = vadd.f32 %v5009_v8, %v3713_v5  ;;  %v3705_v12 = vmul.f32 %v6258_v9, %v3681_v35 }
0x20c8   :  { %v3725_v15 = vmax.f32 %v3722_v10, 0.0  ;;  %v3714_v17 = vmul.f32 %v5008_v6, %v3705_v12 }
0x20c9   :  { %v6260_v32 = vpop.eup %6259 }
0x20ca   :  { %v3706_v40 = vmul.f32 %v6260_v32, %v3682_v45  ;;  %v3728_v20 = vadd.f32 %v3725_v15, %v3233_v29  ;;  %v3723_v62 = vadd.f32 %v5009_v8, %v3714_v17  ;;  %v5013_v29 = vld [vmem:[#allocation47] ss:$0 sm:$0xff]  ;;  %v4081_v17 = vld [vmem:[#allocation50] sm:$0xff]  ;;  %v4082_v32 = vld [vmem:[#allocation50 + $0x8] sm:$0xff] }
0x20cc   :  { %5689 = vmatmul.mubr.msk.f32.vlgmr.msra.gmra.mrb[80].mxu0 %vm802_vm2, %v3728_v20  ;;  %v3726_v36 = vmax.f32 %v3723_v62, 0.0  ;;  %v3715_v25 = vmul.f32 %v5008_v6, %v3706_v40  ;;  %v4083_v40 = vld [vmem:[#allocation50 + $0x10] sm:$0xff]  ;;  %v5987_v20 = vpack.c.bf16 %v4082_v32, %v4081_v17  ;;  %v4084_v62 = vld [vmem:[#allocation50 + $0x18] sm:$0xff] }
0x20cd   :  { %5691 = vmatprep.mubr.msk.f32.mxu0 %vm7279_vm0, %v7280_v2  ;;  %v4247_v17 = vld [vmem:[%s8640_s1] sm:$0xff]  ;;  %v4248_v32 = vld [vmem:[%s8640_s1 + $0x8] sm:$0xff] }
0x20ce   :  { %v3729_v28 = vadd.f32 %v3726_v36, %v3234_v13  ;;  %v3724_v30 = vadd.f32 %v5009_v8, %v3715_v25  ;;  %5988 = vmatpush3.bf16.msra.mxu0 %v5987_v20  ;;  %v5990_v36 = vpack.c.bf16 %v4084_v62, %v4083_v40  ;;  %v4085_v25 = vld [vmem:[#allocation50 + $0x20] sm:$0xff]  ;;  %v5999_v40 = vpack.c.bf16 %v4248_v32, %v4247_v17  ;;  %v4250_v62 = vld [vmem:[%s8640_s1 + $0x18] sm:$0xff] }
0x20cf   :  { %5989 = vmatprep.subr.bf16.mxu0 %v7278_v1  ;;  %v4249_v20 = vld [vmem:[%s8640_s1 + $0x10] sm:$0xff] }
0x20d0   :  { %5692 = vmatmul.mubr.msk.f32.gmra.mrb[82].mxu0 %vm802_vm2, %v3729_v28  ;;  %v3727_v33 = vmax.f32 %v3724_v30, 0.0  ;;  %v4086_v28 = vld [vmem:[#allocation50 + $0x28] sm:$0xff] }
0x20d1   :  { %5694 = vmatprep.mubr.msk.f32.mxu0 %vm7279_vm0, %v7280_v2  ;;  %v5993_v30 = vpack.c.bf16 %v4086_v28, %v4085_v25  ;;  %v4251_v25 = vld [vmem:[%s8640_s1 + $0x20] sm:$0xff]  ;;  %v4252_v28 = vld [vmem:[%s8640_s1 + $0x28] sm:$0xff] }
0x20d2   :  { %v3730_v26 = vadd.f32 %v3727_v33, %v3235_v21  ;;  %5991 = vmatpush3.bf16.msra.mxu0 %v5990_v36  ;;  %v6002_v36 = vpack.c.bf16 %v4250_v62, %v4249_v20  ;;  %v4415_v62 = vld [vmem:[%s8641_s13] sm:$0xff] }
0x20d3   :  { %5992 = vmatprep.subr.bf16.mxu0 %v7278_v1 }
0x20d4   :  { %5695 = vmatmul.mubr.msk.f32.gmra.mrb[84].mxu0 %vm802_vm2, %v3730_v26 }
0x20d5   :  { %5737 = vmatprep.mubr.msk.f32.mxu0 %vm7279_vm0, %v7280_v2 }
0x20d6   :  { %5994 = vmatpush3.bf16.msra.mxu0 %v5993_v30  ;;  %v6005_v30 = vpack.c.bf16 %v4252_v28, %v4251_v25  ;;  %v4417_v28 = vld [vmem:[%s8641_s13 + $0x10] sm:$0xff] }
0x20d7   :  { %5995 = vmatprep.subr.bf16.mxu0 %v7278_v1 }
0x219f   :  { %v3814_v34 = vpop.f32.mrb[80].mxu0 }
0x21a0   :  { %v3835_v19 = vmul.f32 %v5013_v29, %v3814_v34  ;;  %v5690_v16 = vpop.f32.mrb[81].mxu0 }
0x21a2   :  { %v3838_v13 = vsel %vm802_vm2, %v3835_v19, 0.0 }
0x21a3   :  { %3839 = vadd.xlane.f32.xlu0 %v3838_v13  ;;  %v3819_v35 = vpop.f32.mrb[82].mxu0 }
0x21a4   :  { %v3836_v23 = vmul.f32 %v5013_v29, %v3819_v35  ;;  %v5980_v24 = vpack.c.bf16 %v3819_v35, %v3814_v34  ;;  %v5693_v42 = vpop.f32.mrb[83].mxu0 }
0x21a5   :  { %v4088_v42 = vld [vmem:[#allocation50 + $0x38] sm:$0xff] }
0x21a6   :  { %5982 = vmatpush3.bf16.xpose.msk.msra.mxu1 %vm8254_vm5, %v5980_v24  ;;  %v3841_v38 = vsel %vm802_vm2, %v3836_v23, 0.0 }
0x21a7   :  { %3842 = vadd.xlane.f32.xlu1 %v3841_v38  ;;  %v3824_v21 = vpop.f32.mrb[84].mxu0  ;;  %5701 = vmatprep.subr.mxu1 %v7280_v2 }
0x21a8   :  { %v5696_v44 = vpop.f32.mrb[85].mxu0  ;;  %v3837_v45 = vmul.f32 %v5013_v29, %v3824_v21 }
0x21aa   :  { %v3844_v47 = vsel %vm802_vm2, %v3837_v45, 0.0 }
0x21ab   :  { %3845 = vadd.xlane.f32.xlu0 %v3844_v47 }
0x21ae   :  { %5702 = vmatpush3.xpose.msk.msra.mxu1 %vm802_vm2, %v3824_v21 }
0x21af   :  { %5983 = vmatprep.subr.bf16.mxu1 %v7278_v1 }
0x21b1   :  { %5704 = vmatmul.mubr.msk.f32.vlgmr.msra.gmra.mrb[66].mxu1 %vm802_vm2, %v3847_v48 }
0x21b2   :  { %5985 = vmatpush3.bf16.msra.mxu1 %v5980_v24  ;;  %5712 = vmatprep.mubr.msk.f32.mxu1 %vm7279_vm0, %v7280_v2  ;;  %v4087_v24 = vld [vmem:[#allocation50 + $0x30] sm:$0xff] }
0x21b3   :  { %5710 = vmatprep.subr.mxu1 %v7280_v2  ;;  %v5996_v38 = vpack.c.bf16 %v4088_v42, %v4087_v24 }
0x21b5   :  { %5997 = vmatpush3.bf16.msra.mxu0 %v5996_v38 }
0x21b6   :  { %5711 = vmatpush3.msra.mxu1 %v3824_v21  ;;  %6010 = vmatprep.subr.bf16.mxu0 %v7278_v1  ;;  %v5018_v21 = vld [vmem:[#allocation49] ss:$0 sm:$0xff] }
0x21b7   :  { %5998 = vmatprep.subr.bf16.mxu1 %v7278_v1 }
0x2230   :  { %v3840_v3 = vpop.xlane.xlu0 %3839 }
0x2234   :  { %v3843_v53 = vpop.xlane.xlu1 %3842 }
0x2238   :  { %v3846_v54 = vpop.xlane.xlu0 %3845 }
0x2284   :  { %v3926_v49 = vpop.f32.mrb[66].mxu1 }
0x2285   :  { %v3933_v51 = vrot.slane %v3926_v49, %v7858_v27  ;;  %v5705_v52 = vpop.f32.mrb[67].mxu1 }
0x2287   :  { %v3934_v55 = vadd.f32 %v3933_v51, %v3840_v3  ;;  %v3935_v43 = vadd.f32 %v3933_v51, %v3843_v53  ;;  %v3936_v57 = vadd.f32 %v3933_v51, %v3846_v54 }
0x2289   :  { %vm3937_vm9 = vcmp.gt.f32.partialorder %v3934_v55, 0.0  ;;  %v3940_v37 = vmul.f32 0.2, %v3934_v55  ;;  %vm3938_vm10 = vcmp.gt.f32.partialorder %v3935_v43, 0.0  ;;  %v3941_v50 = vmul.f32 0.2, %v3935_v43 }
0x228a   :  { %vm3939_vm11 = vcmp.gt.f32.partialorder %v3936_v57, 0.0  ;;  %v3942_v56 = vmul.f32 0.2, %v3936_v57 }
0x228b   :  { %v3943_v58 = vsel %vm3937_vm9, %v3934_v55, %v3940_v37  ;;  %v3944_v41 = vsel %vm3938_vm10, %v3935_v43, %v3941_v50 }
0x228c   :  { %v3946_v59 = vadd.f32 %v3943_v58, %v8273_v14  ;;  %v3947_v11 = vadd.f32 %v3944_v41, %v8271_v31  ;;  %v3945_v46 = vsel %vm3939_vm11, %v3936_v57, %v3942_v56  ;;  %v5022_v57 = vld [vmem:[#allocation52] ss:$0 sm:$0xff] }
0x228d   :  { %v3948_v61 = vadd.f32 %v3945_v46, %v8275_v39 }
0x228e   :  { %v3949_v27 = vsel %vm1091_vm4, %v3946_v59, -inf  ;;  %v3952_v60 = vsel %vm1091_vm4, %v3947_v11, -inf }
0x228f   :  { %3950 = vmax.xlane.f32.xlu1 %v3949_v27  ;;  %3953 = vmax.xlane.f32.xlu0 %v3952_v60  ;;  %v3955_v63 = vsel %vm1091_vm4, %v3948_v61, -inf }
0x2293   :  { %3956 = vmax.xlane.f32.xlu1 %v3955_v63 }
0x231c   :  { %v3951_v18 = vpop.xlane.xlu1 %3950  ;;  %v3954_v0 = vpop.xlane.xlu0 %3953 }
0x231d   :  { %v3958_v22 = vsub.f32 %v3946_v59, %v3951_v18  ;;  %v3959_v4 = vsub.f32 %v3947_v11, %v3954_v0 }
0x231f   :  { %v3961_v6 = vmul.f32 1.442695, %v3958_v22  ;;  %v3963_v14 = vmul.f32 1.442695, %v3959_v4 }
0x2320   :  { %v3957_v7 = vpop.xlane.xlu1 %3956 }
0x2321   :  { %6261 = vpow2.f32 %v3961_v6  ;;  %v3960_v31 = vsub.f32 %v3948_v61, %v3957_v7 }
0x2322   :  { %6263 = vpow2.f32 %v3963_v14 }
0x2323   :  { %v3965_v8 = vmul.f32 1.442695, %v3960_v31 }
0x2325   :  { %6265 = vpow2.f32 %v3965_v8 }
0x232b   :  { %v6262_v5 = vpop.eup %6261 }
0x232c   :  { %v6264_v9 = vpop.eup %6263  ;;  %v3967_v39 = vsel %vm1091_vm4, %v6262_v5, 0.0 }
0x232d   :  { %3968 = vadd.xlane.f32.xlu0 %v3967_v39  ;;  %v3970_v10 = vsel %vm1091_vm4, %v6264_v9, 0.0 }
0x232e   :  { %3971 = vadd.xlane.f32.xlu1 %v3970_v10 }
0x232f   :  { %v6266_v12 = vpop.eup %6265 }
0x2330   :  { %v3973_v15 = vsel %vm1091_vm4, %v6266_v12, 0.0 }
0x2331   :  { %3974 = vadd.xlane.f32.xlu0 %v3973_v15 }
0x23ba   :  { %v3969_v33 = vpop.xlane.xlu0 %3968 }
0x23bb   :  { %v3972_v26 = vpop.xlane.xlu1 %3971  ;;  %6267 = vrcp.f32 %v3969_v33  ;;  %v4253_v33 = vld [vmem:[%s8640_s1 + $0x30] sm:$0xff] }
0x23bc   :  { %6269 = vrcp.f32 %v3972_v26  ;;  %v4254_v26 = vld [vmem:[%s8640_s1 + $0x38] sm:$0xff] }
0x23be   :  { %v3975_v29 = vpop.xlane.xlu0 %3974 }
0x23bf   :  { %6271 = vrcp.f32 %v3975_v29  ;;  %v6008_v29 = vpack.c.bf16 %v4254_v26, %v4253_v33  ;;  %v4518_v26 = vld [vmem:[%s8642_s8] sm:$0xff] }
0x23c5   :  { %v6268_v34 = vpop.eup %6267 }
0x23c6   :  { %v3979_v19 = vmul.f32 %v6268_v34, %v6262_v5  ;;  %v6270_v16 = vpop.eup %6269 }
0x23c7   :  { %v3980_v13 = vmul.f32 %v6270_v16, %v6264_v9 }
0x23c8   :  { %5713 = vmatmul.mubr.msk.f32.vlgmr.msra.gmra.mrb[68].mxu1 %vm1091_vm4, %v3979_v19 }
0x23c9   :  { %5715 = vmatprep.mubr.msk.f32.mxu1 %vm7279_vm0, %v7280_v2  ;;  %v6272_v35 = vpop.eup %6271  ;;  %6000 = vmatpush3.bf16.msra.mxu1 %v5999_v40 }
0x23ca   :  { %v3981_v23 = vmul.f32 %v6272_v35, %v6266_v12  ;;  %6001 = vmatprep.subr.bf16.mxu1 %v7278_v1 }
0x23cc   :  { %5716 = vmatmul.mubr.msk.f32.gmra.mrb[70].mxu1 %vm1091_vm4, %v3980_v13 }
0x23cd   :  { %5718 = vmatprep.mubr.msk.f32.mxu1 %vm7279_vm0, %v7280_v2  ;;  %6003 = vmatpush3.bf16.msra.mxu1 %v6002_v36  ;;  %v4416_v36 = vld [vmem:[%s8641_s13 + $0x8] sm:$0xff] }
0x23ce   :  { %6004 = vmatprep.subr.bf16.mxu1 %v7278_v1  ;;  %v6011_v25 = vpack.c.bf16 %v4416_v36, %v4415_v62 }
0x23d0   :  { %5719 = vmatmul.mubr.msk.f32.gmra.mrb[72].mxu1 %vm1091_vm4, %v3981_v23 }
0x23d1   :  { %5762 = vmatprep.mubr.msk.f32.mxu1 %vm7279_vm0, %v7280_v2  ;;  %6006 = vmatpush3.bf16.msra.mxu1 %v6005_v30  ;;  %v4418_v30 = vld [vmem:[%s8641_s13 + $0x18] sm:$0xff] }
0x23d2   :  { %6007 = vmatprep.subr.bf16.mxu1 %v7278_v1  ;;  %v6014_v33 = vpack.c.bf16 %v4418_v30, %v4417_v28  ;;  %v4722_v30 = vld [vmem:[%s7556_s24] sm:$0xff] }
0x23d5   :  { %6009 = vmatpush3.bf16.msra.mxu1 %v6008_v29  ;;  %v4519_v29 = vld [vmem:[%s8642_s8 + $0x8] sm:$0xff] }
0x23d6   :  { %6016 = vmatprep.subr.bf16.mxu1 %v7278_v1 }
0x249b   :  { %v4064_v44 = vpop.f32.mrb[68].mxu1 }
0x249c   :  { %v4065_v45 = vadd.f32 %v5018_v21, %v4064_v44  ;;  %v5714_v47 = vpop.f32.mrb[69].mxu1  ;;  %v5026_v44 = vld [vmem:[#allocation53] ss:$0 sm:$0xff] }
0x249d   :  { %v5027_v47 = vld [vmem:[#allocation55] ss:$0 sm:$0xff] }
0x249e   :  { %v4078_v48 = vmax.f32 %v4065_v45, 0.0 }
0x249f   :  { %v4069_v3 = vpop.f32.mrb[70].mxu1 }
0x24a0   :  { %v4070_v49 = vadd.f32 %v5018_v21, %v4069_v3  ;;  %v5717_v51 = vpop.f32.mrb[71].mxu1  ;;  %5738 = vmatmul.mubr.msk.f32.vlgmr.msra.gmra.mrb[86].mxu0 %vm802_vm2, %v4078_v48 }
0x24a1   :  { %5740 = vmatprep.mubr.msk.f32.mxu0 %vm7279_vm0, %v7280_v2  ;;  %6012 = vmatpush3.bf16.msra.mxu0 %v6011_v25 }
0x24a2   :  { %v4079_v52 = vmax.f32 %v4070_v49, 0.0  ;;  %6013 = vmatprep.subr.bf16.mxu0 %v7278_v1 }
0x24a3   :  { %v4074_v53 = vpop.f32.mrb[72].mxu1 }
0x24a4   :  { %v4075_v54 = vadd.f32 %v5018_v21, %v4074_v53  ;;  %v5720_v55 = vpop.f32.mrb[73].mxu1  ;;  %5741 = vmatmul.mubr.msk.f32.gmra.mrb[88].mxu0 %vm802_vm2, %v4079_v52 }
0x24a5   :  { %5743 = vmatprep.mubr.msk.f32.mxu0 %vm7279_vm0, %v7280_v2  ;;  %6015 = vmatpush3.bf16.msra.mxu0 %v6014_v33  ;;  %v5042_v33 = vld [vmem:[%s7551_s17] ss:$0 sm:$0xff] }
0x24a6   :  { %v4080_v43 = vmax.f32 %v4075_v54, 0.0  ;;  %6022 = vmatprep.subr.bf16.mxu0 %v7278_v1 }
0x24a8   :  { %5744 = vmatmul.mubr.msk.f32.gmra.mrb[90].mxu0 %vm802_vm2, %v4080_v43 }
0x24a9   :  { %5779 = vmatprep.mubr.msk.f32.mxu0 %vm7279_vm0, %v7280_v2 }
0x2573   :  { %v4171_v37 = vpop.f32.mrb[86].mxu0 }
0x2574   :  { %v4172_v50 = vadd.f32 %v5022_v57, %v4171_v37  ;;  %v5739_v56 = vpop.f32.mrb[87].mxu0 }
0x2576   :  { %v4187_v58 = vsel %vm802_vm2, %v4172_v50, 0.0 }
0x2577   :  { %4188 = vadd.xlane.f32.xlu1 %v4187_v58  ;;  %v4176_v41 = vpop.f32.mrb[88].mxu0  ;;  %v5028_v58 = vld [vmem:[#allocation56] ss:$0 sm:$0xff] }
0x2578   :  { %v4177_v59 = vadd.f32 %v5022_v57, %v4176_v41  ;;  %v5742_v11 = vpop.f32.mrb[89].mxu0 }
0x257a   :  { %v4190_v46 = vsel %vm802_vm2, %v4177_v59, 0.0 }
0x257b   :  { %4191 = vadd.xlane.f32.xlu0 %v4190_v46  ;;  %v4181_v27 = vpop.f32.mrb[90].mxu0 }
0x257c   :  { %v4182_v60 = vadd.f32 %v5022_v57, %v4181_v27  ;;  %v5745_v61 = vpop.f32.mrb[91].mxu0 }
0x257e   :  { %v4193_v63 = vsel %vm802_vm2, %v4182_v60, 0.0 }
0x257f   :  { %4194 = vadd.xlane.f32.xlu1 %v4193_v63 }
0x2604   :  { %v4189_v18 = vpop.xlane.xlu1 %4188 }
0x2605   :  { %v4196_v0 = vmul.f32 0.015625, %v4189_v18 }
0x2607   :  { %v4199_v22 = vsub.f32 %v4172_v50, %v4196_v0 }
0x2608   :  { %v4192_v4 = vpop.xlane.xlu0 %4191 }
0x2609   :  { %v4197_v6 = vmul.f32 0.015625, %v4192_v4  ;;  %v4202_v14 = vmul.f32 %v4199_v22, %v4199_v22 }
0x260b   :  { %v4200_v7 = vsub.f32 %v4177_v59, %v4197_v6  ;;  %v4205_v31 = vsel %vm802_vm2, %v4202_v14, 0.0 }
0x260c   :  { %4206 = vadd.xlane.f32.xlu0 %v4205_v31  ;;  %v4195_v8 = vpop.xlane.xlu1 %4194 }
0x260d   :  { %v4198_v5 = vmul.f32 0.015625, %v4195_v8  ;;  %v4203_v9 = vmul.f32 %v4200_v7, %v4200_v7 }
0x260f   :  { %v4201_v39 = vsub.f32 %v4182_v60, %v4198_v5  ;;  %v4208_v10 = vsel %vm802_vm2, %v4203_v9, 0.0 }
0x2610   :  { %4209 = vadd.xlane.f32.xlu1 %v4208_v10 }
0x2611   :  { %v4204_v12 = vmul.f32 %v4201_v39, %v4201_v39 }
0x2613   :  { %v4211_v15 = vsel %vm802_vm2, %v4204_v12, 0.0 }
0x2614   :  { %4212 = vadd.xlane.f32.xlu0 %v4211_v15 }
0x2699   :  { %v4207_v34 = vpop.xlane.xlu0 %4206 }
0x269a   :  { %v4214_v19 = vmul.f32 0.015625, %v4207_v34  ;;  %v6017_v34 = vpack.c.bf16 %v4519_v29, %v4518_v26 }
0x269c   :  { %v4217_v16 = vadd.f32 1e-05, %v4214_v19 }
0x269d   :  { %v4210_v13 = vpop.xlane.xlu1 %4209 }
0x269e   :  { %6273 = vrsqrt.f32 %v4217_v16  ;;  %v4215_v35 = vmul.f32 0.015625, %v4210_v13 }
0x26a0   :  { %v4218_v23 = vadd.f32 1e-05, %v4215_v35 }
0x26a1   :  { %v4213_v24 = vpop.xlane.xlu0 %4212 }
0x26a2   :  { %6275 = vrsqrt.f32 %v4218_v23  ;;  %v4216_v42 = vmul.f32 0.015625, %v4213_v24 }
0x26a4   :  { %v4219_v38 = vadd.f32 1e-05, %v4216_v42 }
0x26a6   :  { %6277 = vrsqrt.f32 %v4219_v38 }
0x26a8   :  { %v6274_v21 = vpop.eup %6273 }
0x26a9   :  { %v4223_v45 = vmul.f32 %v6274_v21, %v4199_v22 }
0x26ab   :  { %v4232_v48 = vmul.f32 %v5026_v44, %v4223_v45  ;;  %v5032_v45 = vld [vmem:[#allocation58] ss:$0 sm:$0xff] }
0x26ac   :  { %v6276_v3 = vpop.eup %6275 }
0x26ad   :  { %v4241_v49 = vadd.f32 %v5027_v47, %v4232_v48  ;;  %v4224_v51 = vmul.f32 %v6276_v3, %v4200_v7  ;;  %v5033_v48 = vld [vmem:[#allocation59] ss:$0 sm:$0xff] }
0x26af   :  { %v4244_v52 = vmax.f32 %v4241_v49, 0.0  ;;  %v4233_v53 = vmul.f32 %v5026_v44, %v4224_v51 }
0x26b0   :  { %v6278_v54 = vpop.eup %6277 }
0x26b1   :  { %5763 = vmatmul.mubr.msk.f32.vlgmr.msra.gmra.mrb[74].mxu1 %vm802_vm2, %v4244_v52  ;;  %v4242_v55 = vadd.f32 %v5027_v47, %v4233_v53  ;;  %v4225_v43 = vmul.f32 %v6278_v54, %v4201_v39 }
0x26b2   :  { %5765 = vmatprep.mubr.msk.f32.mxu1 %vm7279_vm0, %v7280_v2  ;;  %6018 = vmatpush3.bf16.msra.mxu1 %v6017_v34 }
0x26b3   :  { %v4245_v57 = vmax.f32 %v4242_v55, 0.0  ;;  %v4234_v37 = vmul.f32 %v5026_v44, %v4225_v43  ;;  %6019 = vmatprep.subr.bf16.mxu1 %v7278_v1 }
0x26b5   :  { %5766 = vmatmul.mubr.msk.f32.gmra.mrb[76].mxu1 %vm802_vm2, %v4245_v57  ;;  %v4243_v50 = vadd.f32 %v5027_v47, %v4234_v37 }
0x26b6   :  { %5768 = vmatprep.mubr.msk.f32.mxu1 %vm7279_vm0, %v7280_v2 }
0x26b7   :  { %v4246_v56 = vmax.f32 %v4243_v50, 0.0 }
0x26b9   :  { %5769 = vmatmul.mubr.msk.f32.gmra.mrb[78].mxu1 %vm802_vm2, %v4246_v56 }
0x26ba   :  { %5796 = vmatprep.mubr.msk.f32.mxu1 %vm7279_vm0, %v7280_v2 }
0x2784   :  { %v4337_v41 = vpop.f32.mrb[74].mxu1 }
0x2785   :  { %v4338_v59 = vadd.f32 %v5028_v58, %v4337_v41  ;;  %v5764_v11 = vpop.f32.mrb[75].mxu1  ;;  %v4521_v41 = vld [vmem:[%s8642_s8 + $0x18] sm:$0xff] }
0x2786   :  { %v5034_v11 = vld [vmem:[#allocation61] ss:$0 sm:$0xff] }
0x2787   :  { %v4354_v46 = vsel %vm4353_vm12, %v4338_v59, 0.0 }
0x2788   :  { %4355 = vadd.xlane.f32.xlu1 %v4354_v46  ;;  %v4342_v27 = vpop.f32.mrb[76].mxu1 }
0x2789   :  { %v4343_v60 = vadd.f32 %v5028_v58, %v4342_v27  ;;  %v5767_v61 = vpop.f32.mrb[77].mxu1 }
0x278b   :  { %v4357_v63 = vsel %vm4353_vm12, %v4343_v60, 0.0 }
0x278c   :  { %4358 = vadd.xlane.f32.xlu0 %v4357_v63  ;;  %v4347_v18 = vpop.f32.mrb[78].mxu1 }
0x278d   :  { %v4348_v0 = vadd.f32 %v5028_v58, %v4347_v18  ;;  %v5770_v22 = vpop.f32.mrb[79].mxu1  ;;  %v4520_v58 = vld [vmem:[%s8642_s8 + $0x10] sm:$0xff] }
0x278f   :  { %v4360_v4 = vsel %vm4353_vm12, %v4348_v0, 0.0 }
0x2790   :  { %4361 = vadd.xlane.f32.xlu1 %v4360_v4 }
0x2815   :  { %v4356_v6 = vpop.xlane.xlu1 %4355 }
0x2816   :  { %v4364_v14 = vmul.f32 0.03125, %v4356_v6 }
0x2818   :  { %v4367_v7 = vsub.f32 %v4338_v59, %v4364_v14  ;;  %v6020_v59 = vpack.c.bf16 %v4521_v41, %v4520_v58 }
0x2819   :  { %v4359_v31 = vpop.xlane.xlu0 %4358 }
0x281a   :  { %v4365_v8 = vmul.f32 0.03125, %v4359_v31  ;;  %v4370_v5 = vmul.f32 %v4367_v7, %v4367_v7  ;;  %6021 = vmatpush3.bf16.msra.mxu1 %v6020_v59  ;;  %v4621_v31 = vld [vmem:[%s8643_s3] sm:$0xff] }
0x281b   :  { %5818 = vmatprep.subr.mxu1 %v7280_v2 }
0x281c   :  { %v4368_v9 = vsub.f32 %v4343_v60, %v4365_v8  ;;  %v4373_v39 = vsel %vm4353_vm12, %v4370_v5, 0.0  ;;  %v4622_v8 = vld [vmem:[%s8643_s3 + $0x8] sm:$0xff] }
0x281d   :  { %4374 = vadd.xlane.f32.xlu0 %v4373_v39  ;;  %v4362_v10 = vpop.xlane.xlu1 %4361  ;;  %v6023_v5 = vpack.c.bf16 %v4622_v8, %v4621_v31 }
0x281e   :  { %v4366_v12 = vmul.f32 0.03125, %v4362_v10  ;;  %v4371_v15 = vmul.f32 %v4368_v9, %v4368_v9 }
0x2820   :  { %v4369_v17 = vsub.f32 %v4348_v0, %v4366_v12  ;;  %v4376_v32 = vsel %vm4353_vm12, %v4371_v15, 0.0 }
0x2821   :  { %4377 = vadd.xlane.f32.xlu1 %v4376_v32 }
0x2822   :  { %v4372_v40 = vmul.f32 %v4369_v17, %v4369_v17 }
0x2824   :  { %v4379_v20 = vsel %vm4353_vm12, %v4372_v40, 0.0 }
0x2825   :  { %4380 = vadd.xlane.f32.xlu0 %v4379_v20 }
0x28aa   :  { %v4375_v19 = vpop.xlane.xlu0 %4374 }
0x28ab   :  { %v4382_v16 = vmul.f32 0.03125, %v4375_v19 }
0x28ad   :  { %v4385_v13 = vadd.f32 1e-05, %v4382_v16 }
0x28ae   :  { %v4378_v35 = vpop.xlane.xlu1 %4377 }
0x28af   :  { %6279 = vrsqrt.f32 %v4385_v13  ;;  %v4383_v23 = vmul.f32 0.03125, %v4378_v35 }
0x28b1   :  { %v4386_v24 = vadd.f32 1e-05, %v4383_v23 }
0x28b2   :  { %v4381_v42 = vpop.xlane.xlu0 %4380 }
0x28b3   :  { %6281 = vrsqrt.f32 %v4386_v24  ;;  %v4384_v38 = vmul.f32 0.03125, %v4381_v42 }
0x28b5   :  { %v4387_v21 = vadd.f32 1e-05, %v4384_v38 }
0x28b7   :  { %6283 = vrsqrt.f32 %v4387_v21 }
0x28b9   :  { %v6280_v44 = vpop.eup %6279 }
0x28ba   :  { %v4391_v47 = vmul.f32 %v6280_v44, %v4367_v7  ;;  %v5046_v44 = vld [vmem:[#allocation2] ss:$0 sm:$0xff] }
0x28bc   :  { %v4400_v3 = vmul.f32 %v5032_v45, %v4391_v47 }
0x28bd   :  { %v6282_v49 = vpop.eup %6281 }
0x28be   :  { %v4409_v51 = vadd.f32 %v5033_v48, %v4400_v3  ;;  %v4392_v1 = vmul.f32 %v6282_v49, %v4368_v9  ;;  %v5038_v9 = vld [vmem:[%s8644_s14] ss:$0 sm:$0xff] }
0x28c0   :  { %v4412_v52 = vmax.f32 %v4409_v51, 0.0  ;;  %v4401_v53 = vmul.f32 %v5032_v45, %v4392_v1 }
0x28c1   :  { %v6284_v54 = vpop.eup %6283 }
0x28c2   :  { %v4393_v55 = vmul.f32 %v6284_v54, %v4369_v17  ;;  %5780 = vmatmul.mubr.msk.f32.vlgmr.msra.gmra.mrb[92].mxu0 %vm4353_vm12, %v4412_v52  ;;  %v4410_v43 = vadd.f32 %v5033_v48, %v4401_v53 }
0x28c3   :  { %5782 = vmatprep.mubr.msk.f32.mxu0 %vm7279_vm0, %v7280_v2  ;;  %6024 = vmatpush3.bf16.msra.mxu0 %v6023_v5 }
0x28c4   :  { %v4413_v57 = vmax.f32 %v4410_v43, 0.0  ;;  %v4402_v37 = vmul.f32 %v5032_v45, %v4393_v55 }
0x28c6   :  { %5783 = vmatmul.mubr.msk.f32.gmra.mrb[94].mxu0 %vm4353_vm12, %v4413_v57  ;;  %v4411_v50 = vadd.f32 %v5033_v48, %v4402_v37 }
0x28c7   :  { %5785 = vmatprep.mubr.msk.f32.mxu0 %vm7279_vm0, %v7280_v2 }
0x28c8   :  { %v4414_v56 = vmax.f32 %v4411_v50, 0.0 }
0x28ca   :  { %5786 = vmatmul.mubr.msk.f32.gmra.mrb[96].mxu0 %vm4353_vm12, %v4414_v56 }
0x28cb   :  { %5809 = vmatprep.mubr.msk.f32.mxu0 %vm7279_vm0, %v7280_v2 }
0x2995   :  { %v4501_v46 = vpop.f32.mrb[92].mxu0 }
0x2996   :  { %v4502_v27 = vadd.f32 %v5034_v11, %v4501_v46  ;;  %v5781_v60 = vpop.f32.mrb[93].mxu0 }
0x2998   :  { %v4515_v61 = vmax.f32 %v4502_v27, 0.0 }
0x2999   :  { %v4506_v63 = vpop.f32.mrb[94].mxu0 }
0x299a   :  { %v4507_v18 = vadd.f32 %v5034_v11, %v4506_v63  ;;  %v5784_v0 = vpop.f32.mrb[95].mxu0  ;;  %5797 = vmatmul.mubr.msk.f32.vlgmr.msra.gmra.mrb[80].mxu1 %vm4353_vm12, %v4515_v61 }
0x299b   :  { %5799 = vmatprep.mubr.msk.f32.mxu1 %vm7279_vm0, %v7280_v2  ;;  %5819 = vmatpush3.msra.mxu1 %v4722_v30 }
0x299c   :  { %v4516_v22 = vmax.f32 %v4507_v18, 0.0 }
0x299d   :  { %v4511_v4 = vpop.f32.mrb[96].mxu0 }
0x299e   :  { %v4512_v6 = vadd.f32 %v5034_v11, %v4511_v4  ;;  %v5787_v14 = vpop.f32.mrb[97].mxu0  ;;  %5800 = vmatmul.mubr.msk.f32.gmra.mrb[82].mxu1 %vm4353_vm12, %v4516_v22 }
0x299f   :  { %5802 = vmatprep.mubr.msk.f32.mxu1 %vm7279_vm0, %v7280_v2 }
0x29a0   :  { %v4517_v7 = vmax.f32 %v4512_v6, 0.0 }
0x29a2   :  { %5803 = vmatmul.mubr.msk.f32.gmra.mrb[84].mxu1 %vm4353_vm12, %v4517_v7 }
0x29a3   :  { %5820 = vmatprep.mubr.msk.f32.mxu1 %vm7279_vm0, %v7280_v2 }
0x2a6d   :  { %v4604_v39 = vpop.f32.mrb[80].mxu1 }
0x2a6e   :  { %v4605_v10 = vadd.f32 %v5038_v9, %v4604_v39  ;;  %v5798_v12 = vpop.f32.mrb[81].mxu1 }
0x2a70   :  { %v4618_v15 = vmax.f32 %v4605_v10, 0.0 }
0x2a71   :  { %v4609_v17 = vpop.f32.mrb[82].mxu1 }
0x2a72   :  { %v4610_v32 = vadd.f32 %v5038_v9, %v4609_v17  ;;  %v5801_v40 = vpop.f32.mrb[83].mxu1  ;;  %5810 = vmatmul.mubr.msk.f32.vlgmr.msra.gmra.mrb[98].mxu0 %vm710_vm1, %v4618_v15 }
0x2a73   :  { %5812 = vmatprep.mubr.msk.f32.mxu0 %vm7279_vm0, %v7280_v2 }
0x2a74   :  { %v4619_v20 = vmax.f32 %v4610_v32, 0.0 }
0x2a75   :  { %v4614_v62 = vpop.f32.mrb[84].mxu1 }
0x2a76   :  { %v4615_v36 = vadd.f32 %v5038_v9, %v4614_v62  ;;  %v5804_v25 = vpop.f32.mrb[85].mxu1  ;;  %5813 = vmatmul.mubr.msk.f32.gmra.mrb[100].mxu0 %vm710_vm1, %v4619_v20 }
0x2a77   :  { %5815 = vmatprep.mubr.msk.f32.mxu0 %vm7279_vm0, %v7280_v2 }
0x2a78   :  { %v4620_v28 = vmax.f32 %v4615_v36, 0.0 }
0x2a7a   :  { %5816 = vmatmul.mubr.msk.f32.gmra.mrb[102].mxu0 %vm710_vm1, %v4620_v28 }
0x2b45   :  { %v4705_v26 = vpop.f32.mrb[98].mxu0 }
0x2b46   :  { %v4706_v29 = vadd.f32 %v5042_v33, %v4705_v26  ;;  %v5811_v34 = vpop.f32.mrb[99].mxu0 }
0x2b48   :  { %v4719_v19 = vmax.f32 %v4706_v29, 0.0 }
0x2b49   :  { %v4710_v16 = vpop.f32.mrb[100].mxu0 }
0x2b4a   :  { %v4711_v13 = vadd.f32 %v5042_v33, %v4710_v16  ;;  %v5814_v35 = vpop.f32.mrb[101].mxu0  ;;  %5821 = vmatmul.mubr.msk.f32.vlgmr.msra.gmra.mrb[86].mxu1 %vm4730_vm13, %v4719_v19 }
0x2b4b   :  { %5823 = vmatprep.mubr.msk.f32.mxu1 %vm7279_vm0, %v7280_v2 }
0x2b4c   :  { %v4720_v23 = vmax.f32 %v4711_v13, 0.0 }
0x2b4d   :  { %v4715_v24 = vpop.f32.mrb[102].mxu0 }
0x2b4e   :  { %v4716_v42 = vadd.f32 %v5042_v33, %v4715_v24  ;;  %v5817_v38 = vpop.f32.mrb[103].mxu0  ;;  %5824 = vmatmul.mubr.msk.f32.gmra.mrb[88].mxu1 %vm4730_vm13, %v4720_v23 }
0x2b4f   :  { %5826 = vmatprep.mubr.msk.f32.mxu1 %vm7279_vm0, %v7280_v2 }
0x2b50   :  { %v4721_v21 = vmax.f32 %v4716_v42, 0.0 }
0x2b52   :  { %5827 = vmatmul.mubr.msk.f32.gmra.mrb[90].mxu1 %vm4730_vm13, %v4721_v21 }
0x2c1d   :  { %v4806_v45 = vpop.f32.mrb[86].mxu1 }
0x2c1e   :  { %v4807_v47 = vadd.f32 %v5046_v44, %v4806_v45  ;;  %v5822_v48 = vpop.f32.mrb[87].mxu1 }
0x2c20   :  { %4821 = vst.msk [vmem:[%s7564_s6] sm:$0xff] %vm4820_vm14, %v4807_v47 }
0x2c21   :  { %v4811_v3 = vpop.f32.mrb[88].mxu1 }
0x2c22   :  { %v4812_v49 = vadd.f32 %v5046_v44, %v4811_v3  ;;  %v5825_v51 = vpop.f32.mrb[89].mxu1 }
0x2c24   :  { %4822 = vst.msk [vmem:[%s7564_s6 + $0x8] sm:$0xff] %vm4820_vm14, %v4812_v49 }
0x2c25   :  { %v4816_v1 = vpop.f32.mrb[90].mxu1 }
0x2c26   :  { %v4817_v52 = vadd.f32 %v5046_v44, %v4816_v1  ;;  %v5828_v53 = vpop.f32.mrb[91].mxu1 }
0x2c28   :  { %4823 = vst.msk [vmem:[%s7564_s6 + $0x10] sm:$0xff] %vm4820_vm14, %v4817_v52 }
0x2c29   :  { %4828 = vsyncpa [#allocation4], 1 }
0x2c2a   :  { %4829 = vsyncpa [#allocation6], 1 }
0x2c2b   :  { %4830 = vsyncpa [#allocation9], 1 }
0x2c2c   :  { %4831 = vsyncpa [#allocation12], 1 }
0x2c2d   :  { %4832 = vsyncpa [#allocation15], 1 }
0x2c2e   :  { %4833 = vsyncpa [#allocation18], 1 }
0x2c2f   :  { %4834 = vsyncpa [#allocation21], 1 }
0x2c30   :  { %4835 = vsyncpa [#allocation24], 1 }
0x2c31   :  { %4836 = vsyncpa [#allocation27], 1 }
0x2c32   :  { %4837 = vsyncpa [#allocation30], 1 }
0x2c33   :  { %4838 = vsyncpa [#allocation33], 1 }
0x2c34   :  { %4839 = vsyncpa [#allocation36], 1 }
0x2c35   :  { %4840 = vsyncpa [#allocation39], 1 }
0x2c36   :  { %4841 = vsyncpa [#allocation42], 1 }
0x2c37   :  { %4842 = vsyncpa [#allocation45], 1 }
0x2c38   :  { %4843 = vsyncpa [#allocation48], 1 }
0x2c39   :  { %4844 = vsyncpa [#allocation51], 1 }
0x2c3a   :  { %4845 = vsyncpa [#allocation54], 1 }
0x2c3b   :  { %4846 = vsyncpa [#allocation57], 1 }
0x2c3c   :  { %4847 = vsyncpa [#allocation60], 1 }

</bundles_post_ra>
